<compile_context>
chip_gen: v5e
topology: v5e:2x2
jax: 0.10.0
libtpu: 0.0.40
codegen_flags: <defaults>
</compile_context>

<pallas_src>
import numpy as np
import jax
import jax.numpy as jnp
from jax.experimental import pallas as pl
from jax.experimental.pallas import tpu as pltpu

EPS = 1e-5


# ----------------------------------------------------------------------------
# Fused DownBlock kernel: 4x (conv3x3 -> BN -> [+res] -> SiLU) + strided conv.
# Row-flat layout: a[(n*H + y), (x*C + c)] = activation[n, y, x, c].
# ----------------------------------------------------------------------------
def _down_block_kernel(x_ref, s_ref, sd_ref, m_ref, md_ref, cb_ref, cbd_ref,
                       gam_ref, bet_ref, g_ref, gt_ref, down_ref, skip_ref):
    NH, WC = x_ref.shape
    NHd = sd_ref.shape[1]
    WCd = md_ref.shape[2]
    Cin = g_ref.shape[1]
    inv_count = 1.0 / float(NH * (WC // Cin))   # 1 / (N*H*W)

    def conv(a, ci):
        # 3x3 pad-1 conv: 3 banded matmuls (128-deep contraction, 128 lanes).
        acc = cb_ref[ci] + jnp.dot(
            jnp.dot(s_ref[0], a, preferred_element_type=jnp.float32),
            m_ref[ci, 0], preferred_element_type=jnp.float32)
        for dy in (1, 2):
            acc = acc + jnp.dot(
                jnp.dot(s_ref[dy], a, preferred_element_type=jnp.float32),
                m_ref[ci, dy], preferred_element_type=jnp.float32)
        return acc

    def bn_silu(h, bi, res=None):
        # BatchNorm2d training stats (biased var) -> affine -> (+res) -> SiLU.
        g = g_ref[...]
        gt = gt_ref[...]
        mean_c = jnp.dot(jnp.sum(h, axis=0, keepdims=True), g,
                         preferred_element_type=jnp.float32) * inv_count
        cen = h - jnp.dot(mean_c, gt, preferred_element_type=jnp.float32)
        var_c = jnp.dot(jnp.sum(cen * cen, axis=0, keepdims=True), g,
                        preferred_element_type=jnp.float32) * inv_count
        inv_t = jnp.dot(jax.lax.rsqrt(var_c + EPS), gt,
                        preferred_element_type=jnp.float32)
        y = cen * inv_t * gam_ref[bi] + bet_ref[bi]
        if res is not None:
            y = y + res
        return y * jax.nn.sigmoid(y)   # SiLU

    x = x_ref[...]
    # ResNetBlock 1
    h = bn_silu(conv(x, 0), 0)
    h = bn_silu(conv(h, 1), 1, res=x)
    # ResNetBlock 2
    k = bn_silu(conv(h, 2), 2)
    skip = bn_silu(conv(k, 3), 3, res=h)
    skip_ref[...] = skip

    # Stride-2 downsample conv, computed directly at half resolution.
    acc = cbd_ref[...] + jnp.dot(
        jnp.dot(sd_ref[0], skip, preferred_element_type=jnp.float32),
        md_ref[0], preferred_element_type=jnp.float32)
    for dy in (1, 2):
        acc = acc + jnp.dot(
            jnp.dot(sd_ref[dy], skip, preferred_element_type=jnp.float32),
            md_ref[dy], preferred_element_type=jnp.float32)
    down_ref[...] = acc


# ----------------------------------------------------------------------------
# Host-side constant builders (traced once under jit; tiny).
# ----------------------------------------------------------------------------
def _row_select(n, h_in, h_out, stride):
    """(3, n*h_out, n*h_in): S[dy, (n,y), (n,h)] = 1 iff h == stride*y+dy-1."""
    s = np.zeros((3, n * h_out, n * h_in), np.float32)
    for dy in range(3):
        for y in range(h_out):
            hh = stride * y + dy - 1
            if 0 <= hh < h_in:
                for b in range(n):
                    s[dy, b * h_out + y, b * h_in + hh] = 1.0
    return jnp.asarray(s)


def _col_band(w, w_in, w_out, stride):
    """w: (3,3,Cin,Cout) HWIO -> (3, w_in*Cin, w_out*Cout) banded matrices."""
    sel = np.zeros((3, w_in, w_out), np.float32)
    for dx in range(3):
        for xo in range(w_out):
            xi = stride * xo + dx - 1
            if 0 <= xi < w_in:
                sel[dx, xi, xo] = 1.0
    cin, cout = w.shape[2], w.shape[3]
    m = jnp.einsum("dio,kdcp->kicop", jnp.asarray(sel), w)
    return m.reshape(3, w_in * cin, w_out * cout)


def _tile_c(v, w):
    """Per-channel vector (C,) -> lane pattern (1, w*C), index x*C+c."""
    return jnp.tile(v, w).reshape(1, -1)


# ----------------------------------------------------------------------------
# DownBlock wrapper (NCHW in / NCHW out, like the PyTorch module).
# ----------------------------------------------------------------------------
@jax.jit
def down_block(x_nchw, params):
    n, cin, h, w = x_nchw.shape
    cout = params["wd"].shape[-1]
    hh, wh = h // 2, w // 2

    # NCHW -> lane-dense row-flat NHWC: (N*H, W*Cin).
    x_flat = jnp.transpose(x_nchw, (0, 2, 3, 1)).reshape(n * h, w * cin)

    rb = [params["rb1"], params["rb2"]]
    s = _row_select(n, h, h, 1)                                   # (3, NH, NH)
    sd = _row_select(n, h, hh, 2)                                 # (3, NHd, NH)
    m = jnp.stack([_col_band(p[k], w, w, 1)
                   for p in rb for k in ("w1", "w2")])            # (4,3,WC,WC)
    md = _col_band(params["wd"], w, wh, 2)                        # (3,WC,WCd)
    cb = jnp.stack([_tile_c(p[k], w) for p in rb for k in ("b1", "b2")])
    gam = jnp.stack([_tile_c(p[k], w) for p in rb for k in ("g1", "g2")])
    bet = jnp.stack([_tile_c(p[k], w) for p in rb for k in ("bt1", "bt2")])
    cbd = _tile_c(params["bd"], wh)
    g = jnp.asarray(np.tile(np.eye(cin, dtype=np.float32), (w, 1)))  # (WC, Cin)
    gt = jnp.transpose(g)

    nh, wc = n * h, w * cin
    nhd, wcd = n * hh, wh * cout

    def full(shape):
        return pl.BlockSpec(shape, lambda: (0,) * len(shape))

    down_flat, skip_flat = pl.pallas_call(
        _down_block_kernel,
        out_shape=(jax.ShapeDtypeStruct((nhd, wcd), jnp.float32),
                   jax.ShapeDtypeStruct((nh, wc), jnp.float32)),
        in_specs=[full((nh, wc)), full(s.shape), full(sd.shape),
                  full(m.shape), full(md.shape), full(cb.shape),
                  full(cbd.shape), full(gam.shape), full(bet.shape),
                  full(g.shape), full(gt.shape)],
        out_specs=(full((nhd, wcd)), full((nh, wc))),
        compiler_params=pltpu.CompilerParams(
            vmem_limit_bytes=32 * 1024 * 1024),
    )(x_flat, s, sd, m, md, cb, cbd, gam, bet, g, gt)

    skip = jnp.transpose(skip_flat.reshape(n, h, w, cin), (0, 3, 1, 2))
    down = jnp.transpose(down_flat.reshape(n, hh, wh, cout), (0, 3, 1, 2))
    return down, skip


# ----------------------------------------------------------------------------
# Pure-JAX reference (for numerical validation).
# ----------------------------------------------------------------------------
def _conv_ref(x, w, b, stride=1):
    y = jax.lax.conv_general_dilated(
        x, w, (stride, stride), ((1, 1), (1, 1)),
        dimension_numbers=("NHWC", "HWIO", "NHWC"))
    return y + b.reshape(1, 1, 1, -1)


def _bn_silu_ref(x, g, bt, res=None):
    mean = x.mean((0, 1, 2), keepdims=True)
    var = ((x - mean) ** 2).mean((0, 1, 2), keepdims=True)
    y = (x - mean) * jax.lax.rsqrt(var + EPS) * g.reshape(1, 1, 1, -1) \
        + bt.reshape(1, 1, 1, -1)
    if res is not None:
        y = y + res
    return y * jax.nn.sigmoid(y)


def _resnet_ref(x, p):
    res = x
    h = _bn_silu_ref(_conv_ref(x, p["w1"], p["b1"]), p["g1"], p["bt1"])
    return _bn_silu_ref(_conv_ref(h, p["w2"], p["b2"]), p["g2"], p["bt2"], res)


def down_block_ref(x_nchw, params):
    x = jnp.transpose(x_nchw, (0, 2, 3, 1))
    x = _resnet_ref(x, params["rb1"])
    skip = _resnet_ref(x, params["rb2"])
    down = _conv_ref(skip, params["wd"], params["bd"], stride=2)
    return (jnp.transpose(down, (0, 3, 1, 2)),
            jnp.transpose(skip, (0, 3, 1, 2)))


# ----------------------------------------------------------------------------
# Deterministic parameter init (PyTorch shapes, HWIO weights).
# ----------------------------------------------------------------------------
def _init_conv(key, cin, cout, scale=0.1):
    kw, kb = jax.random.split(key)
    w = scale * jax.random.normal(kw, (3, 3, cin, cout), jnp.float32)
    b = 0.01 * jax.random.normal(kb, (cout,), jnp.float32)
    return w, b


def _init_resblock(key, c):
    k1, k2 = jax.random.split(key)
    w1, b1 = _init_conv(k1, c, c)
    w2, b2 = _init_conv(k2, c, c)
    return dict(w1=w1, b1=b1, g1=jnp.ones((c,), jnp.float32),
                bt1=jnp.zeros((c,), jnp.float32),
                w2=w2, b2=b2, g2=jnp.ones((c,), jnp.float32),
                bt2=jnp.zeros((c,), jnp.float32))


def init_params(key, cin, cout):
    k1, k2, k3 = jax.random.split(key, 3)
    wd, bd = _init_conv(k3, cin, cout)
    return dict(rb1=_init_resblock(k1, cin),
                rb2=_init_resblock(k2, cin),
                wd=wd, bd=bd)


if __name__ == "__main__":
    N, Cin, H, W = 2, 8, 16, 16
    Cout = 16

    key = jax.random.PRNGKey(0)
    kx, kp = jax.random.split(key)
    x = jax.random.normal(kx, (N, Cin, H, W), jnp.float32)
    params = init_params(kp, Cin, Cout)

    down, skip = down_block(x, params)
    jax.block_until_ready((down, skip))

    assert down.shape == (N, Cout, H // 2, W // 2), down.shape
    assert skip.shape == (N, Cin, H, W), skip.shape

    down_ref, skip_ref = down_block_ref(x, params)
    assert jnp.allclose(down, down_ref, atol=1e-4, rtol=1e-4), \
        float(jnp.max(jnp.abs(down - down_ref)))
    assert jnp.allclose(skip, skip_ref, atol=1e-4, rtol=1e-4), \
        float(jnp.max(jnp.abs(skip - skip_ref)))

    print("KERNEL_OK")
</pallas_src>

<mosaic_0001>
module attributes {stable_mosaic.version = 11 : i64} {
  func.func @_down_block_kernel(%arg0: memref<32x128xf32, #tpu.memory_space<vmem>>, %arg1: memref<3x32x32xf32, #tpu.memory_space<vmem>>, %arg2: memref<3x16x32xf32, #tpu.memory_space<vmem>>, %arg3: memref<4x3x128x128xf32, #tpu.memory_space<vmem>>, %arg4: memref<3x128x128xf32, #tpu.memory_space<vmem>>, %arg5: memref<4x1x128xf32, #tpu.memory_space<vmem>>, %arg6: memref<1x128xf32, #tpu.memory_space<vmem>>, %arg7: memref<4x1x128xf32, #tpu.memory_space<vmem>>, %arg8: memref<4x1x128xf32, #tpu.memory_space<vmem>>, %arg9: memref<128x8xf32, #tpu.memory_space<vmem>>, %arg10: memref<8x128xf32, #tpu.memory_space<vmem>>, %arg11: memref<16x128xf32, #tpu.memory_space<vmem>>, %arg12: memref<32x128xf32, #tpu.memory_space<vmem>>) attributes {dimension_semantics = [], scalar_prefetch = 0 : i64, scratch_operands = 0 : i64, tpu.core_type = #tpu.core_type<tc>} {
    %c0 = arith.constant 0 : index
    %c0_0 = arith.constant 0 : index
    %0 = vector.load %arg0[%c0, %c0_0] : memref<32x128xf32, #tpu.memory_space<vmem>>, vector<32x128xf32>
    %c0_1 = arith.constant 0 : index
    %c0_2 = arith.constant 0 : index
    %c0_3 = arith.constant 0 : index
    %1 = vector.load %arg5[%c0_1, %c0_2, %c0_3] : memref<4x1x128xf32, #tpu.memory_space<vmem>>, vector<1x1x128xf32>
    %2 = vector.shape_cast %1 : vector<1x1x128xf32> to vector<1x128xf32>
    %c0_4 = arith.constant 0 : index
    %c0_5 = arith.constant 0 : index
    %c0_6 = arith.constant 0 : index
    %3 = vector.load %arg1[%c0_4, %c0_5, %c0_6] : memref<3x32x32xf32, #tpu.memory_space<vmem>>, vector<1x32x32xf32>
    %4 = vector.shape_cast %3 : vector<1x32x32xf32> to vector<32x32xf32>
    %cst = arith.constant dense<0.000000e+00> : vector<32x128xf32>
    %5 = tpu.matmul %4, %0, %cst {dimension_numbers = #tpu.dot_dimension_numbers<[1], [0], [0], [1], [0, 0, 1, 1], [], []>} : vector<32x32xf32>, vector<32x128xf32>, vector<32x128xf32> -> vector<32x128xf32>
    %c0_7 = arith.constant 0 : index
    %c0_8 = arith.constant 0 : index
    %c0_9 = arith.constant 0 : index
    %c0_10 = arith.constant 0 : index
    %6 = vector.load %arg3[%c0_7, %c0_8, %c0_9, %c0_10] : memref<4x3x128x128xf32, #tpu.memory_space<vmem>>, vector<1x1x128x128xf32>
    %7 = vector.shape_cast %6 : vector<1x1x128x128xf32> to vector<128x128xf32>
    %cst_11 = arith.constant dense<0.000000e+00> : vector<32x128xf32>
    %8 = tpu.matmul %5, %7, %cst_11 {dimension_numbers = #tpu.dot_dimension_numbers<[1], [0], [0], [1], [0, 0, 1, 1], [], []>} : vector<32x128xf32>, vector<128x128xf32>, vector<32x128xf32> -> vector<32x128xf32>
    %9 = vector.broadcast %2 : vector<1x128xf32> to vector<32x128xf32>
    %10 = arith.addf %9, %8 : vector<32x128xf32>
    %c1 = arith.constant 1 : index
    %c0_12 = arith.constant 0 : index
    %c0_13 = arith.constant 0 : index
    %11 = vector.load %arg1[%c1, %c0_12, %c0_13] : memref<3x32x32xf32, #tpu.memory_space<vmem>>, vector<1x32x32xf32>
    %12 = vector.shape_cast %11 : vector<1x32x32xf32> to vector<32x32xf32>
    %cst_14 = arith.constant dense<0.000000e+00> : vector<32x128xf32>
    %13 = tpu.matmul %12, %0, %cst_14 {dimension_numbers = #tpu.dot_dimension_numbers<[1], [0], [0], [1], [0, 0, 1, 1], [], []>} : vector<32x32xf32>, vector<32x128xf32>, vector<32x128xf32> -> vector<32x128xf32>
    %c0_15 = arith.constant 0 : index
    %c1_16 = arith.constant 1 : index
    %c0_17 = arith.constant 0 : index
    %c0_18 = arith.constant 0 : index
    %14 = vector.load %arg3[%c0_15, %c1_16, %c0_17, %c0_18] : memref<4x3x128x128xf32, #tpu.memory_space<vmem>>, vector<1x1x128x128xf32>
    %15 = vector.shape_cast %14 : vector<1x1x128x128xf32> to vector<128x128xf32>
    %cst_19 = arith.constant dense<0.000000e+00> : vector<32x128xf32>
    %16 = tpu.matmul %13, %15, %cst_19 {dimension_numbers = #tpu.dot_dimension_numbers<[1], [0], [0], [1], [0, 0, 1, 1], [], []>} : vector<32x128xf32>, vector<128x128xf32>, vector<32x128xf32> -> vector<32x128xf32>
    %17 = arith.addf %10, %16 : vector<32x128xf32>
    %c2 = arith.constant 2 : index
    %c0_20 = arith.constant 0 : index
    %c0_21 = arith.constant 0 : index
    %18 = vector.load %arg1[%c2, %c0_20, %c0_21] : memref<3x32x32xf32, #tpu.memory_space<vmem>>, vector<1x32x32xf32>
    %19 = vector.shape_cast %18 : vector<1x32x32xf32> to vector<32x32xf32>
    %cst_22 = arith.constant dense<0.000000e+00> : vector<32x128xf32>
    %20 = tpu.matmul %19, %0, %cst_22 {dimension_numbers = #tpu.dot_dimension_numbers<[1], [0], [0], [1], [0, 0, 1, 1], [], []>} : vector<32x32xf32>, vector<32x128xf32>, vector<32x128xf32> -> vector<32x128xf32>
    %c0_23 = arith.constant 0 : index
    %c2_24 = arith.constant 2 : index
    %c0_25 = arith.constant 0 : index
    %c0_26 = arith.constant 0 : index
    %21 = vector.load %arg3[%c0_23, %c2_24, %c0_25, %c0_26] : memref<4x3x128x128xf32, #tpu.memory_space<vmem>>, vector<1x1x128x128xf32>
    %22 = vector.shape_cast %21 : vector<1x1x128x128xf32> to vector<128x128xf32>
    %cst_27 = arith.constant dense<0.000000e+00> : vector<32x128xf32>
    %23 = tpu.matmul %20, %22, %cst_27 {dimension_numbers = #tpu.dot_dimension_numbers<[1], [0], [0], [1], [0, 0, 1, 1], [], []>} : vector<32x128xf32>, vector<128x128xf32>, vector<32x128xf32> -> vector<32x128xf32>
    %24 = arith.addf %17, %23 : vector<32x128xf32>
    %c0_28 = arith.constant 0 : index
    %c0_29 = arith.constant 0 : index
    %25 = vector.load %arg9[%c0_28, %c0_29] : memref<128x8xf32, #tpu.memory_space<vmem>>, vector<128x8xf32>
    %c0_30 = arith.constant 0 : index
    %c0_31 = arith.constant 0 : index
    %26 = vector.load %arg10[%c0_30, %c0_31] : memref<8x128xf32, #tpu.memory_space<vmem>>, vector<8x128xf32>
    %cst_32 = arith.constant dense<0.000000e+00> : vector<128xf32>
    %27 = vector.multi_reduction <add>, %24, %cst_32 [0] : vector<32x128xf32> to vector<128xf32>
    %28 = vector.shape_cast %27 : vector<128xf32> to vector<1x128xf32>
    %cst_33 = arith.constant dense<0.000000e+00> : vector<1x8xf32>
    %29 = tpu.matmul %28, %25, %cst_33 {dimension_numbers = #tpu.dot_dimension_numbers<[1], [0], [0], [1], [0, 0, 1, 1], [], []>} : vector<1x128xf32>, vector<128x8xf32>, vector<1x8xf32> -> vector<1x8xf32>
    %cst_34 = arith.constant 0.001953125 : f32
    %30 = vector.broadcast %cst_34 : f32 to vector<1x8xf32>
    %31 = arith.mulf %29, %30 : vector<1x8xf32>
    %cst_35 = arith.constant dense<0.000000e+00> : vector<1x128xf32>
    %32 = tpu.matmul %31, %26, %cst_35 {dimension_numbers = #tpu.dot_dimension_numbers<[1], [0], [0], [1], [0, 0, 1, 1], [], []>} : vector<1x8xf32>, vector<8x128xf32>, vector<1x128xf32> -> vector<1x128xf32>
    %33 = vector.broadcast %32 : vector<1x128xf32> to vector<32x128xf32>
    %34 = arith.subf %24, %33 : vector<32x128xf32>
    %35 = arith.mulf %34, %34 : vector<32x128xf32>
    %cst_36 = arith.constant dense<0.000000e+00> : vector<128xf32>
    %36 = vector.multi_reduction <add>, %35, %cst_36 [0] : vector<32x128xf32> to vector<128xf32>
    %37 = vector.shape_cast %36 : vector<128xf32> to vector<1x128xf32>
    %cst_37 = arith.constant dense<0.000000e+00> : vector<1x8xf32>
    %38 = tpu.matmul %37, %25, %cst_37 {dimension_numbers = #tpu.dot_dimension_numbers<[1], [0], [0], [1], [0, 0, 1, 1], [], []>} : vector<1x128xf32>, vector<128x8xf32>, vector<1x8xf32> -> vector<1x8xf32>
    %cst_38 = arith.constant 0.001953125 : f32
    %39 = vector.broadcast %cst_38 : f32 to vector<1x8xf32>
    %40 = arith.mulf %38, %39 : vector<1x8xf32>
    %cst_39 = arith.constant 9.99999974E-6 : f32
    %41 = vector.broadcast %cst_39 : f32 to vector<1x8xf32>
    %42 = arith.addf %40, %41 : vector<1x8xf32>
    %43 = math.rsqrt %42 : vector<1x8xf32>
    %cst_40 = arith.constant dense<0.000000e+00> : vector<1x128xf32>
    %44 = tpu.matmul %43, %26, %cst_40 {dimension_numbers = #tpu.dot_dimension_numbers<[1], [0], [0], [1], [0, 0, 1, 1], [], []>} : vector<1x8xf32>, vector<8x128xf32>, vector<1x128xf32> -> vector<1x128xf32>
    %45 = vector.broadcast %44 : vector<1x128xf32> to vector<32x128xf32>
    %46 = arith.mulf %34, %45 : vector<32x128xf32>
    %c0_41 = arith.constant 0 : index
    %c0_42 = arith.constant 0 : index
    %c0_43 = arith.constant 0 : index
    %47 = vector.load %arg7[%c0_41, %c0_42, %c0_43] : memref<4x1x128xf32, #tpu.memory_space<vmem>>, vector<1x1x128xf32>
    %48 = vector.shape_cast %47 : vector<1x1x128xf32> to vector<1x128xf32>
    %49 = vector.broadcast %48 : vector<1x128xf32> to vector<32x128xf32>
    %50 = arith.mulf %46, %49 : vector<32x128xf32>
    %c0_44 = arith.constant 0 : index
    %c0_45 = arith.constant 0 : index
    %c0_46 = arith.constant 0 : index
    %51 = vector.load %arg8[%c0_44, %c0_45, %c0_46] : memref<4x1x128xf32, #tpu.memory_space<vmem>>, vector<1x1x128xf32>
    %52 = vector.shape_cast %51 : vector<1x1x128xf32> to vector<1x128xf32>
    %53 = vector.broadcast %52 : vector<1x128xf32> to vector<32x128xf32>
    %54 = arith.addf %50, %53 : vector<32x128xf32>
    %55 = arith.negf %54 : vector<32x128xf32>
    %56 = math.exp %55 : vector<32x128xf32>
    %cst_47 = arith.constant 1.000000e+00 : f32
    %57 = vector.broadcast %cst_47 : f32 to vector<32x128xf32>
    %58 = arith.addf %57, %56 : vector<32x128xf32>
    %59 = arith.divf %57, %58 : vector<32x128xf32>
    %60 = arith.mulf %54, %59 : vector<32x128xf32>
    %c1_48 = arith.constant 1 : index
    %c0_49 = arith.constant 0 : index
    %c0_50 = arith.constant 0 : index
    %61 = vector.load %arg5[%c1_48, %c0_49, %c0_50] : memref<4x1x128xf32, #tpu.memory_space<vmem>>, vector<1x1x128xf32>
    %62 = vector.shape_cast %61 : vector<1x1x128xf32> to vector<1x128xf32>
    %c0_51 = arith.constant 0 : index
    %c0_52 = arith.constant 0 : index
    %c0_53 = arith.constant 0 : index
    %63 = vector.load %arg1[%c0_51, %c0_52, %c0_53] : memref<3x32x32xf32, #tpu.memory_space<vmem>>, vector<1x32x32xf32>
    %64 = vector.shape_cast %63 : vector<1x32x32xf32> to vector<32x32xf32>
    %cst_54 = arith.constant dense<0.000000e+00> : vector<32x128xf32>
    %65 = tpu.matmul %64, %60, %cst_54 {dimension_numbers = #tpu.dot_dimension_numbers<[1], [0], [0], [1], [0, 0, 1, 1], [], []>} : vector<32x32xf32>, vector<32x128xf32>, vector<32x128xf32> -> vector<32x128xf32>
    %c1_55 = arith.constant 1 : index
    %c0_56 = arith.constant 0 : index
    %c0_57 = arith.constant 0 : index
    %c0_58 = arith.constant 0 : index
    %66 = vector.load %arg3[%c1_55, %c0_56, %c0_57, %c0_58] : memref<4x3x128x128xf32, #tpu.memory_space<vmem>>, vector<1x1x128x128xf32>
    %67 = vector.shape_cast %66 : vector<1x1x128x128xf32> to vector<128x128xf32>
    %cst_59 = arith.constant dense<0.000000e+00> : vector<32x128xf32>
    %68 = tpu.matmul %65, %67, %cst_59 {dimension_numbers = #tpu.dot_dimension_numbers<[1], [0], [0], [1], [0, 0, 1, 1], [], []>} : vector<32x128xf32>, vector<128x128xf32>, vector<32x128xf32> -> vector<32x128xf32>
    %69 = vector.broadcast %62 : vector<1x128xf32> to vector<32x128xf32>
    %70 = arith.addf %69, %68 : vector<32x128xf32>
    %c1_60 = arith.constant 1 : index
    %c0_61 = arith.constant 0 : index
    %c0_62 = arith.constant 0 : index
    %71 = vector.load %arg1[%c1_60, %c0_61, %c0_62] : memref<3x32x32xf32, #tpu.memory_space<vmem>>, vector<1x32x32xf32>
    %72 = vector.shape_cast %71 : vector<1x32x32xf32> to vector<32x32xf32>
    %cst_63 = arith.constant dense<0.000000e+00> : vector<32x128xf32>
    %73 = tpu.matmul %72, %60, %cst_63 {dimension_numbers = #tpu.dot_dimension_numbers<[1], [0], [0], [1], [0, 0, 1, 1], [], []>} : vector<32x32xf32>, vector<32x128xf32>, vector<32x128xf32> -> vector<32x128xf32>
    %c1_64 = arith.constant 1 : index
    %c1_65 = arith.constant 1 : index
    %c0_66 = arith.constant 0 : index
    %c0_67 = arith.constant 0 : index
    %74 = vector.load %arg3[%c1_64, %c1_65, %c0_66, %c0_67] : memref<4x3x128x128xf32, #tpu.memory_space<vmem>>, vector<1x1x128x128xf32>
    %75 = vector.shape_cast %74 : vector<1x1x128x128xf32> to vector<128x128xf32>
    %cst_68 = arith.constant dense<0.000000e+00> : vector<32x128xf32>
    %76 = tpu.matmul %73, %75, %cst_68 {dimension_numbers = #tpu.dot_dimension_numbers<[1], [0], [0], [1], [0, 0, 1, 1], [], []>} : vector<32x128xf32>, vector<128x128xf32>, vector<32x128xf32> -> vector<32x128xf32>
    %77 = arith.addf %70, %76 : vector<32x128xf32>
    %c2_69 = arith.constant 2 : index
    %c0_70 = arith.constant 0 : index
    %c0_71 = arith.constant 0 : index
    %78 = vector.load %arg1[%c2_69, %c0_70, %c0_71] : memref<3x32x32xf32, #tpu.memory_space<vmem>>, vector<1x32x32xf32>
    %79 = vector.shape_cast %78 : vector<1x32x32xf32> to vector<32x32xf32>
    %cst_72 = arith.constant dense<0.000000e+00> : vector<32x128xf32>
    %80 = tpu.matmul %79, %60, %cst_72 {dimension_numbers = #tpu.dot_dimension_numbers<[1], [0], [0], [1], [0, 0, 1, 1], [], []>} : vector<32x32xf32>, vector<32x128xf32>, vector<32x128xf32> -> vector<32x128xf32>
    %c1_73 = arith.constant 1 : index
    %c2_74 = arith.constant 2 : index
    %c0_75 = arith.constant 0 : index
    %c0_76 = arith.constant 0 : index
    %81 = vector.load %arg3[%c1_73, %c2_74, %c0_75, %c0_76] : memref<4x3x128x128xf32, #tpu.memory_space<vmem>>, vector<1x1x128x128xf32>
    %82 = vector.shape_cast %81 : vector<1x1x128x128xf32> to vector<128x128xf32>
    %cst_77 = arith.constant dense<0.000000e+00> : vector<32x128xf32>
    %83 = tpu.matmul %80, %82, %cst_77 {dimension_numbers = #tpu.dot_dimension_numbers<[1], [0], [0], [1], [0, 0, 1, 1], [], []>} : vector<32x128xf32>, vector<128x128xf32>, vector<32x128xf32> -> vector<32x128xf32>
    %84 = arith.addf %77, %83 : vector<32x128xf32>
    %c0_78 = arith.constant 0 : index
    %c0_79 = arith.constant 0 : index
    %85 = vector.load %arg9[%c0_78, %c0_79] : memref<128x8xf32, #tpu.memory_space<vmem>>, vector<128x8xf32>
    %c0_80 = arith.constant 0 : index
    %c0_81 = arith.constant 0 : index
    %86 = vector.load %arg10[%c0_80, %c0_81] : memref<8x128xf32, #tpu.memory_space<vmem>>, vector<8x128xf32>
    %cst_82 = arith.constant dense<0.000000e+00> : vector<128xf32>
    %87 = vector.multi_reduction <add>, %84, %cst_82 [0] : vector<32x128xf32> to vector<128xf32>
    %88 = vector.shape_cast %87 : vector<128xf32> to vector<1x128xf32>
    %cst_83 = arith.constant dense<0.000000e+00> : vector<1x8xf32>
    %89 = tpu.matmul %88, %85, %cst_83 {dimension_numbers = #tpu.dot_dimension_numbers<[1], [0], [0], [1], [0, 0, 1, 1], [], []>} : vector<1x128xf32>, vector<128x8xf32>, vector<1x8xf32> -> vector<1x8xf32>
    %cst_84 = arith.constant 0.001953125 : f32
    %90 = vector.broadcast %cst_84 : f32 to vector<1x8xf32>
    %91 = arith.mulf %89, %90 : vector<1x8xf32>
    %cst_85 = arith.constant dense<0.000000e+00> : vector<1x128xf32>
    %92 = tpu.matmul %91, %86, %cst_85 {dimension_numbers = #tpu.dot_dimension_numbers<[1], [0], [0], [1], [0, 0, 1, 1], [], []>} : vector<1x8xf32>, vector<8x128xf32>, vector<1x128xf32> -> vector<1x128xf32>
    %93 = vector.broadcast %92 : vector<1x128xf32> to vector<32x128xf32>
    %94 = arith.subf %84, %93 : vector<32x128xf32>
    %95 = arith.mulf %94, %94 : vector<32x128xf32>
    %cst_86 = arith.constant dense<0.000000e+00> : vector<128xf32>
    %96 = vector.multi_reduction <add>, %95, %cst_86 [0] : vector<32x128xf32> to vector<128xf32>
    %97 = vector.shape_cast %96 : vector<128xf32> to vector<1x128xf32>
    %cst_87 = arith.constant dense<0.000000e+00> : vector<1x8xf32>
    %98 = tpu.matmul %97, %85, %cst_87 {dimension_numbers = #tpu.dot_dimension_numbers<[1], [0], [0], [1], [0, 0, 1, 1], [], []>} : vector<1x128xf32>, vector<128x8xf32>, vector<1x8xf32> -> vector<1x8xf32>
    %cst_88 = arith.constant 0.001953125 : f32
    %99 = vector.broadcast %cst_88 : f32 to vector<1x8xf32>
    %100 = arith.mulf %98, %99 : vector<1x8xf32>
    %cst_89 = arith.constant 9.99999974E-6 : f32
    %101 = vector.broadcast %cst_89 : f32 to vector<1x8xf32>
    %102 = arith.addf %100, %101 : vector<1x8xf32>
    %103 = math.rsqrt %102 : vector<1x8xf32>
    %cst_90 = arith.constant dense<0.000000e+00> : vector<1x128xf32>
    %104 = tpu.matmul %103, %86, %cst_90 {dimension_numbers = #tpu.dot_dimension_numbers<[1], [0], [0], [1], [0, 0, 1, 1], [], []>} : vector<1x8xf32>, vector<8x128xf32>, vector<1x128xf32> -> vector<1x128xf32>
    %105 = vector.broadcast %104 : vector<1x128xf32> to vector<32x128xf32>
    %106 = arith.mulf %94, %105 : vector<32x128xf32>
    %c1_91 = arith.constant 1 : index
    %c0_92 = arith.constant 0 : index
    %c0_93 = arith.constant 0 : index
    %107 = vector.load %arg7[%c1_91, %c0_92, %c0_93] : memref<4x1x128xf32, #tpu.memory_space<vmem>>, vector<1x1x128xf32>
    %108 = vector.shape_cast %107 : vector<1x1x128xf32> to vector<1x128xf32>
    %109 = vector.broadcast %108 : vector<1x128xf32> to vector<32x128xf32>
    %110 = arith.mulf %106, %109 : vector<32x128xf32>
    %c1_94 = arith.constant 1 : index
    %c0_95 = arith.constant 0 : index
    %c0_96 = arith.constant 0 : index
    %111 = vector.load %arg8[%c1_94, %c0_95, %c0_96] : memref<4x1x128xf32, #tpu.memory_space<vmem>>, vector<1x1x128xf32>
    %112 = vector.shape_cast %111 : vector<1x1x128xf32> to vector<1x128xf32>
    %113 = vector.broadcast %112 : vector<1x128xf32> to vector<32x128xf32>
    %114 = arith.addf %110, %113 : vector<32x128xf32>
    %115 = arith.addf %114, %0 : vector<32x128xf32>
    %116 = arith.negf %115 : vector<32x128xf32>
    %117 = math.exp %116 : vector<32x128xf32>
    %cst_97 = arith.constant 1.000000e+00 : f32
    %118 = vector.broadcast %cst_97 : f32 to vector<32x128xf32>
    %119 = arith.addf %118, %117 : vector<32x128xf32>
    %120 = arith.divf %118, %119 : vector<32x128xf32>
    %121 = arith.mulf %115, %120 : vector<32x128xf32>
    %c2_98 = arith.constant 2 : index
    %c0_99 = arith.constant 0 : index
    %c0_100 = arith.constant 0 : index
    %122 = vector.load %arg5[%c2_98, %c0_99, %c0_100] : memref<4x1x128xf32, #tpu.memory_space<vmem>>, vector<1x1x128xf32>
    %123 = vector.shape_cast %122 : vector<1x1x128xf32> to vector<1x128xf32>
    %c0_101 = arith.constant 0 : index
    %c0_102 = arith.constant 0 : index
    %c0_103 = arith.constant 0 : index
    %124 = vector.load %arg1[%c0_101, %c0_102, %c0_103] : memref<3x32x32xf32, #tpu.memory_space<vmem>>, vector<1x32x32xf32>
    %125 = vector.shape_cast %124 : vector<1x32x32xf32> to vector<32x32xf32>
    %cst_104 = arith.constant dense<0.000000e+00> : vector<32x128xf32>
    %126 = tpu.matmul %125, %121, %cst_104 {dimension_numbers = #tpu.dot_dimension_numbers<[1], [0], [0], [1], [0, 0, 1, 1], [], []>} : vector<32x32xf32>, vector<32x128xf32>, vector<32x128xf32> -> vector<32x128xf32>
    %c2_105 = arith.constant 2 : index
    %c0_106 = arith.constant 0 : index
    %c0_107 = arith.constant 0 : index
    %c0_108 = arith.constant 0 : index
    %127 = vector.load %arg3[%c2_105, %c0_106, %c0_107, %c0_108] : memref<4x3x128x128xf32, #tpu.memory_space<vmem>>, vector<1x1x128x128xf32>
    %128 = vector.shape_cast %127 : vector<1x1x128x128xf32> to vector<128x128xf32>
    %cst_109 = arith.constant dense<0.000000e+00> : vector<32x128xf32>
    %129 = tpu.matmul %126, %128, %cst_109 {dimension_numbers = #tpu.dot_dimension_numbers<[1], [0], [0], [1], [0, 0, 1, 1], [], []>} : vector<32x128xf32>, vector<128x128xf32>, vector<32x128xf32> -> vector<32x128xf32>
    %130 = vector.broadcast %123 : vector<1x128xf32> to vector<32x128xf32>
    %131 = arith.addf %130, %129 : vector<32x128xf32>
    %c1_110 = arith.constant 1 : index
    %c0_111 = arith.constant 0 : index
    %c0_112 = arith.constant 0 : index
    %132 = vector.load %arg1[%c1_110, %c0_111, %c0_112] : memref<3x32x32xf32, #tpu.memory_space<vmem>>, vector<1x32x32xf32>
    %133 = vector.shape_cast %132 : vector<1x32x32xf32> to vector<32x32xf32>
    %cst_113 = arith.constant dense<0.000000e+00> : vector<32x128xf32>
    %134 = tpu.matmul %133, %121, %cst_113 {dimension_numbers = #tpu.dot_dimension_numbers<[1], [0], [0], [1], [0, 0, 1, 1], [], []>} : vector<32x32xf32>, vector<32x128xf32>, vector<32x128xf32> -> vector<32x128xf32>
    %c2_114 = arith.constant 2 : index
    %c1_115 = arith.constant 1 : index
    %c0_116 = arith.constant 0 : index
    %c0_117 = arith.constant 0 : index
    %135 = vector.load %arg3[%c2_114, %c1_115, %c0_116, %c0_117] : memref<4x3x128x128xf32, #tpu.memory_space<vmem>>, vector<1x1x128x128xf32>
    %136 = vector.shape_cast %135 : vector<1x1x128x128xf32> to vector<128x128xf32>
    %cst_118 = arith.constant dense<0.000000e+00> : vector<32x128xf32>
    %137 = tpu.matmul %134, %136, %cst_118 {dimension_numbers = #tpu.dot_dimension_numbers<[1], [0], [0], [1], [0, 0, 1, 1], [], []>} : vector<32x128xf32>, vector<128x128xf32>, vector<32x128xf32> -> vector<32x128xf32>
    %138 = arith.addf %131, %137 : vector<32x128xf32>
    %c2_119 = arith.constant 2 : index
    %c0_120 = arith.constant 0 : index
    %c0_121 = arith.constant 0 : index
    %139 = vector.load %arg1[%c2_119, %c0_120, %c0_121] : memref<3x32x32xf32, #tpu.memory_space<vmem>>, vector<1x32x32xf32>
    %140 = vector.shape_cast %139 : vector<1x32x32xf32> to vector<32x32xf32>
    %cst_122 = arith.constant dense<0.000000e+00> : vector<32x128xf32>
    %141 = tpu.matmul %140, %121, %cst_122 {dimension_numbers = #tpu.dot_dimension_numbers<[1], [0], [0], [1], [0, 0, 1, 1], [], []>} : vector<32x32xf32>, vector<32x128xf32>, vector<32x128xf32> -> vector<32x128xf32>
    %c2_123 = arith.constant 2 : index
    %c2_124 = arith.constant 2 : index
    %c0_125 = arith.constant 0 : index
    %c0_126 = arith.constant 0 : index
    %142 = vector.load %arg3[%c2_123, %c2_124, %c0_125, %c0_126] : memref<4x3x128x128xf32, #tpu.memory_space<vmem>>, vector<1x1x128x128xf32>
    %143 = vector.shape_cast %142 : vector<1x1x128x128xf32> to vector<128x128xf32>
    %cst_127 = arith.constant dense<0.000000e+00> : vector<32x128xf32>
    %144 = tpu.matmul %141, %143, %cst_127 {dimension_numbers = #tpu.dot_dimension_numbers<[1], [0], [0], [1], [0, 0, 1, 1], [], []>} : vector<32x128xf32>, vector<128x128xf32>, vector<32x128xf32> -> vector<32x128xf32>
    %145 = arith.addf %138, %144 : vector<32x128xf32>
    %c0_128 = arith.constant 0 : index
    %c0_129 = arith.constant 0 : index
    %146 = vector.load %arg9[%c0_128, %c0_129] : memref<128x8xf32, #tpu.memory_space<vmem>>, vector<128x8xf32>
    %c0_130 = arith.constant 0 : index
    %c0_131 = arith.constant 0 : index
    %147 = vector.load %arg10[%c0_130, %c0_131] : memref<8x128xf32, #tpu.memory_space<vmem>>, vector<8x128xf32>
    %cst_132 = arith.constant dense<0.000000e+00> : vector<128xf32>
    %148 = vector.multi_reduction <add>, %145, %cst_132 [0] : vector<32x128xf32> to vector<128xf32>
    %149 = vector.shape_cast %148 : vector<128xf32> to vector<1x128xf32>
    %cst_133 = arith.constant dense<0.000000e+00> : vector<1x8xf32>
    %150 = tpu.matmul %149, %146, %cst_133 {dimension_numbers = #tpu.dot_dimension_numbers<[1], [0], [0], [1], [0, 0, 1, 1], [], []>} : vector<1x128xf32>, vector<128x8xf32>, vector<1x8xf32> -> vector<1x8xf32>
    %cst_134 = arith.constant 0.001953125 : f32
    %151 = vector.broadcast %cst_134 : f32 to vector<1x8xf32>
    %152 = arith.mulf %150, %151 : vector<1x8xf32>
    %cst_135 = arith.constant dense<0.000000e+00> : vector<1x128xf32>
    %153 = tpu.matmul %152, %147, %cst_135 {dimension_numbers = #tpu.dot_dimension_numbers<[1], [0], [0], [1], [0, 0, 1, 1], [], []>} : vector<1x8xf32>, vector<8x128xf32>, vector<1x128xf32> -> vector<1x128xf32>
    %154 = vector.broadcast %153 : vector<1x128xf32> to vector<32x128xf32>
    %155 = arith.subf %145, %154 : vector<32x128xf32>
    %156 = arith.mulf %155, %155 : vector<32x128xf32>
    %cst_136 = arith.constant dense<0.000000e+00> : vector<128xf32>
    %157 = vector.multi_reduction <add>, %156, %cst_136 [0] : vector<32x128xf32> to vector<128xf32>
    %158 = vector.shape_cast %157 : vector<128xf32> to vector<1x128xf32>
    %cst_137 = arith.constant dense<0.000000e+00> : vector<1x8xf32>
    %159 = tpu.matmul %158, %146, %cst_137 {dimension_numbers = #tpu.dot_dimension_numbers<[1], [0], [0], [1], [0, 0, 1, 1], [], []>} : vector<1x128xf32>, vector<128x8xf32>, vector<1x8xf32> -> vector<1x8xf32>
    %cst_138 = arith.constant 0.001953125 : f32
    %160 = vector.broadcast %cst_138 : f32 to vector<1x8xf32>
    %161 = arith.mulf %159, %160 : vector<1x8xf32>
    %cst_139 = arith.constant 9.99999974E-6 : f32
    %162 = vector.broadcast %cst_139 : f32 to vector<1x8xf32>
    %163 = arith.addf %161, %162 : vector<1x8xf32>
    %164 = math.rsqrt %163 : vector<1x8xf32>
    %cst_140 = arith.constant dense<0.000000e+00> : vector<1x128xf32>
    %165 = tpu.matmul %164, %147, %cst_140 {dimension_numbers = #tpu.dot_dimension_numbers<[1], [0], [0], [1], [0, 0, 1, 1], [], []>} : vector<1x8xf32>, vector<8x128xf32>, vector<1x128xf32> -> vector<1x128xf32>
    %166 = vector.broadcast %165 : vector<1x128xf32> to vector<32x128xf32>
    %167 = arith.mulf %155, %166 : vector<32x128xf32>
    %c2_141 = arith.constant 2 : index
    %c0_142 = arith.constant 0 : index
    %c0_143 = arith.constant 0 : index
    %168 = vector.load %arg7[%c2_141, %c0_142, %c0_143] : memref<4x1x128xf32, #tpu.memory_space<vmem>>, vector<1x1x128xf32>
    %169 = vector.shape_cast %168 : vector<1x1x128xf32> to vector<1x128xf32>
    %170 = vector.broadcast %169 : vector<1x128xf32> to vector<32x128xf32>
    %171 = arith.mulf %167, %170 : vector<32x128xf32>
    %c2_144 = arith.constant 2 : index
    %c0_145 = arith.constant 0 : index
    %c0_146 = arith.constant 0 : index
    %172 = vector.load %arg8[%c2_144, %c0_145, %c0_146] : memref<4x1x128xf32, #tpu.memory_space<vmem>>, vector<1x1x128xf32>
    %173 = vector.shape_cast %172 : vector<1x1x128xf32> to vector<1x128xf32>
    %174 = vector.broadcast %173 : vector<1x128xf32> to vector<32x128xf32>
    %175 = arith.addf %171, %174 : vector<32x128xf32>
    %176 = arith.negf %175 : vector<32x128xf32>
    %177 = math.exp %176 : vector<32x128xf32>
    %cst_147 = arith.constant 1.000000e+00 : f32
    %178 = vector.broadcast %cst_147 : f32 to vector<32x128xf32>
    %179 = arith.addf %178, %177 : vector<32x128xf32>
    %180 = arith.divf %178, %179 : vector<32x128xf32>
    %181 = arith.mulf %175, %180 : vector<32x128xf32>
    %c3 = arith.constant 3 : index
    %c0_148 = arith.constant 0 : index
    %c0_149 = arith.constant 0 : index
    %182 = vector.load %arg5[%c3, %c0_148, %c0_149] : memref<4x1x128xf32, #tpu.memory_space<vmem>>, vector<1x1x128xf32>
    %183 = vector.shape_cast %182 : vector<1x1x128xf32> to vector<1x128xf32>
    %c0_150 = arith.constant 0 : index
    %c0_151 = arith.constant 0 : index
    %c0_152 = arith.constant 0 : index
    %184 = vector.load %arg1[%c0_150, %c0_151, %c0_152] : memref<3x32x32xf32, #tpu.memory_space<vmem>>, vector<1x32x32xf32>
    %185 = vector.shape_cast %184 : vector<1x32x32xf32> to vector<32x32xf32>
    %cst_153 = arith.constant dense<0.000000e+00> : vector<32x128xf32>
    %186 = tpu.matmul %185, %181, %cst_153 {dimension_numbers = #tpu.dot_dimension_numbers<[1], [0], [0], [1], [0, 0, 1, 1], [], []>} : vector<32x32xf32>, vector<32x128xf32>, vector<32x128xf32> -> vector<32x128xf32>
    %c3_154 = arith.constant 3 : index
    %c0_155 = arith.constant 0 : index
    %c0_156 = arith.constant 0 : index
    %c0_157 = arith.constant 0 : index
    %187 = vector.load %arg3[%c3_154, %c0_155, %c0_156, %c0_157] : memref<4x3x128x128xf32, #tpu.memory_space<vmem>>, vector<1x1x128x128xf32>
    %188 = vector.shape_cast %187 : vector<1x1x128x128xf32> to vector<128x128xf32>
    %cst_158 = arith.constant dense<0.000000e+00> : vector<32x128xf32>
    %189 = tpu.matmul %186, %188, %cst_158 {dimension_numbers = #tpu.dot_dimension_numbers<[1], [0], [0], [1], [0, 0, 1, 1], [], []>} : vector<32x128xf32>, vector<128x128xf32>, vector<32x128xf32> -> vector<32x128xf32>
    %190 = vector.broadcast %183 : vector<1x128xf32> to vector<32x128xf32>
    %191 = arith.addf %190, %189 : vector<32x128xf32>
    %c1_159 = arith.constant 1 : index
    %c0_160 = arith.constant 0 : index
    %c0_161 = arith.constant 0 : index
    %192 = vector.load %arg1[%c1_159, %c0_160, %c0_161] : memref<3x32x32xf32, #tpu.memory_space<vmem>>, vector<1x32x32xf32>
    %193 = vector.shape_cast %192 : vector<1x32x32xf32> to vector<32x32xf32>
    %cst_162 = arith.constant dense<0.000000e+00> : vector<32x128xf32>
    %194 = tpu.matmul %193, %181, %cst_162 {dimension_numbers = #tpu.dot_dimension_numbers<[1], [0], [0], [1], [0, 0, 1, 1], [], []>} : vector<32x32xf32>, vector<32x128xf32>, vector<32x128xf32> -> vector<32x128xf32>
    %c3_163 = arith.constant 3 : index
    %c1_164 = arith.constant 1 : index
    %c0_165 = arith.constant 0 : index
    %c0_166 = arith.constant 0 : index
    %195 = vector.load %arg3[%c3_163, %c1_164, %c0_165, %c0_166] : memref<4x3x128x128xf32, #tpu.memory_space<vmem>>, vector<1x1x128x128xf32>
    %196 = vector.shape_cast %195 : vector<1x1x128x128xf32> to vector<128x128xf32>
    %cst_167 = arith.constant dense<0.000000e+00> : vector<32x128xf32>
    %197 = tpu.matmul %194, %196, %cst_167 {dimension_numbers = #tpu.dot_dimension_numbers<[1], [0], [0], [1], [0, 0, 1, 1], [], []>} : vector<32x128xf32>, vector<128x128xf32>, vector<32x128xf32> -> vector<32x128xf32>
    %198 = arith.addf %191, %197 : vector<32x128xf32>
    %c2_168 = arith.constant 2 : index
    %c0_169 = arith.constant 0 : index
    %c0_170 = arith.constant 0 : index
    %199 = vector.load %arg1[%c2_168, %c0_169, %c0_170] : memref<3x32x32xf32, #tpu.memory_space<vmem>>, vector<1x32x32xf32>
    %200 = vector.shape_cast %199 : vector<1x32x32xf32> to vector<32x32xf32>
    %cst_171 = arith.constant dense<0.000000e+00> : vector<32x128xf32>
    %201 = tpu.matmul %200, %181, %cst_171 {dimension_numbers = #tpu.dot_dimension_numbers<[1], [0], [0], [1], [0, 0, 1, 1], [], []>} : vector<32x32xf32>, vector<32x128xf32>, vector<32x128xf32> -> vector<32x128xf32>
    %c3_172 = arith.constant 3 : index
    %c2_173 = arith.constant 2 : index
    %c0_174 = arith.constant 0 : index
    %c0_175 = arith.constant 0 : index
    %202 = vector.load %arg3[%c3_172, %c2_173, %c0_174, %c0_175] : memref<4x3x128x128xf32, #tpu.memory_space<vmem>>, vector<1x1x128x128xf32>
    %203 = vector.shape_cast %202 : vector<1x1x128x128xf32> to vector<128x128xf32>
    %cst_176 = arith.constant dense<0.000000e+00> : vector<32x128xf32>
    %204 = tpu.matmul %201, %203, %cst_176 {dimension_numbers = #tpu.dot_dimension_numbers<[1], [0], [0], [1], [0, 0, 1, 1], [], []>} : vector<32x128xf32>, vector<128x128xf32>, vector<32x128xf32> -> vector<32x128xf32>
    %205 = arith.addf %198, %204 : vector<32x128xf32>
    %c0_177 = arith.constant 0 : index
    %c0_178 = arith.constant 0 : index
    %206 = vector.load %arg9[%c0_177, %c0_178] : memref<128x8xf32, #tpu.memory_space<vmem>>, vector<128x8xf32>
    %c0_179 = arith.constant 0 : index
    %c0_180 = arith.constant 0 : index
    %207 = vector.load %arg10[%c0_179, %c0_180] : memref<8x128xf32, #tpu.memory_space<vmem>>, vector<8x128xf32>
    %cst_181 = arith.constant dense<0.000000e+00> : vector<128xf32>
    %208 = vector.multi_reduction <add>, %205, %cst_181 [0] : vector<32x128xf32> to vector<128xf32>
    %209 = vector.shape_cast %208 : vector<128xf32> to vector<1x128xf32>
    %cst_182 = arith.constant dense<0.000000e+00> : vector<1x8xf32>
    %210 = tpu.matmul %209, %206, %cst_182 {dimension_numbers = #tpu.dot_dimension_numbers<[1], [0], [0], [1], [0, 0, 1, 1], [], []>} : vector<1x128xf32>, vector<128x8xf32>, vector<1x8xf32> -> vector<1x8xf32>
    %cst_183 = arith.constant 0.001953125 : f32
    %211 = vector.broadcast %cst_183 : f32 to vector<1x8xf32>
    %212 = arith.mulf %210, %211 : vector<1x8xf32>
    %cst_184 = arith.constant dense<0.000000e+00> : vector<1x128xf32>
    %213 = tpu.matmul %212, %207, %cst_184 {dimension_numbers = #tpu.dot_dimension_numbers<[1], [0], [0], [1], [0, 0, 1, 1], [], []>} : vector<1x8xf32>, vector<8x128xf32>, vector<1x128xf32> -> vector<1x128xf32>
    %214 = vector.broadcast %213 : vector<1x128xf32> to vector<32x128xf32>
    %215 = arith.subf %205, %214 : vector<32x128xf32>
    %216 = arith.mulf %215, %215 : vector<32x128xf32>
    %cst_185 = arith.constant dense<0.000000e+00> : vector<128xf32>
    %217 = vector.multi_reduction <add>, %216, %cst_185 [0] : vector<32x128xf32> to vector<128xf32>
    %218 = vector.shape_cast %217 : vector<128xf32> to vector<1x128xf32>
    %cst_186 = arith.constant dense<0.000000e+00> : vector<1x8xf32>
    %219 = tpu.matmul %218, %206, %cst_186 {dimension_numbers = #tpu.dot_dimension_numbers<[1], [0], [0], [1], [0, 0, 1, 1], [], []>} : vector<1x128xf32>, vector<128x8xf32>, vector<1x8xf32> -> vector<1x8xf32>
    %cst_187 = arith.constant 0.001953125 : f32
    %220 = vector.broadcast %cst_187 : f32 to vector<1x8xf32>
    %221 = arith.mulf %219, %220 : vector<1x8xf32>
    %cst_188 = arith.constant 9.99999974E-6 : f32
    %222 = vector.broadcast %cst_188 : f32 to vector<1x8xf32>
    %223 = arith.addf %221, %222 : vector<1x8xf32>
    %224 = math.rsqrt %223 : vector<1x8xf32>
    %cst_189 = arith.constant dense<0.000000e+00> : vector<1x128xf32>
    %225 = tpu.matmul %224, %207, %cst_189 {dimension_numbers = #tpu.dot_dimension_numbers<[1], [0], [0], [1], [0, 0, 1, 1], [], []>} : vector<1x8xf32>, vector<8x128xf32>, vector<1x128xf32> -> vector<1x128xf32>
    %226 = vector.broadcast %225 : vector<1x128xf32> to vector<32x128xf32>
    %227 = arith.mulf %215, %226 : vector<32x128xf32>
    %c3_190 = arith.constant 3 : index
    %c0_191 = arith.constant 0 : index
    %c0_192 = arith.constant 0 : index
    %228 = vector.load %arg7[%c3_190, %c0_191, %c0_192] : memref<4x1x128xf32, #tpu.memory_space<vmem>>, vector<1x1x128xf32>
    %229 = vector.shape_cast %228 : vector<1x1x128xf32> to vector<1x128xf32>
    %230 = vector.broadcast %229 : vector<1x128xf32> to vector<32x128xf32>
    %231 = arith.mulf %227, %230 : vector<32x128xf32>
    %c3_193 = arith.constant 3 : index
    %c0_194 = arith.constant 0 : index
    %c0_195 = arith.constant 0 : index
    %232 = vector.load %arg8[%c3_193, %c0_194, %c0_195] : memref<4x1x128xf32, #tpu.memory_space<vmem>>, vector<1x1x128xf32>
    %233 = vector.shape_cast %232 : vector<1x1x128xf32> to vector<1x128xf32>
    %234 = vector.broadcast %233 : vector<1x128xf32> to vector<32x128xf32>
    %235 = arith.addf %231, %234 : vector<32x128xf32>
    %236 = arith.addf %235, %121 : vector<32x128xf32>
    %237 = arith.negf %236 : vector<32x128xf32>
    %238 = math.exp %237 : vector<32x128xf32>
    %cst_196 = arith.constant 1.000000e+00 : f32
    %239 = vector.broadcast %cst_196 : f32 to vector<32x128xf32>
    %240 = arith.addf %239, %238 : vector<32x128xf32>
    %241 = arith.divf %239, %240 : vector<32x128xf32>
    %242 = arith.mulf %236, %241 : vector<32x128xf32>
    %c0_197 = arith.constant 0 : index
    %c0_198 = arith.constant 0 : index
    %243 = vector.load %arg12[%c0_197, %c0_198] : memref<32x128xf32, #tpu.memory_space<vmem>>, vector<32x128xf32>
    tpu.vector_store %arg12[%c0_197, %c0_198], %242 {strides = array<i32>} : memref<32x128xf32, #tpu.memory_space<vmem>>, vector<32x128xf32>,
    %c0_199 = arith.constant 0 : index
    %c0_200 = arith.constant 0 : index
    %244 = vector.load %arg6[%c0_199, %c0_200] : memref<1x128xf32, #tpu.memory_space<vmem>>, vector<1x128xf32>
    %c0_201 = arith.constant 0 : index
    %c0_202 = arith.constant 0 : index
    %c0_203 = arith.constant 0 : index
    %245 = vector.load %arg2[%c0_201, %c0_202, %c0_203] : memref<3x16x32xf32, #tpu.memory_space<vmem>>, vector<1x16x32xf32>
    %246 = vector.shape_cast %245 : vector<1x16x32xf32> to vector<16x32xf32>
    %cst_204 = arith.constant dense<0.000000e+00> : vector<16x128xf32>
    %247 = tpu.matmul %246, %242, %cst_204 {dimension_numbers = #tpu.dot_dimension_numbers<[1], [0], [0], [1], [0, 0, 1, 1], [], []>} : vector<16x32xf32>, vector<32x128xf32>, vector<16x128xf32> -> vector<16x128xf32>
    %c0_205 = arith.constant 0 : index
    %c0_206 = arith.constant 0 : index
    %c0_207 = arith.constant 0 : index
    %248 = vector.load %arg4[%c0_205, %c0_206, %c0_207] : memref<3x128x128xf32, #tpu.memory_space<vmem>>, vector<1x128x128xf32>
    %249 = vector.shape_cast %248 : vector<1x128x128xf32> to vector<128x128xf32>
    %cst_208 = arith.constant dense<0.000000e+00> : vector<16x128xf32>
    %250 = tpu.matmul %247, %249, %cst_208 {dimension_numbers = #tpu.dot_dimension_numbers<[1], [0], [0], [1], [0, 0, 1, 1], [], []>} : vector<16x128xf32>, vector<128x128xf32>, vector<16x128xf32> -> vector<16x128xf32>
    %251 = vector.broadcast %244 : vector<1x128xf32> to vector<16x128xf32>
    %252 = arith.addf %251, %250 : vector<16x128xf32>
    %c1_209 = arith.constant 1 : index
    %c0_210 = arith.constant 0 : index
    %c0_211 = arith.constant 0 : index
    %253 = vector.load %arg2[%c1_209, %c0_210, %c0_211] : memref<3x16x32xf32, #tpu.memory_space<vmem>>, vector<1x16x32xf32>
    %254 = vector.shape_cast %253 : vector<1x16x32xf32> to vector<16x32xf32>
    %cst_212 = arith.constant dense<0.000000e+00> : vector<16x128xf32>
    %255 = tpu.matmul %254, %242, %cst_212 {dimension_numbers = #tpu.dot_dimension_numbers<[1], [0], [0], [1], [0, 0, 1, 1], [], []>} : vector<16x32xf32>, vector<32x128xf32>, vector<16x128xf32> -> vector<16x128xf32>
    %c1_213 = arith.constant 1 : index
    %c0_214 = arith.constant 0 : index
    %c0_215 = arith.constant 0 : index
    %256 = vector.load %arg4[%c1_213, %c0_214, %c0_215] : memref<3x128x128xf32, #tpu.memory_space<vmem>>, vector<1x128x128xf32>
    %257 = vector.shape_cast %256 : vector<1x128x128xf32> to vector<128x128xf32>
    %cst_216 = arith.constant dense<0.000000e+00> : vector<16x128xf32>
    %258 = tpu.matmul %255, %257, %cst_216 {dimension_numbers = #tpu.dot_dimension_numbers<[1], [0], [0], [1], [0, 0, 1, 1], [], []>} : vector<16x128xf32>, vector<128x128xf32>, vector<16x128xf32> -> vector<16x128xf32>
    %259 = arith.addf %252, %258 : vector<16x128xf32>
    %c2_217 = arith.constant 2 : index
    %c0_218 = arith.constant 0 : index
    %c0_219 = arith.constant 0 : index
    %260 = vector.load %arg2[%c2_217, %c0_218, %c0_219] : memref<3x16x32xf32, #tpu.memory_space<vmem>>, vector<1x16x32xf32>
    %261 = vector.shape_cast %260 : vector<1x16x32xf32> to vector<16x32xf32>
    %cst_220 = arith.constant dense<0.000000e+00> : vector<16x128xf32>
    %262 = tpu.matmul %261, %242, %cst_220 {dimension_numbers = #tpu.dot_dimension_numbers<[1], [0], [0], [1], [0, 0, 1, 1], [], []>} : vector<16x32xf32>, vector<32x128xf32>, vector<16x128xf32> -> vector<16x128xf32>
    %c2_221 = arith.constant 2 : index
    %c0_222 = arith.constant 0 : index
    %c0_223 = arith.constant 0 : index
    %263 = vector.load %arg4[%c2_221, %c0_222, %c0_223] : memref<3x128x128xf32, #tpu.memory_space<vmem>>, vector<1x128x128xf32>
    %264 = vector.shape_cast %263 : vector<1x128x128xf32> to vector<128x128xf32>
    %cst_224 = arith.constant dense<0.000000e+00> : vector<16x128xf32>
    %265 = tpu.matmul %262, %264, %cst_224 {dimension_numbers = #tpu.dot_dimension_numbers<[1], [0], [0], [1], [0, 0, 1, 1], [], []>} : vector<16x128xf32>, vector<128x128xf32>, vector<16x128xf32> -> vector<16x128xf32>
    %266 = arith.addf %259, %265 : vector<16x128xf32>
    %c0_225 = arith.constant 0 : index
    %c0_226 = arith.constant 0 : index
    %267 = vector.load %arg11[%c0_225, %c0_226] : memref<16x128xf32, #tpu.memory_space<vmem>>, vector<16x128xf32>
    tpu.vector_store %arg11[%c0_225, %c0_226], %266 {strides = array<i32>} : memref<16x128xf32, #tpu.memory_space<vmem>>, vector<16x128xf32>,
    return
  }
}

</mosaic_0001>

<bundles_post_ra>
// kernel: tile.68
= control target key start
LH: loop header
LB: loop body
LE: loop exit
PB: predicated region body
PF: predicated region fallthrough
CT: control target
= control target key end

     0   :  { %s28_s0 = inlined_call_operand.vmem [shape: f32[8], index: 0, kind: input, shape index: {}]   ;;  %s29_s1 = inlined_call_operand.vmem [shape: f32[16,8], index: 1, kind: output, shape index: {}]  }
   0x1   :  { %v4_v0 = vld [vmem:[%s28_s0] ss:$0 sm:$0xff] }
   0x2   :  { %5 = vst [vmem:[%s29_s1] sm:$0xff] %v4_v0 }
   0x3   :  { %8 = vst [vmem:[%s29_s1 + $0x8] sm:$0xff] %v4_v0 }

// kernel: tile.81
= control target key start
LH: loop header
LB: loop body
LE: loop exit
PB: predicated region body
PF: predicated region fallthrough
CT: control target
= control target key end

     0   :  { %s131_s10 = smov 120   ;;  %s132_s11 = smov 104   ;;  %vm3_vm0 = vcmask 64512   ;;  %vm9_vm1 = vcmask 1048512   ;;  %vm15_vm2 = vcmask 982912   ;;  %vm21_vm3 = vcmask 917312   ;;  %s207_s0 = inlined_call_operand.vmem [shape: f32[16,8], index: 0, kind: input, shape index: {}]   ;;  %s208_s1 = inlined_call_operand.vmem [shape: f32[1,1,128], index: 1, kind: output, shape index: {}]  }
   0x1   :  { %v101_v0 = vld [vmem:[%s207_s0 + $0xf] sm:$0x1]   ;;  %v103_v1 = vld [vmem:[%s207_s0 + $0xd] sm:$0x1]   ;;  %v105_v2 = vld [vmem:[%s207_s0 + $0xb] sm:$0x1]  }
   0x2   :  { %7 = vrot.lane.b32.xlu0 %v101_v0, %s131_s10  ;;  %19 = vrot.lane.b32.xlu1 %v103_v1, %s132_s11  ;;  %s133_s14 = smov 88   ;;  %v102_v3 = vld [vmem:[%s207_s0 + $0xe] sm:$0x1]   ;;  %v104_v4 = vld [vmem:[%s207_s0 + $0xc] sm:$0x1]   ;;  %s134_s19 = smov 112  }
   0x3   :  { %31 = vrot.lane.b32.xlu2 %v105_v2, %s133_s14  ;;  %s135_s20 = smov 96   ;;  %v106_v5 = vld [vmem:[%s207_s0 + $0xa] sm:$0x1]   ;;  %s136_s23 = smov 80   ;;  %v107_v6 = vld [vmem:[%s207_s0 + $0x9] sm:$0x1]  }
   0x4   :  { %v108_v7 = vld [vmem:[%s207_s0 + $0x8] sm:$0x1]   ;;  %s137_s28 = smov 72   ;;  %s138_s29 = smov 64   ;;  %v109_v8 = vld [vmem:[%s207_s0 + $0x7] sm:$0x1]  }
   0x5   :  { %s139_s3 = smov 56   ;;  %v110_v9 = vld [vmem:[%s207_s0 + $0x6] sm:$0x1]   ;;  %v111_v10 = vld [vmem:[%s207_s0 + $0x5] sm:$0x1]   ;;  %s140_s8 = smov 48  }
   0x6   :  { %s141_s9 = smov 40   ;;  %v112_v11 = vld [vmem:[%s207_s0 + $0x4] sm:$0x1]   ;;  %s142_s12 = smov 32   ;;  %v113_v12 = vld [vmem:[%s207_s0 + $0x3] sm:$0x1]  }
   0x7   :  { %v114_v13 = vld [vmem:[%s207_s0 + $0x2] sm:$0x1]   ;;  %s143_s17 = smov 24   ;;  %s144_s18 = smov 16   ;;  %v115_v14 = vld [vmem:[%s207_s0 + $0x1] sm:$0x1]  }
   0x8   :  { %s145_s21 = smov 8   ;;  %v2_v15 = vld [vmem:[%s207_s0] sm:$0x1]   ;;  %vm27_vm4 = vcmask 851712   ;;  %vm33_vm5 = vcmask 786112   ;;  %vm39_vm6 = vcmask 720512  }
   0x9   :  { %4 = vst.msk [vmem:[#allocation0] sm:$0x1] %vm3_vm0, %v2_v15   ;;  %vm45_vm7 = vcmask 654912   ;;  %vm51_vm8 = vcmask 589312   ;;  %vm57_vm9 = vcmask 523712   ;;  %vm63_vm10 = vcmask 458112  }
   0xa   :  { %13 = vrot.lane.b32.xlu0 %v102_v3, %s134_s19  ;;  %25 = vrot.lane.b32.xlu1 %v104_v4, %s135_s20  ;;  %vm69_vm11 = vcmask 392512   ;;  %vm75_vm12 = vcmask 326912   ;;  %vm81_vm13 = vcmask 261312   ;;  %vm87_vm14 = vcmask 195712  }
   0xb   :  { %37 = vrot.lane.b32.xlu2 %v106_v5, %s136_s23  ;;  %vm93_vm15 = vcmask 130112  }
  0x12   :  { %43 = vrot.lane.b32.xlu0 %v107_v6, %s137_s28  ;;  %49 = vrot.lane.b32.xlu1 %v108_v7, %s138_s29 }
  0x13   :  { %55 = vrot.lane.b32.xlu2 %v109_v8, %s139_s3 }
  0x1a   :  { %61 = vrot.lane.b32.xlu0 %v110_v9, %s140_s8  ;;  %67 = vrot.lane.b32.xlu1 %v111_v10, %s141_s9 }
  0x1b   :  { %73 = vrot.lane.b32.xlu2 %v112_v11, %s142_s12 }
  0x22   :  { %79 = vrot.lane.b32.xlu0 %v113_v12, %s143_s17  ;;  %85 = vrot.lane.b32.xlu1 %v114_v13, %s144_s18 }
  0x23   :  { %91 = vrot.lane.b32.xlu2 %v115_v14, %s145_s21 }
  0x5d   :  { %v32_v16 = vpop.permute.xlu2 %31  }
  0x65   :  { %v38_v17 = vpop.permute.xlu2 %37  }
  0x6d   :  { %v56_v18 = vpop.permute.xlu2 %55  }
  0x74   :  { %v8_v19 = vpop.permute.xlu0 %7   ;;  %v20_v20 = vpop.permute.xlu1 %19  }
  0x75   :  { %10 = vst.msk [vmem:[#allocation0] sm:$0x1] %vm9_vm1, %v8_v19   ;;  %v74_v21 = vpop.permute.xlu2 %73  }
  0x7c   :  { %v14_v22 = vpop.permute.xlu0 %13   ;;  %v26_v23 = vpop.permute.xlu1 %25  }
  0x7d   :  { %16 = vst.msk [vmem:[#allocation0] sm:$0x1] %vm15_vm2, %v14_v22   ;;  %v92_v24 = vpop.permute.xlu2 %91  }
  0x7e   :  { %22 = vst.msk [vmem:[#allocation0] sm:$0x1] %vm21_vm3, %v20_v20  }
  0x7f   :  { %28 = vst.msk [vmem:[#allocation0] sm:$0x1] %vm27_vm4, %v26_v23  }
  0x80   :  { %34 = vst.msk [vmem:[#allocation0] sm:$0x1] %vm33_vm5, %v32_v16  }
  0x81   :  { %40 = vst.msk [vmem:[#allocation0] sm:$0x1] %vm39_vm6, %v38_v17  }
  0x84   :  { %v44_v25 = vpop.permute.xlu0 %43   ;;  %v50_v26 = vpop.permute.xlu1 %49  }
  0x85   :  { %46 = vst.msk [vmem:[#allocation0] sm:$0x1] %vm45_vm7, %v44_v25  }
  0x86   :  { %52 = vst.msk [vmem:[#allocation0] sm:$0x1] %vm51_vm8, %v50_v26  }
  0x87   :  { %58 = vst.msk [vmem:[#allocation0] sm:$0x1] %vm57_vm9, %v56_v18  }
  0x8c   :  { %v62_v27 = vpop.permute.xlu0 %61   ;;  %v68_v28 = vpop.permute.xlu1 %67  }
  0x8d   :  { %64 = vst.msk [vmem:[#allocation0] sm:$0x1] %vm63_vm10, %v62_v27  }
  0x8e   :  { %70 = vst.msk [vmem:[#allocation0] sm:$0x1] %vm69_vm11, %v68_v28  }
  0x8f   :  { %76 = vst.msk [vmem:[#allocation0] sm:$0x1] %vm75_vm12, %v74_v21  }
  0x94   :  { %v80_v29 = vpop.permute.xlu0 %79   ;;  %v86_v30 = vpop.permute.xlu1 %85  }
  0x95   :  { %82 = vst.msk [vmem:[#allocation0] sm:$0x1] %vm81_vm13, %v80_v29  }
  0x96   :  { %88 = vst.msk [vmem:[#allocation0] sm:$0x1] %vm87_vm14, %v86_v30  }
  0x97   :  { %94 = vst.msk [vmem:[#allocation0] sm:$0x1] %vm93_vm15, %v92_v24  }
  0x9e   :  { %v97_v31 = vld [vmem:[#allocation0] sm:$0x1] }
  0x9f   :  { %100 = vst [vmem:[%s208_s1] sm:$0x1] %v97_v31 }

// kernel: tile.128
= control target key start
LH: loop header
LB: loop body
LE: loop exit
PB: predicated region body
PF: predicated region fallthrough
CT: control target
= control target key end

     0   :  { %s22_s0 = inlined_call_operand.vmem [shape: f32[16], index: 0, kind: input, shape index: {}]   ;;  %s23_s1 = inlined_call_operand.vmem [shape: f32[8,16], index: 1, kind: output, shape index: {}]  }
   0x1   :  { %v4_v0 = vld [vmem:[%s22_s0] ss:$0 sm:$0xff] }
   0x2   :  { %5 = vst [vmem:[%s23_s1] sm:$0xff] %v4_v0 }

// kernel: tile.129
= control target key start
LH: loop header
LB: loop body
LE: loop exit
PB: predicated region body
PF: predicated region fallthrough
CT: control target
= control target key end

     0   :  { %s67_s10 = smov 112   ;;  %s68_s11 = smov 80   ;;  %vm3_vm0 = vcmask 130048   ;;  %vm9_vm1 = vcmask 1048448   ;;  %vm15_vm2 = vcmask 917248   ;;  %vm21_vm3 = vcmask 786048   ;;  %s111_s0 = inlined_call_operand.vmem [shape: f32[8,16], index: 0, kind: input, shape index: {}]   ;;  %s112_s1 = inlined_call_operand.vmem [shape: f32[1,128], index: 1, kind: output, shape index: {}]  }
   0x1   :  { %v53_v0 = vld [vmem:[%s111_s0 + $0x7] sm:$0x1]   ;;  %v55_v1 = vld [vmem:[%s111_s0 + $0x5] sm:$0x1]   ;;  %v57_v2 = vld [vmem:[%s111_s0 + $0x3] sm:$0x1]  }
   0x2   :  { %7 = vrot.lane.b32.xlu0 %v53_v0, %s67_s10  ;;  %19 = vrot.lane.b32.xlu1 %v55_v1, %s68_s11  ;;  %s69_s14 = smov 48   ;;  %v54_v3 = vld [vmem:[%s111_s0 + $0x6] sm:$0x1]   ;;  %v56_v4 = vld [vmem:[%s111_s0 + $0x4] sm:$0x1]   ;;  %s70_s21 = smov 96  }
   0x3   :  { %31 = vrot.lane.b32.xlu2 %v57_v2, %s69_s14  ;;  %v58_v5 = vld [vmem:[%s111_s0 + $0x2] sm:$0x1]   ;;  %s71_s22 = smov 64   ;;  %s72_s23 = smov 32   ;;  %v59_v6 = vld [vmem:[%s111_s0 + $0x1] sm:$0x1]  }
   0x4   :  { %s73_s26 = smov 16   ;;  %v2_v7 = vld [vmem:[%s111_s0] sm:$0x1]   ;;  %vm27_vm4 = vcmask 654848   ;;  %vm33_vm5 = vcmask 523648   ;;  %vm39_vm6 = vcmask 392448  }
   0x5   :  { %4 = vst.msk [vmem:[#allocation0] sm:$0x1] %vm3_vm0, %v2_v7   ;;  %vm45_vm7 = vcmask 261248  }
   0xa   :  { %13 = vrot.lane.b32.xlu0 %v54_v3, %s70_s21  ;;  %25 = vrot.lane.b32.xlu1 %v56_v4, %s71_s22 }
   0xb   :  { %37 = vrot.lane.b32.xlu2 %v58_v5, %s72_s23 }
  0x12   :  { %43 = vrot.lane.b32.xlu0 %v59_v6, %s73_s26 }
  0x5d   :  { %v32_v8 = vpop.permute.xlu2 %31  }
  0x65   :  { %v38_v9 = vpop.permute.xlu2 %37  }
  0x74   :  { %v8_v10 = vpop.permute.xlu0 %7   ;;  %v20_v11 = vpop.permute.xlu1 %19  }
  0x75   :  { %10 = vst.msk [vmem:[#allocation0] sm:$0x1] %vm9_vm1, %v8_v10  }
  0x7c   :  { %v14_v12 = vpop.permute.xlu0 %13   ;;  %v26_v13 = vpop.permute.xlu1 %25  }
  0x7d   :  { %16 = vst.msk [vmem:[#allocation0] sm:$0x1] %vm15_vm2, %v14_v12  }
  0x7e   :  { %22 = vst.msk [vmem:[#allocation0] sm:$0x1] %vm21_vm3, %v20_v11  }
  0x7f   :  { %28 = vst.msk [vmem:[#allocation0] sm:$0x1] %vm27_vm4, %v26_v13  }
  0x80   :  { %34 = vst.msk [vmem:[#allocation0] sm:$0x1] %vm33_vm5, %v32_v8  }
  0x81   :  { %40 = vst.msk [vmem:[#allocation0] sm:$0x1] %vm39_vm6, %v38_v9  }
  0x84   :  { %v44_v14 = vpop.permute.xlu0 %43  }
  0x85   :  { %46 = vst.msk [vmem:[#allocation0] sm:$0x1] %vm45_vm7, %v44_v14  }
  0x8c   :  { %v49_v15 = vld [vmem:[#allocation0] sm:$0x1] }
  0x8d   :  { %52 = vst [vmem:[%s112_s1] sm:$0x1] %v49_v15 }

// kernel: down_block.1
= control target key start
LH: loop header
LB: loop body
LE: loop exit
PB: predicated region body
PF: predicated region fallthrough
CT: control target
= control target key end

     0   :  { %vm49_vm0 = vcmask 261120   ;;  %vm382_vm1 = vcmask 64512   ;;  %s4240_s0 = inlined_call_operand.vmem [shape: f32[32,128], index: 0, kind: input, shape index: {}]   ;;  %s4241_s1 = inlined_call_operand.vmem [shape: f32[3,32,32], index: 1, kind: input, shape index: {}]   ;;  %s4242_s3 = inlined_call_operand.vmem [shape: f32[4,3,128,128], index: 3, kind: input, shape index: {}]   ;;  %s4243_s5 = inlined_call_operand.vmem [shape: f32[4,1,128], index: 5, kind: input, shape index: {}]   ;;  %s4244_s9 = inlined_call_operand.vmem [shape: f32[128,8], index: 9, kind: input, shape index: {}]   ;;  %s4245_s10 = inlined_call_operand.vmem [shape: f32[8,128], index: 10, kind: input, shape index: {}]   ;;  %s4246_s7 = inlined_call_operand.vmem [shape: f32[4,1,128], index: 7, kind: input, shape index: {}]   ;;  %s4247_s8 = inlined_call_operand.vmem [shape: f32[4,1,128], index: 8, kind: input, shape index: {}]   ;;  %s4248_s12 = inlined_call_operand.vmem [shape: f32[32,128], index: 12, kind: output, shape index: {1}]   ;;  %s4249_s4 = inlined_call_operand.vmem [shape: f32[3,128,128], index: 4, kind: input, shape index: {}]   ;;  %s4250_s2 = inlined_call_operand.vmem [shape: f32[3,16,32], index: 2, kind: input, shape index: {}]   ;;  %s4251_s6 = inlined_call_operand.vmem [shape: f32[1,128], index: 6, kind: input, shape index: {}]   ;;  %s4252_s11 = inlined_call_operand.vmem [shape: f32[16,128], index: 11, kind: output, shape index: {0}]  }
   0x1   :  { %v43_v0 = vld [vmem:[%s4240_s0 + $0x18] sm:$0xff]  ;;  %v42_v1 = vld [vmem:[%s4240_s0 + $0x10] sm:$0xff]  ;;  %v41_v2 = vld [vmem:[%s4240_s0 + $0x8] sm:$0xff] }
   0x2   :  { %74 = vmatpush.msra.mxu0 %v43_v0  ;;  %172 = vmatpush.msra.mxu2 %v43_v0  ;;  %v40_v3 = vld [vmem:[%s4240_s0] sm:$0xff]  ;;  %v2762_v6 = vld [vmem:[%s4241_s1 + $0x8] sm:$0xff]  ;;  %v2776_v8 = vld [vmem:[%s4241_s1 + $0x10] sm:$0xff] }
   0x3   :  { %v2748_v4 = vld [vmem:[%s4241_s1] sm:$0xff]  ;;  %v2767_v7 = vld [vmem:[%s4241_s1 + $0x28] sm:$0xff]  ;;  %v2781_v9 = vld [vmem:[%s4241_s1 + $0x30] sm:$0xff] }
   0x4   :  { %75 = vmatpush.msra.mxu0 %v42_v1  ;;  %173 = vmatpush.msra.mxu2 %v42_v1  ;;  %v2753_v5 = vld [vmem:[%s4241_s1 + $0x20] sm:$0xff]  ;;  %v2790_v10 = vld [vmem:[%s4241_s1 + $0x18] sm:$0xff]  ;;  %v105_v13 = vld [vmem:[%s4242_s3 + $0x70] sm:$0xff] }
   0x5   :  { %v2795_v11 = vld [vmem:[%s4241_s1 + $0x38] sm:$0xff]  ;;  %v104_v15 = vld [vmem:[%s4242_s3 + $0x68] sm:$0xff]  ;;  %v2265_v16 = vld [vmem:[%s4242_s3 + $0xf0] sm:$0xff] }
   0x6   :  { %76 = vmatpush.msra.mxu0 %v41_v2  ;;  %174 = vmatpush.msra.mxu2 %v41_v2  ;;  %v106_v12 = vld [vmem:[%s4242_s3 + $0x78] sm:$0xff]  ;;  %v2264_v17 = vld [vmem:[%s4242_s3 + $0xe8] sm:$0xff]  ;;  %v103_v18 = vld [vmem:[%s4242_s3 + $0x60] sm:$0xff] }
   0x7   :  { %107 = vmatpush.msra.mxu1 %v106_v12  ;;  %v2266_v14 = vld [vmem:[%s4242_s3 + $0xf8] sm:$0xff]  ;;  %v2825_v19 = vld [vmem:[%s4241_s1 + $0x40] sm:$0xff]  ;;  %v101_v23 = vld [vmem:[%s4242_s3 + $0x50] sm:$0xff] }
   0x8   :  { %77 = vmatpush.msra.mxu0 %v40_v3  ;;  %175 = vmatpush.msra.mxu2 %v40_v3  ;;  %v2263_v20 = vld [vmem:[%s4242_s3 + $0xe0] sm:$0xff]  ;;  %v102_v21 = vld [vmem:[%s4242_s3 + $0x58] sm:$0xff]  ;;  %v2261_v24 = vld [vmem:[%s4242_s3 + $0xd0] sm:$0xff] }
   0x9   :  { %2239 = vmatmul.msk.f32.vlgmr.msra.gmra.mxu0 %vm49_vm0, %v2748_v4  ;;  %2247 = vmatmul.msk.f32.vlgmr.msra.gmra.mxu2 %vm49_vm0, %v2753_v5  ;;  %v2262_v22 = vld [vmem:[%s4242_s3 + $0xd8] sm:$0xff]  ;;  %v100_v25 = vld [vmem:[%s4242_s3 + $0x48] sm:$0xff]  ;;  %v99_v27 = vld [vmem:[%s4242_s3 + $0x40] sm:$0xff] }
   0xa   :  { %268 = vmatpush.msrb.mxu0 %v43_v0  ;;  %206 = vmatpush.msra.mxu3 %v2266_v14  ;;  %v2260_v26 = vld [vmem:[%s4242_s3 + $0xc8] sm:$0xff]  ;;  %v2259_v29 = vld [vmem:[%s4242_s3 + $0xc0] sm:$0xff]  ;;  %v98_v30 = vld [vmem:[%s4242_s3 + $0x38] sm:$0xff] }
   0xb   :  { %108 = vmatpush.msra.mxu1 %v105_v13  ;;  %v2856_v28 = vld [vmem:[%s4241_s1 + $0x48] sm:$0xff]  ;;  %v2258_v31 = vld [vmem:[%s4242_s3 + $0xb8] sm:$0xff]  ;;  %v97_v32 = vld [vmem:[%s4242_s3 + $0x30] sm:$0xff] }
   0xc   :  { %269 = vmatpush.msrb.mxu0 %v42_v1  ;;  %207 = vmatpush.msra.mxu3 %v2265_v16  ;;  %v2257_v33 = vld [vmem:[%s4242_s3 + $0xb0] sm:$0xff]  ;;  %v96_v34 = vld [vmem:[%s4242_s3 + $0x28] sm:$0xff]  ;;  %v95_v36 = vld [vmem:[%s4242_s3 + $0x20] sm:$0xff] }
   0xd   :  { %109 = vmatpush.msra.mxu1 %v104_v15  ;;  %v2256_v35 = vld [vmem:[%s4242_s3 + $0xa8] sm:$0xff]  ;;  %v2887_v37 = vld [vmem:[%s4241_s1 + $0x50] sm:$0xff]  ;;  %v2255_v38 = vld [vmem:[%s4242_s3 + $0xa0] sm:$0xff] }
   0xe   :  { %270 = vmatpush.msrb.mxu0 %v41_v2  ;;  %208 = vmatpush.msra.mxu3 %v2264_v17  ;;  %v94_v39 = vld [vmem:[%s4242_s3 + $0x18] sm:$0xff]  ;;  %v93_v40 = vld [vmem:[%s4242_s3 + $0x10] sm:$0xff]  ;;  %v92_v41 = vld [vmem:[%s4242_s3 + $0x8] sm:$0xff] }
   0xf   :  { %110 = vmatpush.msra.mxu1 %v103_v18  ;;  %v2906_v42 = vld [vmem:[%s4241_s1 + $0x58] sm:$0xff]  ;;  %v91_v43 = vld [vmem:[%s4242_s3] sm:$0xff]  ;;  %v2253_v45 = vld [vmem:[%s4242_s3 + $0x90] sm:$0xff] }
  0x10   :  { %271 = vmatpush.msrb.mxu0 %v40_v3  ;;  %209 = vmatpush.msra.mxu3 %v2263_v20  ;;  %v2254_v44 = vld [vmem:[%s4242_s3 + $0x98] sm:$0xff]  ;;  %v2252_v47 = vld [vmem:[%s4242_s3 + $0x88] sm:$0xff]  ;;  %v2289_v48 = vld [vmem:[%s4242_s3 + $0x170] sm:$0xff] }
  0x11   :  { %2240 = vmatmul.msk.f32.gmra.mxu0 %vm49_vm0, %v2762_v6  ;;  %2248 = vmatmul.msk.f32.gmra.mxu2 %vm49_vm0, %v2767_v7  ;;  %v2290_v46 = vld [vmem:[%s4242_s3 + $0x178] sm:$0xff]  ;;  %v2251_v49 = vld [vmem:[%s4242_s3 + $0x80] sm:$0xff]  ;;  %v2288_v50 = vld [vmem:[%s4242_s3 + $0x168] sm:$0xff] }
  0x12   :  { %111 = vmatpush.msra.mxu1 %v102_v21  ;;  %210 = vmatpush.msra.mxu3 %v2262_v22  ;;  %v2287_v51 = vld [vmem:[%s4242_s3 + $0x160] sm:$0xff]  ;;  %v2286_v52 = vld [vmem:[%s4242_s3 + $0x158] sm:$0xff]  ;;  %v2285_v53 = vld [vmem:[%s4242_s3 + $0x150] sm:$0xff] }
  0x13   :  { %302 = vmatpush.msrb.mxu2 %v2290_v46  ;;  %v2284_v54 = vld [vmem:[%s4242_s3 + $0x148] sm:$0xff]  ;;  %v2283_v55 = vld [vmem:[%s4242_s3 + $0x140] sm:$0xff]  ;;  %v2282_v56 = vld [vmem:[%s4242_s3 + $0x138] sm:$0xff] }
  0x14   :  { %112 = vmatpush.msra.mxu1 %v101_v23  ;;  %211 = vmatpush.msra.mxu3 %v2261_v24  ;;  %v2281_v57 = vld [vmem:[%s4242_s3 + $0x130] sm:$0xff]  ;;  %v2280_v58 = vld [vmem:[%s4242_s3 + $0x128] sm:$0xff]  ;;  %v2279_v59 = vld [vmem:[%s4242_s3 + $0x120] sm:$0xff] }
  0x15   :  { %303 = vmatpush.msrb.mxu2 %v2289_v48  ;;  %v2278_v60 = vld [vmem:[%s4242_s3 + $0x118] sm:$0xff]  ;;  %v2277_v61 = vld [vmem:[%s4242_s3 + $0x110] sm:$0xff]  ;;  %v2276_v62 = vld [vmem:[%s4242_s3 + $0x108] sm:$0xff] }
  0x16   :  { %113 = vmatpush.msra.mxu1 %v100_v25  ;;  %212 = vmatpush.msra.mxu3 %v2260_v26  ;;  %v2275_v63 = vld [vmem:[%s4242_s3 + $0x100] sm:$0xff]  ;;  %v2976_v21 = vld [vmem:[%s4244_s9 + $0x78] sm:$0xff]  ;;  %v2983_v22 = vld [vmem:[%s4244_s9 + $0x70] sm:$0xff] }
  0x17   :  { %304 = vmatpush.msrb.mxu2 %v2288_v50  ;;  %424 = vmatpush.msra.mxu0 %v2976_v21  ;;  %v2988_v23 = vld [vmem:[%s4244_s9 + $0x68] sm:$0xff]  ;;  %v2997_v24 = vld [vmem:[%s4244_s9 + $0x60] sm:$0xff]  ;;  %v3004_v25 = vld [vmem:[%s4244_s9 + $0x58] sm:$0xff] }
  0x18   :  { %114 = vmatpush.msra.mxu1 %v99_v27  ;;  %213 = vmatpush.msra.mxu3 %v2259_v29  ;;  %v3011_v26 = vld [vmem:[%s4244_s9 + $0x50] sm:$0xff]  ;;  %v3016_v27 = vld [vmem:[%s4244_s9 + $0x48] sm:$0xff] }
  0x19   :  { %2241 = vmatmul.msk.f32.gmra.mxu0 %vm49_vm0, %v2776_v8  ;;  %2249 = vmatmul.msk.f32.gmra.mxu2 %vm49_vm0, %v2781_v9 }
  0x1a   :  { %115 = vmatpush.msra.mxu1 %v98_v30  ;;  %214 = vmatpush.msra.mxu3 %v2258_v31  ;;  %v3025_v31 = vld [vmem:[%s4244_s9 + $0x40] sm:$0xff] }
  0x1b   :  { %305 = vmatpush.msrb.mxu2 %v2287_v51  ;;  %425 = vmatpush.msra.mxu0 %v2983_v22 }
  0x1c   :  { %116 = vmatpush.msra.mxu1 %v97_v32  ;;  %215 = vmatpush.msra.mxu3 %v2257_v33  ;;  %v3032_v32 = vld [vmem:[%s4244_s9 + $0x38] sm:$0xff]  ;;  %v3039_v33 = vld [vmem:[%s4244_s9 + $0x30] sm:$0xff] }
  0x1d   :  { %306 = vmatpush.msrb.mxu2 %v2286_v52  ;;  %426 = vmatpush.msra.mxu0 %v2988_v23 }
  0x1e   :  { %117 = vmatpush.msra.mxu1 %v96_v34  ;;  %216 = vmatpush.msra.mxu3 %v2256_v35  ;;  %v3046_v34 = vld [vmem:[%s4244_s9 + $0x28] sm:$0xff] }
  0x1f   :  { %307 = vmatpush.msrb.mxu2 %v2285_v53  ;;  %427 = vmatpush.msra.mxu0 %v2997_v24 }
  0x20   :  { %118 = vmatpush.msra.mxu1 %v95_v36  ;;  %217 = vmatpush.msra.mxu3 %v2255_v38  ;;  %v3053_v36 = vld [vmem:[%s4244_s9 + $0x20] sm:$0xff] }
  0x21   :  { %2242 = vmatmul.msk.f32.gmra.mxu0 %vm49_vm0, %v2790_v10  ;;  %2250 = vmatmul.msk.f32.gmra.mxu2 %vm49_vm0, %v2795_v11 }
  0x22   :  { %119 = vmatpush.msra.mxu1 %v94_v39  ;;  %218 = vmatpush.msra.mxu3 %v2254_v44  ;;  %v3079_v44 = vld [vmem:[%s4244_s9] sm:$0xff] }
  0x23   :  { %308 = vmatpush.msrb.mxu2 %v2284_v54  ;;  %428 = vmatpush.msra.mxu0 %v3004_v25 }
  0x24   :  { %120 = vmatpush.msra.mxu1 %v93_v40  ;;  %219 = vmatpush.msra.mxu3 %v2253_v45  ;;  %v3060_v40 = vld [vmem:[%s4244_s9 + $0x18] sm:$0xff] }
  0x25   :  { %309 = vmatpush.msrb.mxu2 %v2283_v55  ;;  %429 = vmatpush.msra.mxu0 %v3011_v26 }
  0x26   :  { %121 = vmatpush.msra.mxu1 %v92_v41  ;;  %220 = vmatpush.msra.mxu3 %v2252_v47  ;;  %v3065_v41 = vld [vmem:[%s4244_s9 + $0x10] sm:$0xff]  ;;  %v3088_v47 = vld [vmem:[%s4245_s10] sm:$0xff] }
  0x27   :  { %310 = vmatpush.msrb.mxu2 %v2282_v56  ;;  %430 = vmatpush.msra.mxu0 %v3016_v27 }
  0x28   :  { %122 = vmatpush.msra.mxu1 %v91_v43  ;;  %221 = vmatpush.msra.mxu3 %v2251_v49  ;;  %v3072_v43 = vld [vmem:[%s4244_s9 + $0x8] sm:$0xff]  ;;  %v2550_v49 = vld [vmem:[%s4243_s5] ss:$0 sm:$0xff] }
  0x29   :  { %2271 = vmatmul.msk.f32.vlgmr.msrb.gmra.mxu0 %vm49_vm0, %v2825_v19  ;;  %311 = vmatpush.msrb.mxu2 %v2281_v57 }
  0x2a   :  { %361 = vmatpush.msrb.mxu1 %v2976_v21  ;;  %431 = vmatpush.msra.mxu0 %v3025_v31 }
  0x2b   :  { %312 = vmatpush.msrb.mxu2 %v2280_v58  ;;  %401 = vmatpush.msrb.mxu3 %v3088_v47 }
  0x2c   :  { %362 = vmatpush.msrb.mxu1 %v2983_v22  ;;  %432 = vmatpush.msra.mxu0 %v3032_v32 }
  0x2d   :  { %313 = vmatpush.msrb.mxu2 %v2279_v59 }
  0x2e   :  { %363 = vmatpush.msrb.mxu1 %v2988_v23  ;;  %433 = vmatpush.msra.mxu0 %v3039_v33 }
  0x2f   :  { %314 = vmatpush.msrb.mxu2 %v2278_v60 }
  0x30   :  { %364 = vmatpush.msrb.mxu1 %v2997_v24  ;;  %434 = vmatpush.msra.mxu0 %v3046_v34 }
  0x31   :  { %2272 = vmatmul.msk.f32.gmra.mxu0 %vm49_vm0, %v2856_v28  ;;  %315 = vmatpush.msrb.mxu2 %v2277_v61 }
  0x32   :  { %365 = vmatpush.msrb.mxu1 %v3004_v25  ;;  %435 = vmatpush.msra.mxu0 %v3053_v36 }
  0x33   :  { %316 = vmatpush.msrb.mxu2 %v2276_v62 }
  0x34   :  { %366 = vmatpush.msrb.mxu1 %v3011_v26  ;;  %436 = vmatpush.msra.mxu0 %v3060_v40 }
  0x35   :  { %317 = vmatpush.msrb.mxu2 %v2275_v63 }
  0x36   :  { %367 = vmatpush.msrb.mxu1 %v3016_v27  ;;  %437 = vmatpush.msra.mxu0 %v3065_v41 }
  0x38   :  { %368 = vmatpush.msrb.mxu1 %v3025_v31  ;;  %438 = vmatpush.msra.mxu0 %v3072_v43 }
  0x39   :  { %2273 = vmatmul.msk.f32.gmra.mxu0 %vm49_vm0, %v2887_v37 }
  0x3a   :  { %369 = vmatpush.msrb.mxu1 %v3032_v32  ;;  %439 = vmatpush.msra.mxu0 %v3079_v44 }
  0x3c   :  { %370 = vmatpush.msrb.mxu1 %v3039_v33 }
  0x3e   :  { %371 = vmatpush.msrb.mxu1 %v3046_v34 }
  0x40   :  { %372 = vmatpush.msrb.mxu1 %v3053_v36 }
  0x41   :  { %2274 = vmatmul.msk.f32.gmra.mxu0 %vm49_vm0, %v2906_v42 }
  0x42   :  { %373 = vmatpush.msrb.mxu1 %v3060_v40 }
  0x44   :  { %374 = vmatpush.msrb.mxu1 %v3065_v41 }
  0x46   :  { %375 = vmatpush.msrb.mxu1 %v3072_v43 }
  0x48   :  { %376 = vmatpush.msrb.mxu1 %v3079_v44 }
  0x86   :  { %v79_v0 = vpop.f32.mrf.mxu0 }
  0x87   :  { %123 = vmatmul.f32.vlgmr.msra.gmra.mxu1 %v79_v0 }
  0x88   :  { %474 = vmatpush.msra.mxu1 %v3088_v47 }
  0x8c   :  { %v177_v1 = vpop.f32.mrf.mxu2 }
  0x8d   :  { %222 = vmatmul.f32.vlgmr.msra.gmra.mxu3 %v177_v1 }
  0x8e   :  { %v82_v2 = vpop.f32.mrf.mxu0 }
  0x8f   :  { %126 = vmatmul.f32.gmra.mxu1 %v82_v2 }
  0x94   :  { %v180_v3 = vpop.f32.mrf.mxu2 }
  0x95   :  { %225 = vmatmul.f32.gmra.mxu3 %v180_v3 }
  0x96   :  { %v85_v12 = vpop.f32.mrf.mxu0 }
  0x97   :  { %129 = vmatmul.f32.gmra.mxu1 %v85_v12 }
  0x9c   :  { %v183_v13 = vpop.f32.mrf.mxu2 }
  0x9d   :  { %228 = vmatmul.f32.gmra.mxu3 %v183_v13 }
  0x9e   :  { %v88_v14 = vpop.f32.mrf.mxu0 }
  0x9f   :  { %132 = vmatmul.f32.gmra.mxu1 %v88_v14 }
  0xa4   :  { %v186_v15 = vpop.f32.mrf.mxu2 }
  0xa5   :  { %231 = vmatmul.f32.gmra.mxu3 %v186_v15 }
  0xa6   :  { %v273_v16 = vpop.f32.mrf.mxu0 }
  0xa7   :  { %318 = vmatmul.f32.vlgmr.msrb.gmra.mxu2 %v273_v16 }
  0xae   :  { %v276_v17 = vpop.f32.mrf.mxu0 }
  0xaf   :  { %321 = vmatmul.f32.gmra.mxu2 %v276_v17 }
  0xb6   :  { %v279_v18 = vpop.f32.mrf.mxu0 }
  0xb7   :  { %324 = vmatmul.f32.gmra.mxu2 %v279_v18 }
  0xbe   :  { %v282_v20 = vpop.f32.mrf.mxu0 }
  0xbf   :  { %327 = vmatmul.f32.gmra.mxu2 %v282_v20 }
 0x104   :  { %v124_v29 = vpop.f32.mrf.mxu1 }
 0x105   :  { %v139_v52 = vadd.f32 %v2550_v49, %v124_v29 }
 0x10c   :  { %v127_v35 = vpop.f32.mrf.mxu1 }
 0x10d   :  { %v140_v50 = vadd.f32 %v2550_v49, %v127_v35 }
 0x110   :  { %v223_v30 = vpop.f32.mrf.mxu3 }
 0x111   :  { %v235_v56 = vadd.f32 %v223_v30, %v139_v52 }
 0x114   :  { %v130_v45 = vpop.f32.mrf.mxu1 }
 0x115   :  { %v141_v53 = vadd.f32 %v2550_v49, %v130_v45 }
 0x118   :  { %v226_v38 = vpop.f32.mrf.mxu3 }
 0x119   :  { %v236_v54 = vadd.f32 %v226_v38, %v140_v50 }
 0x11c   :  { %v133_v55 = vpop.f32.mrf.mxu1 }
 0x11d   :  { %v142_v60 = vadd.f32 %v2550_v49, %v133_v55 }
 0x120   :  { %v229_v48 = vpop.f32.mrf.mxu3 }
 0x121   :  { %v237_v57 = vadd.f32 %v229_v48, %v141_v53 }
 0x128   :  { %v232_v59 = vpop.f32.mrf.mxu3 }
 0x129   :  { %v238_v63 = vadd.f32 %v232_v59, %v142_v60 }
 0x12a   :  { %v319_v39 = vpop.f32.mrf.mxu2 }
 0x12b   :  { %v331_v61 = vadd.f32 %v319_v39, %v235_v56 }
 0x132   :  { %v322_v46 = vpop.f32.mrf.mxu2 }
 0x133   :  { %v332_v58 = vadd.f32 %v322_v46, %v236_v54 }
 0x135   :  { %v352_v0 = vadd.f32 %v332_v58, %v331_v61 }
 0x13a   :  { %v325_v51 = vpop.f32.mrf.mxu2 }
 0x13b   :  { %v333_v62 = vadd.f32 %v325_v51, %v237_v57 }
 0x13d   :  { %v353_v2 = vadd.f32 %v352_v0, %v333_v62 }
 0x142   :  { %v328_v1 = vpop.f32.mrf.mxu2 }
 0x143   :  { %v334_v3 = vadd.f32 %v328_v1, %v238_v63 }
 0x145   :  { %v354_v12 = vadd.f32 %v353_v2, %v334_v3 }
 0x147   :  { %v355_v13 = vrot.slane %v354_v12, 4 }
 0x149   :  { %v356_v14 = vadd.f32 %v355_v13, %v354_v12 }
 0x14b   :  { %v357_v15 = vrot.slane %v356_v14, 2 }
 0x14d   :  { %v358_v16 = vadd.f32 %v357_v15, %v356_v14 }
 0x14f   :  { %v359_v17 = vrot.slane %v358_v16, 1 }
 0x151   :  { %v360_v18 = vadd.f32 %v359_v17, %v358_v16  ;;  %v2551_v17 = vld [vmem:[%s4246_s7] ss:$0 sm:$0xff] }
 0x153   :  { %377 = vmatmul.f32.vlgmr.msrb.gmra.mxu1 %v360_v18 }
 0x1d0   :  { %v378_v20 = vpop.f32.mrf.mxu1 }
 0x1d1   :  { %v381_v29 = vmul.f32 0.001953125, %v378_v20 }
 0x1d3   :  { %2291 = vmatmul.msk.f32.vlgmr.msrb.gmra.mxu3 %vm382_vm1, %v381_v29 }
 0x256   :  { %v403_v30 = vpop.f32.mrf.mxu3 }
 0x257   :  { %v406_v35 = vperm.slane %v403_v30, 0 }
 0x259   :  { %v407_v38 = vsub.f32 %v331_v61, %v406_v35  ;;  %v408_v39 = vsub.f32 %v332_v58, %v406_v35  ;;  %v409_v45 = vsub.f32 %v333_v62, %v406_v35  ;;  %v410_v46 = vsub.f32 %v334_v3, %v406_v35  ;;  %v2552_v35 = vld [vmem:[%s4247_s8] ss:$0 sm:$0xff] }
 0x25b   :  { %v411_v48 = vmul.f32 %v407_v38, %v407_v38  ;;  %v412_v49 = vmul.f32 %v408_v39, %v408_v39  ;;  %v413_v50 = vmul.f32 %v409_v45, %v409_v45  ;;  %v414_v52 = vmul.f32 %v410_v46, %v410_v46 }
 0x25d   :  { %v415_v51 = vadd.f32 %v412_v49, %v411_v48 }
 0x25f   :  { %v416_v53 = vadd.f32 %v415_v51, %v413_v50 }
 0x261   :  { %v417_v54 = vadd.f32 %v416_v53, %v414_v52 }
 0x263   :  { %v418_v55 = vrot.slane %v417_v54, 4 }
 0x265   :  { %v419_v56 = vadd.f32 %v418_v55, %v417_v54 }
 0x267   :  { %v420_v57 = vrot.slane %v419_v56, 2 }
 0x269   :  { %v421_v59 = vadd.f32 %v420_v57, %v419_v56 }
 0x26b   :  { %v422_v60 = vrot.slane %v421_v59, 1 }
 0x26d   :  { %v423_v63 = vadd.f32 %v422_v60, %v421_v59 }
 0x26f   :  { %440 = vmatmul.f32.vlgmr.msra.gmra.mxu0 %v423_v63 }
 0x2ec   :  { %v441_v0 = vpop.f32.mrf.mxu0 }
 0x2ed   :  { %v444_v1 = vmul.f32 0.001953125, %v441_v0 }
 0x2ef   :  { %v445_v61 = vadd.f32 1e-05, %v444_v1 }
 0x2f1   :  { %2563 = vrsqrt.f32 %v445_v61  ;;  %vm452_vm3 = vweird.f32 %v445_v61 }
 0x2f7   :  { %v2564_v58 = vpop.eup %2563 }
 0x2f8   :  { %v447_v62 = vmul.f32 %v2564_v58, %v445_v61  ;;  %vm453_vm2 = vweird.f32 %v2564_v58 }
 0x2f9   :  { %vm454_vm4 = vmor %vm452_vm3, %vm453_vm2 }
 0x2fa   :  { %v448_v2 = vmul.f32 %v2564_v58, %v447_v62 }
 0x2fc   :  { %v449_v3 = vmul.f32 0.5, %v448_v2 }
 0x2fe   :  { %v450_v12 = vsub.f32 1.5, %v449_v3 }
 0x300   :  { %v451_v13 = vmul.f32 %v2564_v58, %v450_v12 }
 0x302   :  { %v455_v14 = vsel %vm454_vm4, %v2564_v58, %v451_v13 }
 0x303   :  { %2292 = vmatmul.msk.f32.vlgmr.msra.gmra.mxu1 %vm382_vm1, %v455_v14 }
 0x380   :  { %v476_v15 = vpop.f32.mrf.mxu1 }
 0x381   :  { %v479_v16 = vperm.slane %v476_v15, 0 }
 0x383   :  { %v480_v18 = vmul.f32 %v479_v16, %v407_v38  ;;  %v481_v20 = vmul.f32 %v479_v16, %v408_v39  ;;  %v482_v29 = vmul.f32 %v479_v16, %v409_v45  ;;  %v483_v30 = vmul.f32 %v479_v16, %v410_v46 }
 0x385   :  { %v488_v48 = vmul.f32 %v2551_v17, %v480_v18  ;;  %v489_v49 = vmul.f32 %v2551_v17, %v481_v20  ;;  %v490_v50 = vmul.f32 %v2551_v17, %v482_v29  ;;  %v491_v51 = vmul.f32 %v2551_v17, %v483_v30 }
 0x387   :  { %v3103_v52 = vadd.f32 %v2552_v35, %v491_v51  ;;  %v3105_v53 = vadd.f32 %v2552_v35, %v490_v50  ;;  %v3107_v54 = vadd.f32 %v2552_v35, %v489_v49  ;;  %v3109_v55 = vadd.f32 %v2552_v35, %v488_v48  ;;  %v2331_v50 = vld [vmem:[%s4242_s3 + $0x248] sm:$0xff] }
 0x389   :  { %v2296_v38 = vmul.f32 -1.442695, %v3103_v52  ;;  %v2295_v39 = vmul.f32 -1.442695, %v3105_v53  ;;  %v2294_v45 = vmul.f32 -1.442695, %v3107_v54 }
 0x38a   :  { %v2293_v46 = vmul.f32 -1.442695, %v3109_v55 }
 0x38b   :  { %2565 = vpow2.f32 %v2296_v38 }
 0x38c   :  { %2567 = vpow2.f32 %v2295_v39 }
 0x38d   :  { %2569 = vpow2.f32 %v2294_v45 }
 0x38e   :  { %2571 = vpow2.f32 %v2293_v46 }
 0x391   :  { %v2566_v56 = vpop.eup %2565 }
 0x392   :  { %v2568_v57 = vpop.eup %2567  ;;  %v515_v59 = vadd.f32 1.0, %v2566_v56 }
 0x393   :  { %v2570_v60 = vpop.eup %2569  ;;  %v514_v63 = vadd.f32 1.0, %v2568_v57 }
 0x394   :  { %v2572_v0 = vpop.eup %2571  ;;  %2573 = vrcp.f32 %v515_v59  ;;  %v513_v1 = vadd.f32 1.0, %v2570_v60  ;;  %v570_v62 = vand.u32 2147483647, %v515_v59  ;;  %v572_v12 = vand.u32 2147483648, %v515_v59 }
 0x395   :  { %2575 = vrcp.f32 %v514_v63  ;;  %v512_v61 = vadd.f32 1.0, %v2572_v0  ;;  %v555_v14 = vand.u32 2147483647, %v514_v63  ;;  %v557_v16 = vand.u32 2147483648, %v514_v63 }
 0x396   :  { %2577 = vrcp.f32 %v513_v1  ;;  %vm566_vm5 = vweird.f32 %v515_v59  ;;  %vm3115_vm6 = vcmp.eq.f32.partialorder %v570_v62, 8.507059e+37  ;;  %vm551_vm7 = vweird.f32 %v514_v63 }
 0x397   :  { %2579 = vrcp.f32 %v512_v61  ;;  %v573_v35 = vor.u32 1.1754944e-38, %v572_v12  ;;  %vm3119_vm10 = vcmp.eq.f32.partialorder %v555_v14, 8.507059e+37  ;;  %v558_v39 = vor.u32 1.1754944e-38, %v557_v16 }
 0x398   :  { %v540_v46 = vand.u32 2147483647, %v513_v1  ;;  %v542_v57 = vand.u32 2147483648, %v513_v1  ;;  %v525_v0 = vand.u32 2147483647, %v512_v61  ;;  %v527_v12 = vand.u32 2147483648, %v512_v61 }
 0x399   :  { %vm536_vm15 = vweird.f32 %v513_v1  ;;  %vm521_vm3 = vweird.f32 %v512_v61 }
 0x39a   :  { %v2574_v58 = vpop.eup %2573  ;;  %vm541_vm4 = vcmp.eq.f32.partialorder %v540_v46, 8.507059e+37  ;;  %v2307_v46 = vld [vmem:[%s4242_s3 + $0x1a8] sm:$0xff] }
 0x39b   :  { %v2576_v2 = vpop.eup %2575  ;;  %v562_v3 = vmul.f32 %v2574_v58, %v515_v59  ;;  %vm567_vm8 = vweird.f32 %v2574_v58 }
 0x39c   :  { %v547_v13 = vmul.f32 %v2576_v2, %v514_v63  ;;  %v2578_v17 = vpop.eup %2577  ;;  %vm552_vm9 = vweird.f32 %v2576_v2  ;;  %vm568_vm11 = vmor %vm566_vm5, %vm567_vm8 }
 0x39d   :  { %v563_v15 = vsub.f32 1.0, %v562_v3  ;;  %v2580_v29 = vpop.eup %2579  ;;  %v532_v48 = vmul.f32 %v2578_v17, %v513_v1  ;;  %vm553_vm12 = vmor %vm551_vm7, %vm552_vm9  ;;  %vm537_vm13 = vweird.f32 %v2578_v17 }
 0x39e   :  { %v548_v20 = vsub.f32 1.0, %v547_v13  ;;  %v517_v51 = vmul.f32 %v2580_v29, %v512_v61  ;;  %vm522_vm14 = vweird.f32 %v2580_v29  ;;  %vm538_vm2 = vmor %vm536_vm15, %vm537_vm13 }
 0x39f   :  { %v564_v30 = vmul.f32 %v2574_v58, %v563_v15  ;;  %v533_v45 = vsub.f32 1.0, %v532_v48  ;;  %vm523_vm5 = vmor %vm521_vm3, %vm522_vm14 }
 0x3a0   :  { %v549_v49 = vmul.f32 %v2576_v2, %v548_v20  ;;  %v518_v60 = vsub.f32 1.0, %v517_v51  ;;  %v2309_v51 = vld [vmem:[%s4242_s3 + $0x1b8] sm:$0xff] }
 0x3a1   :  { %v565_v38 = vadd.f32 %v2574_v58, %v564_v30  ;;  %v534_v3 = vmul.f32 %v2578_v17, %v533_v45  ;;  %v2329_v45 = vld [vmem:[%s4242_s3 + $0x238] sm:$0xff] }
 0x3a2   :  { %v550_v56 = vadd.f32 %v2576_v2, %v549_v49  ;;  %v519_v15 = vmul.f32 %v2580_v29, %v518_v60  ;;  %v2311_v49 = vld [vmem:[%s4242_s3 + $0x1c8] sm:$0xff]  ;;  %v2304_v60 = vld [vmem:[%s4242_s3 + $0x190] sm:$0xff] }
 0x3a3   :  { %v569_v62 = vsel %vm568_vm11, %v2574_v58, %v565_v38  ;;  %v535_v20 = vadd.f32 %v2578_v17, %v534_v3  ;;  %v543_v58 = vor.u32 1.1754944e-38, %v542_v57  ;;  %v2330_v38 = vld [vmem:[%s4242_s3 + $0x240] sm:$0xff]  ;;  %v2305_v57 = vld [vmem:[%s4242_s3 + $0x198] sm:$0xff] }
 0x3a4   :  { %v574_v13 = vsel %vm3115_vm6, %v573_v35, %v569_v62  ;;  %v554_v14 = vsel %vm553_vm12, %v2576_v2, %v550_v56  ;;  %v520_v63 = vadd.f32 %v2580_v29, %v519_v15  ;;  %v528_v2 = vor.u32 1.1754944e-38, %v527_v12  ;;  %v2327_v56 = vld [vmem:[%s4242_s3 + $0x228] sm:$0xff]  ;;  %v2326_v62 = vld [vmem:[%s4242_s3 + $0x220] sm:$0xff]  ;;  %v2357_v3 = vld [vmem:[%s4242_s3 + $0x2f8] sm:$0xff] }
 0x3a5   :  { %v579_v16 = vmul.f32 %v574_v13, %v3103_v52  ;;  %v559_v59 = vsel %vm3119_vm10, %v558_v39, %v554_v14  ;;  %v539_v18 = vsel %vm538_vm2, %v2578_v17, %v535_v20  ;;  %vm526_vm6 = vcmp.eq.f32.partialorder %v525_v0, 8.507059e+37  ;;  %v2312_v17 = vld [vmem:[%s4242_s3 + $0x1d0] sm:$0xff]  ;;  %v2303_v0 = vld [vmem:[%s4242_s3 + $0x188] sm:$0xff]  ;;  %v2325_v12 = vld [vmem:[%s4242_s3 + $0x218] sm:$0xff] }
 0x3a6   :  { %v578_v30 = vmul.f32 %v559_v59, %v3105_v53  ;;  %v544_v35 = vsel %vm541_vm4, %v543_v58, %v539_v18  ;;  %v524_v48 = vsel %vm523_vm5, %v2580_v29, %v520_v63  ;;  %v2314_v53 = vld [vmem:[%s4242_s3 + $0x1e0] sm:$0xff]  ;;  %v2333_v29 = vld [vmem:[%s4242_s3 + $0x258] sm:$0xff]  ;;  %v2308_v39 = vld [vmem:[%s4242_s3 + $0x1b0] sm:$0xff] }
 0x3a7   :  { %594 = vmatpush.msrb.mxu0 %v579_v16  ;;  %2546 = vmatpush.msra.mxu2 %v579_v16  ;;  %v577_v52 = vmul.f32 %v544_v35, %v3107_v54  ;;  %v529_v1 = vsel %vm526_vm6, %v528_v2, %v524_v48  ;;  %v2313_v54 = vld [vmem:[%s4242_s3 + $0x1d8] sm:$0xff]  ;;  %v2324_v13 = vld [vmem:[%s4242_s3 + $0x210] sm:$0xff]  ;;  %v2355_v14 = vld [vmem:[%s4242_s3 + $0x2e8] sm:$0xff] }
 0x3a8   :  { %v576_v61 = vmul.f32 %v529_v1, %v3109_v55  ;;  %v2334_v55 = vld [vmem:[%s4242_s3 + $0x260] sm:$0xff]  ;;  %v2323_v15 = vld [vmem:[%s4242_s3 + $0x208] sm:$0xff]  ;;  %v2352_v59 = vld [vmem:[%s4242_s3 + $0x2d0] sm:$0xff] }
 0x3a9   :  { %595 = vmatpush.msrb.mxu0 %v578_v30  ;;  %2547 = vmatpush.msra.mxu2 %v578_v30  ;;  %v2348_v20 = vld [vmem:[%s4242_s3 + $0x2b0] sm:$0xff] }
 0x3ab   :  { %596 = vmatpush.msrb.mxu0 %v577_v52  ;;  %2548 = vmatpush.msra.mxu2 %v577_v52 }
 0x3ad   :  { %597 = vmatpush.msrb.mxu0 %v576_v61  ;;  %2549 = vmatpush.msra.mxu2 %v576_v61 }
 0x3ae   :  { %2298 = vmatmul.msk.f32.vlgmr.msrb.gmra.mxu0 %vm49_vm0, %v2748_v4  ;;  %2299 = vmatmul.msk.f32.vlgmr.msra.gmra.mxu2 %vm49_vm0, %v2762_v6  ;;  %v2317_v4 = vld [vmem:[%s4242_s3 + $0x1f8] sm:$0xff] }
 0x3af   :  { %676 = vmatpush.msra.mxu0 %v579_v16  ;;  %755 = vmatpush.msrb.mxu2 %v579_v16  ;;  %v2337_v6 = vld [vmem:[%s4242_s3 + $0x278] sm:$0xff]  ;;  %v2354_v16 = vld [vmem:[%s4242_s3 + $0x2e0] sm:$0xff] }
 0x3b0   :  { %628 = vmatpush.msra.mxu3 %v2317_v4  ;;  %710 = vmatpush.msrb.mxu1 %v2337_v6 }
 0x3b1   :  { %677 = vmatpush.msra.mxu0 %v578_v30  ;;  %756 = vmatpush.msrb.mxu2 %v578_v30 }
 0x3b3   :  { %678 = vmatpush.msra.mxu0 %v577_v52  ;;  %757 = vmatpush.msrb.mxu2 %v577_v52 }
 0x3b5   :  { %679 = vmatpush.msra.mxu0 %v576_v61  ;;  %758 = vmatpush.msrb.mxu2 %v576_v61 }
 0x3b6   :  { %2300 = vmatmul.msk.f32.gmra.mxu2 %vm49_vm0, %v2776_v8  ;;  %2318 = vmatmul.msk.f32.vlgmr.msra.gmra.mxu0 %vm49_vm0, %v2753_v5  ;;  %v2316_v5 = vld [vmem:[%s4242_s3 + $0x1f0] sm:$0xff]  ;;  %v2315_v8 = vld [vmem:[%s4242_s3 + $0x1e8] sm:$0xff] }
 0x3b7   :  { %893 = vmatpush.msra.mxu2 %v2976_v21  ;;  %629 = vmatpush.msra.mxu3 %v2316_v5 }
 0x3b8   :  { %789 = vmatpush.msrb.mxu0 %v2357_v3 }
 0x3b9   :  { %894 = vmatpush.msra.mxu2 %v2983_v22  ;;  %630 = vmatpush.msra.mxu3 %v2315_v8  ;;  %v2553_v8 = vld [vmem:[%s4243_s5 + $0x1] ss:$0 sm:$0xff] }
 0x3bb   :  { %895 = vmatpush.msra.mxu2 %v2988_v23  ;;  %631 = vmatpush.msra.mxu3 %v2314_v53 }
 0x3bd   :  { %896 = vmatpush.msra.mxu2 %v2997_v24  ;;  %632 = vmatpush.msra.mxu3 %v2313_v54 }
 0x3be   :  { %2301 = vmatmul.msk.f32.gmra.mxu2 %vm49_vm0, %v2790_v10  ;;  %2319 = vmatmul.msk.f32.gmra.mxu0 %vm49_vm0, %v2767_v7  ;;  %v2336_v7 = vld [vmem:[%s4242_s3 + $0x270] sm:$0xff]  ;;  %v2335_v10 = vld [vmem:[%s4242_s3 + $0x268] sm:$0xff] }
 0x3bf   :  { %897 = vmatpush.msra.mxu2 %v3004_v25  ;;  %711 = vmatpush.msrb.mxu1 %v2336_v7 }
 0x3c0   :  { %633 = vmatpush.msra.mxu3 %v2312_v17 }
 0x3c1   :  { %898 = vmatpush.msra.mxu2 %v3011_v26  ;;  %712 = vmatpush.msrb.mxu1 %v2335_v10 }
 0x3c2   :  { %634 = vmatpush.msra.mxu3 %v2311_v49 }
 0x3c3   :  { %899 = vmatpush.msra.mxu2 %v3016_v27  ;;  %713 = vmatpush.msrb.mxu1 %v2334_v55 }
 0x3c5   :  { %900 = vmatpush.msra.mxu2 %v3025_v31  ;;  %714 = vmatpush.msrb.mxu1 %v2333_v29 }
 0x3c6   :  { %2320 = vmatmul.msk.f32.gmra.mxu0 %vm49_vm0, %v2781_v9  ;;  %2338 = vmatmul.msk.f32.vlgmr.msrb.gmra.mxu2 %vm49_vm0, %v2825_v19  ;;  %v2332_v9 = vld [vmem:[%s4242_s3 + $0x250] sm:$0xff]  ;;  %v2310_v19 = vld [vmem:[%s4242_s3 + $0x1c0] sm:$0xff] }
 0x3c7   :  { %901 = vmatpush.msra.mxu2 %v3032_v32  ;;  %715 = vmatpush.msrb.mxu1 %v2332_v9 }
 0x3c8   :  { %635 = vmatpush.msra.mxu3 %v2310_v19 }
 0x3c9   :  { %902 = vmatpush.msra.mxu2 %v3039_v33  ;;  %716 = vmatpush.msrb.mxu1 %v2331_v50 }
 0x3ca   :  { %636 = vmatpush.msra.mxu3 %v2309_v51 }
 0x3cb   :  { %903 = vmatpush.msra.mxu2 %v3046_v34  ;;  %717 = vmatpush.msrb.mxu1 %v2330_v38 }
 0x3cc   :  { %637 = vmatpush.msra.mxu3 %v2308_v39 }
 0x3cd   :  { %904 = vmatpush.msra.mxu2 %v3053_v36  ;;  %718 = vmatpush.msrb.mxu1 %v2329_v45 }
 0x3ce   :  { %2321 = vmatmul.msk.f32.gmra.mxu0 %vm49_vm0, %v2795_v11  ;;  %2339 = vmatmul.msk.f32.gmra.mxu2 %vm49_vm0, %v2856_v28  ;;  %v2328_v11 = vld [vmem:[%s4242_s3 + $0x230] sm:$0xff]  ;;  %v2306_v28 = vld [vmem:[%s4242_s3 + $0x1a0] sm:$0xff] }
 0x3cf   :  { %905 = vmatpush.msra.mxu2 %v3060_v40  ;;  %638 = vmatpush.msra.mxu3 %v2307_v46 }
 0x3d0   :  { %719 = vmatpush.msrb.mxu1 %v2328_v11 }
 0x3d1   :  { %906 = vmatpush.msra.mxu2 %v3065_v41  ;;  %639 = vmatpush.msra.mxu3 %v2306_v28 }
 0x3d2   :  { %720 = vmatpush.msrb.mxu1 %v2327_v56 }
 0x3d3   :  { %640 = vmatpush.msra.mxu3 %v2305_v57  ;;  %907 = vmatpush.msra.mxu2 %v3072_v43 }
 0x3d4   :  { %721 = vmatpush.msrb.mxu1 %v2326_v62 }
 0x3d5   :  { %641 = vmatpush.msra.mxu3 %v2304_v60  ;;  %908 = vmatpush.msra.mxu2 %v3079_v44 }
 0x3d6   :  { %2340 = vmatmul.msk.f32.gmra.mxu2 %vm49_vm0, %v2887_v37  ;;  %v2302_v37 = vld [vmem:[%s4242_s3 + $0x180] sm:$0xff]  ;;  %722 = vmatpush.msrb.mxu1 %v2325_v12 }
 0x3d7   :  { %642 = vmatpush.msra.mxu3 %v2303_v0 }
 0x3d8   :  { %723 = vmatpush.msrb.mxu1 %v2324_v13 }
 0x3d9   :  { %643 = vmatpush.msra.mxu3 %v2302_v37 }
 0x3da   :  { %724 = vmatpush.msrb.mxu1 %v2323_v15 }
 0x3db   :  { %831 = vmatpush.msrb.mxu3 %v2976_v21  ;;  %v2322_v21 = vld [vmem:[%s4242_s3 + $0x200] sm:$0xff] }
 0x3dc   :  { %725 = vmatpush.msrb.mxu1 %v2322_v21 }
 0x3dd   :  { %832 = vmatpush.msrb.mxu3 %v2983_v22  ;;  %v2353_v22 = vld [vmem:[%s4242_s3 + $0x2d8] sm:$0xff] }
 0x3de   :  { %2341 = vmatmul.msk.f32.gmra.mxu2 %vm49_vm0, %v2906_v42  ;;  %v2356_v42 = vld [vmem:[%s4242_s3 + $0x2f0] sm:$0xff]  ;;  %870 = vmatpush.msra.mxu1 %v3088_v47 }
 0x3df   :  { %790 = vmatpush.msrb.mxu0 %v2356_v42  ;;  %833 = vmatpush.msrb.mxu3 %v2988_v23  ;;  %v2351_v23 = vld [vmem:[%s4242_s3 + $0x2c8] sm:$0xff] }
 0x3e1   :  { %791 = vmatpush.msrb.mxu0 %v2355_v14  ;;  %834 = vmatpush.msrb.mxu3 %v2997_v24  ;;  %v2350_v24 = vld [vmem:[%s4242_s3 + $0x2c0] sm:$0xff] }
 0x3e3   :  { %792 = vmatpush.msrb.mxu0 %v2354_v16  ;;  %835 = vmatpush.msrb.mxu3 %v3004_v25  ;;  %v2349_v25 = vld [vmem:[%s4242_s3 + $0x2b8] sm:$0xff] }
 0x3e5   :  { %793 = vmatpush.msrb.mxu0 %v2353_v22  ;;  %836 = vmatpush.msrb.mxu3 %v3011_v26  ;;  %v2347_v26 = vld [vmem:[%s4242_s3 + $0x2a8] sm:$0xff] }
 0x3e7   :  { %794 = vmatpush.msrb.mxu0 %v2352_v59  ;;  %837 = vmatpush.msrb.mxu3 %v3016_v27  ;;  %v2346_v27 = vld [vmem:[%s4242_s3 + $0x2a0] sm:$0xff] }
 0x3e9   :  { %795 = vmatpush.msrb.mxu0 %v2351_v23  ;;  %838 = vmatpush.msrb.mxu3 %v3025_v31  ;;  %v2345_v31 = vld [vmem:[%s4242_s3 + $0x298] sm:$0xff] }
 0x3eb   :  { %796 = vmatpush.msrb.mxu0 %v2350_v24  ;;  %839 = vmatpush.msrb.mxu3 %v3032_v32  ;;  %v2344_v32 = vld [vmem:[%s4242_s3 + $0x290] sm:$0xff] }
 0x3ed   :  { %797 = vmatpush.msrb.mxu0 %v2349_v25  ;;  %840 = vmatpush.msrb.mxu3 %v3039_v33  ;;  %v2343_v33 = vld [vmem:[%s4242_s3 + $0x288] sm:$0xff] }
 0x3ef   :  { %798 = vmatpush.msrb.mxu0 %v2348_v20  ;;  %841 = vmatpush.msrb.mxu3 %v3046_v34  ;;  %v2342_v34 = vld [vmem:[%s4242_s3 + $0x280] sm:$0xff] }
 0x3f1   :  { %799 = vmatpush.msrb.mxu0 %v2347_v26  ;;  %842 = vmatpush.msrb.mxu3 %v3053_v36 }
 0x3f3   :  { %800 = vmatpush.msrb.mxu0 %v2346_v27  ;;  %843 = vmatpush.msrb.mxu3 %v3060_v40 }
 0x3f5   :  { %801 = vmatpush.msrb.mxu0 %v2345_v31  ;;  %844 = vmatpush.msrb.mxu3 %v3065_v41 }
 0x3f7   :  { %802 = vmatpush.msrb.mxu0 %v2344_v32  ;;  %845 = vmatpush.msrb.mxu3 %v3072_v43 }
 0x3f9   :  { %803 = vmatpush.msrb.mxu0 %v2343_v33  ;;  %846 = vmatpush.msrb.mxu3 %v3079_v44 }
 0x3fb   :  { %804 = vmatpush.msrb.mxu0 %v2342_v34 }
 0x42b   :  { %v599_v36 = vpop.f32.mrf.mxu0 }
 0x42c   :  { %644 = vmatmul.f32.vlgmr.msra.gmra.mxu3 %v599_v36 }
 0x42d   :  { %943 = vmatpush.msra.mxu3 %v3088_v47 }
 0x431   :  { %v602_v40 = vpop.f32.mrf.mxu2 }
 0x433   :  { %v681_v58 = vpop.f32.mrf.mxu0 }
 0x434   :  { %647 = vmatmul.f32.gmra.mxu3 %v602_v40  ;;  %726 = vmatmul.f32.vlgmr.msrb.gmra.mxu1 %v681_v58 }
 0x439   :  { %v605_v63 = vpop.f32.mrf.mxu2 }
 0x43b   :  { %v684_v41 = vpop.f32.mrf.mxu0 }
 0x43c   :  { %650 = vmatmul.f32.gmra.mxu3 %v605_v63  ;;  %729 = vmatmul.f32.gmra.mxu1 %v684_v41 }
 0x441   :  { %v608_v30 = vpop.f32.mrf.mxu2 }
 0x443   :  { %v687_v18 = vpop.f32.mrf.mxu0 }
 0x444   :  { %653 = vmatmul.f32.gmra.mxu3 %v608_v30  ;;  %732 = vmatmul.f32.gmra.mxu1 %v687_v18 }
 0x449   :  { %v760_v43 = vpop.f32.mrf.mxu2 }
 0x44a   :  { %805 = vmatmul.f32.vlgmr.msrb.gmra.mxu0 %v760_v43 }
 0x44b   :  { %v690_v2 = vpop.f32.mrf.mxu0 }
 0x44c   :  { %735 = vmatmul.f32.gmra.mxu1 %v690_v2 }
 0x451   :  { %v763_v44 = vpop.f32.mrf.mxu2 }
 0x452   :  { %808 = vmatmul.f32.gmra.mxu0 %v763_v44 }
 0x459   :  { %v766_v35 = vpop.f32.mrf.mxu2 }
 0x45a   :  { %811 = vmatmul.f32.gmra.mxu0 %v766_v35 }
 0x461   :  { %v769_v47 = vpop.f32.mrf.mxu2 }
 0x462   :  { %814 = vmatmul.f32.gmra.mxu0 %v769_v47 }
 0x4af   :  { %v645_v48 = vpop.f32.mrf.mxu3 }
 0x4b0   :  { %v660_v10 = vadd.f32 %v2553_v8, %v645_v48 }
 0x4b1   :  { %v727_v52 = vpop.f32.mrf.mxu1 }
 0x4b2   :  { %v739_v29 = vadd.f32 %v727_v52, %v660_v10 }
 0x4b7   :  { %v648_v1 = vpop.f32.mrf.mxu3 }
 0x4b8   :  { %v661_v53 = vadd.f32 %v2553_v8, %v648_v1 }
 0x4b9   :  { %v730_v61 = vpop.f32.mrf.mxu1 }
 0x4ba   :  { %v740_v49 = vadd.f32 %v730_v61, %v661_v53  ;;  %v2554_v61 = vld [vmem:[%s4246_s7 + $0x1] ss:$0 sm:$0xff] }
 0x4bf   :  { %v651_v5 = vpop.f32.mrf.mxu3 }
 0x4c0   :  { %v662_v54 = vadd.f32 %v2553_v8, %v651_v5 }
 0x4c1   :  { %v733_v7 = vpop.f32.mrf.mxu1 }
 0x4c2   :  { %v741_v9 = vadd.f32 %v733_v7, %v662_v54  ;;  %v2555_v7 = vld [vmem:[%s4247_s8 + $0x1] ss:$0 sm:$0xff] }
 0x4c7   :  { %v806_v4 = vpop.f32.mrf.mxu0  ;;  %v654_v55 = vpop.f32.mrf.mxu3 }
 0x4c8   :  { %v663_v19 = vadd.f32 %v2553_v8, %v654_v55  ;;  %v818_v38 = vadd.f32 %v806_v4, %v739_v29 }
 0x4c9   :  { %v736_v51 = vpop.f32.mrf.mxu1 }
 0x4ca   :  { %v742_v45 = vadd.f32 %v736_v51, %v663_v19  ;;  %v2635_v19 = vld [vmem:[%s4240_s0 + $0x18] sm:$0xff]  ;;  %v2636_v51 = vld [vmem:[%s4240_s0 + $0x10] sm:$0xff] }
 0x4cf   :  { %v809_v6 = vpop.f32.mrf.mxu0 }
 0x4d0   :  { %v819_v50 = vadd.f32 %v809_v6, %v740_v49 }
 0x4d2   :  { %v822_v46 = vadd.f32 %v819_v50, %v818_v38 }
 0x4d7   :  { %v812_v17 = vpop.f32.mrf.mxu0 }
 0x4d8   :  { %v820_v39 = vadd.f32 %v812_v17, %v741_v9 }
 0x4da   :  { %v823_v28 = vadd.f32 %v822_v46, %v820_v39  ;;  %v2638_v46 = vld [vmem:[%s4240_s0] sm:$0xff] }
 0x4df   :  { %v815_v11 = vpop.f32.mrf.mxu0 }
 0x4e0   :  { %v821_v56 = vadd.f32 %v815_v11, %v742_v45 }
 0x4e2   :  { %v824_v57 = vadd.f32 %v823_v28, %v821_v56 }
 0x4e4   :  { %v825_v60 = vrot.slane %v824_v57, 4 }
 0x4e6   :  { %v826_v0 = vadd.f32 %v825_v60, %v824_v57 }
 0x4e8   :  { %v827_v37 = vrot.slane %v826_v0, 2 }
 0x4ea   :  { %v828_v62 = vadd.f32 %v827_v37, %v826_v0 }
 0x4ec   :  { %v829_v3 = vrot.slane %v828_v62, 1 }
 0x4ee   :  { %v830_v12 = vadd.f32 %v829_v3, %v828_v62 }
 0x4f0   :  { %847 = vmatmul.f32.vlgmr.msrb.gmra.mxu3 %v830_v12 }
 0x573   :  { %v848_v42 = vpop.f32.mrf.mxu3 }
 0x574   :  { %v851_v13 = vmul.f32 0.001953125, %v848_v42 }
 0x576   :  { %2358 = vmatmul.msk.f32.vlgmr.msra.gmra.mxu1 %vm382_vm1, %v851_v13 }
 0x5f3   :  { %v872_v14 = vpop.f32.mrf.mxu1 }
 0x5f4   :  { %v875_v15 = vperm.slane %v872_v14, 0 }
 0x5f6   :  { %v876_v16 = vsub.f32 %v818_v38, %v875_v15  ;;  %v877_v21 = vsub.f32 %v819_v50, %v875_v15  ;;  %v878_v22 = vsub.f32 %v820_v39, %v875_v15  ;;  %v879_v59 = vsub.f32 %v821_v56, %v875_v15  ;;  %v2637_v39 = vld [vmem:[%s4240_s0 + $0x8] sm:$0xff] }
 0x5f8   :  { %v880_v23 = vmul.f32 %v876_v16, %v876_v16  ;;  %v881_v24 = vmul.f32 %v877_v21, %v877_v21  ;;  %v882_v25 = vmul.f32 %v878_v22, %v878_v22  ;;  %v883_v26 = vmul.f32 %v879_v59, %v879_v59 }
 0x5fa   :  { %v884_v20 = vadd.f32 %v881_v24, %v880_v23 }
 0x5fc   :  { %v885_v27 = vadd.f32 %v884_v20, %v882_v25 }
 0x5fe   :  { %v886_v31 = vadd.f32 %v885_v27, %v883_v26  ;;  %v2402_v27 = vld [vmem:[%s4242_s3 + $0x3d8] sm:$0xff] }
 0x600   :  { %v887_v32 = vrot.slane %v886_v31, 4 }
 0x602   :  { %v888_v33 = vadd.f32 %v887_v32, %v886_v31 }
 0x604   :  { %v889_v34 = vrot.slane %v888_v33, 2 }
 0x606   :  { %v890_v36 = vadd.f32 %v889_v34, %v888_v33 }
 0x608   :  { %v891_v40 = vrot.slane %v890_v36, 1 }
 0x60a   :  { %v892_v58 = vadd.f32 %v891_v40, %v890_v36 }
 0x60c   :  { %909 = vmatmul.f32.vlgmr.msra.gmra.mxu2 %v892_v58  ;;  %v2400_v58 = vld [vmem:[%s4242_s3 + $0x3c8] sm:$0xff] }
 0x68f   :  { %v910_v63 = vpop.f32.mrf.mxu2 }
 0x690   :  { %v913_v41 = vmul.f32 0.001953125, %v910_v63 }
 0x692   :  { %v914_v30 = vadd.f32 1e-05, %v913_v41 }
 0x694   :  { %2581 = vrsqrt.f32 %v914_v30  ;;  %vm921_vm8 = vweird.f32 %v914_v30 }
 0x69a   :  { %v2582_v18 = vpop.eup %2581 }
 0x69b   :  { %v916_v43 = vmul.f32 %v2582_v18, %v914_v30  ;;  %vm922_vm7 = vweird.f32 %v2582_v18 }
 0x69c   :  { %vm923_vm9 = vmor %vm921_vm8, %vm922_vm7 }
 0x69d   :  { %v917_v2 = vmul.f32 %v2582_v18, %v916_v43 }
 0x69f   :  { %v918_v44 = vmul.f32 0.5, %v917_v2 }
 0x6a1   :  { %v919_v35 = vsub.f32 1.5, %v918_v44 }
 0x6a3   :  { %v920_v47 = vmul.f32 %v2582_v18, %v919_v35 }
 0x6a5   :  { %v924_v48 = vsel %vm923_vm9, %v2582_v18, %v920_v47 }
 0x6a6   :  { %2359 = vmatmul.msk.f32.vlgmr.msra.gmra.mxu3 %vm382_vm1, %v924_v48 }
 0x729   :  { %v945_v52 = vpop.f32.mrf.mxu3 }
 0x72a   :  { %v948_v1 = vperm.slane %v945_v52, 0 }
 0x72c   :  { %v949_v4 = vmul.f32 %v948_v1, %v876_v16  ;;  %v950_v5 = vmul.f32 %v948_v1, %v877_v21  ;;  %v951_v6 = vmul.f32 %v948_v1, %v878_v22  ;;  %v952_v8 = vmul.f32 %v948_v1, %v879_v59 }
 0x72e   :  { %v958_v10 = vmul.f32 %v2554_v61, %v949_v4  ;;  %v959_v53 = vmul.f32 %v2554_v61, %v950_v5  ;;  %v960_v54 = vmul.f32 %v2554_v61, %v951_v6  ;;  %v961_v55 = vmul.f32 %v2554_v61, %v952_v8 }
 0x730   :  { %v970_v17 = vadd.f32 %v2555_v7, %v961_v55  ;;  %v969_v29 = vadd.f32 %v2555_v7, %v960_v54  ;;  %v968_v49 = vadd.f32 %v2555_v7, %v959_v53  ;;  %v967_v9 = vadd.f32 %v2555_v7, %v958_v10 }
 0x732   :  { %v3349_v50 = vadd.f32 %v2635_v19, %v970_v17  ;;  %v3354_v38 = vadd.f32 %v2636_v51, %v969_v29  ;;  %v3359_v45 = vadd.f32 %v2637_v39, %v968_v49  ;;  %v3364_v11 = vadd.f32 %v2638_v46, %v967_v9  ;;  %v3407_v51 = vld [vmem:[%s4241_s1] sm:$0xff]  ;;  %v3425_v39 = vld [vmem:[%s4241_s1 + $0x8] sm:$0xff]  ;;  %v3439_v46 = vld [vmem:[%s4244_s9 + $0x78] sm:$0xff] }
 0x734   :  { %v2365_v28 = vmul.f32 -1.442695, %v3349_v50  ;;  %v2364_v56 = vmul.f32 -1.442695, %v3354_v38  ;;  %v2363_v57 = vmul.f32 -1.442695, %v3359_v45 }
 0x735   :  { %v2362_v60 = vmul.f32 -1.442695, %v3364_v11 }
 0x736   :  { %2583 = vpow2.f32 %v2365_v28  ;;  %v3451_v28 = vld [vmem:[%s4244_s9 + $0x68] sm:$0xff] }
 0x737   :  { %2585 = vpow2.f32 %v2364_v56  ;;  %v3457_v56 = vld [vmem:[%s4244_s9 + $0x60] sm:$0xff] }
 0x738   :  { %2587 = vpow2.f32 %v2363_v57  ;;  %v3463_v57 = vld [vmem:[%s4241_s1 + $0x10] sm:$0xff] }
 0x739   :  { %2589 = vpow2.f32 %v2362_v60  ;;  %v3470_v60 = vld [vmem:[%s4241_s1 + $0x30] sm:$0xff] }
 0x73c   :  { %v2584_v0 = vpop.eup %2583 }
 0x73d   :  { %v2586_v37 = vpop.eup %2585  ;;  %v990_v62 = vadd.f32 1.0, %v2584_v0  ;;  %v3477_v0 = vld [vmem:[%s4244_s9 + $0x58] sm:$0xff] }
 0x73e   :  { %v2588_v3 = vpop.eup %2587  ;;  %v989_v12 = vadd.f32 1.0, %v2586_v37  ;;  %v3483_v37 = vld [vmem:[%s4244_s9 + $0x50] sm:$0xff] }
 0x73f   :  { %v2590_v42 = vpop.eup %2589  ;;  %2591 = vrcp.f32 %v990_v62  ;;  %v988_v13 = vadd.f32 1.0, %v2588_v3  ;;  %v1045_v16 = vand.u32 2147483647, %v990_v62  ;;  %v1047_v59 = vand.u32 2147483648, %v990_v62  ;;  %v3495_v3 = vld [vmem:[%s4244_s9 + $0x40] sm:$0xff] }
 0x740   :  { %2593 = vrcp.f32 %v989_v12  ;;  %v987_v14 = vadd.f32 1.0, %v2590_v42  ;;  %v1030_v24 = vand.u32 2147483647, %v989_v12  ;;  %v1032_v20 = vand.u32 2147483648, %v989_v12  ;;  %v3508_v42 = vld [vmem:[%s4241_s1 + $0x38] sm:$0xff] }
 0x741   :  { %2595 = vrcp.f32 %v988_v13  ;;  %vm1041_vm10 = vweird.f32 %v990_v62  ;;  %vm3370_vm11 = vcmp.eq.f32.partialorder %v1045_v16, 8.507059e+37  ;;  %vm1026_vm12 = vweird.f32 %v989_v12  ;;  %v3524_v16 = vld [vmem:[%s4244_s9 + $0x38] sm:$0xff] }
 0x742   :  { %2597 = vrcp.f32 %v987_v14  ;;  %v1048_v34 = vor.u32 1.1754944e-38, %v1047_v59  ;;  %vm3374_vm15 = vcmp.eq.f32.partialorder %v1030_v24, 8.507059e+37  ;;  %v1033_v30 = vor.u32 1.1754944e-38, %v1032_v20  ;;  %v2404_v59 = vld [vmem:[%s4242_s3 + $0x3e8] sm:$0xff]  ;;  %v2383_v24 = vld [vmem:[%s4242_s3 + $0x360] sm:$0xff] }
 0x743   :  { %v1015_v43 = vand.u32 2147483647, %v988_v13  ;;  %v1017_v44 = vand.u32 2147483648, %v988_v13  ;;  %v1000_v47 = vand.u32 2147483647, %v987_v14  ;;  %v1002_v1 = vand.u32 2147483648, %v987_v14 }
 0x744   :  { %vm1011_vm6 = vweird.f32 %v988_v13  ;;  %vm996_vm8 = vweird.f32 %v987_v14  ;;  %v3551_v20 = vld [vmem:[%s4244_s9 + $0x28] sm:$0xff] }
 0x745   :  { %v2592_v15 = vpop.eup %2591  ;;  %v1018_v10 = vor.u32 1.1754944e-38, %v1017_v44  ;;  %vm1016_vm9 = vcmp.eq.f32.partialorder %v1015_v43, 8.507059e+37  ;;  %v1003_v17 = vor.u32 1.1754944e-38, %v1002_v1  ;;  %v2378_v43 = vld [vmem:[%s4242_s3 + $0x338] sm:$0xff]  ;;  %v3618_v44 = vld [vmem:[%s4244_s9] sm:$0xff]  ;;  %v2396_v1 = vld [vmem:[%s4242_s3 + $0x3a8] sm:$0xff] }
 0x746   :  { %v2594_v21 = vpop.eup %2593  ;;  %v1037_v22 = vmul.f32 %v2592_v15, %v990_v62  ;;  %vm1042_vm13 = vweird.f32 %v2592_v15  ;;  %v3489_v62 = vld [vmem:[%s4244_s9 + $0x48] sm:$0xff] }
 0x747   :  { %v1022_v23 = vmul.f32 %v2594_v21, %v989_v12  ;;  %v2596_v26 = vpop.eup %2595  ;;  %vm1027_vm14 = vweird.f32 %v2594_v21  ;;  %vm1043_vm2 = vmor %vm1041_vm10, %vm1042_vm13  ;;  %v3501_v12 = vld [vmem:[%s4241_s1 + $0x18] sm:$0xff] }
 0x748   :  { %v1038_v25 = vsub.f32 1.0, %v1037_v22  ;;  %v2598_v32 = vpop.eup %2597  ;;  %v1007_v36 = vmul.f32 %v2596_v26, %v988_v13  ;;  %vm1028_vm3 = vmor %vm1026_vm12, %vm1027_vm14  ;;  %vm1012_vm4 = vweird.f32 %v2596_v26  ;;  %v2386_v13 = vld [vmem:[%s4242_s3 + $0x378] sm:$0xff]  ;;  %v2405_v22 = vld [vmem:[%s4242_s3 + $0x3f0] sm:$0xff] }
 0x749   :  { %v1023_v31 = vsub.f32 1.0, %v1022_v23  ;;  %v992_v63 = vmul.f32 %v2598_v32, %v987_v14  ;;  %vm997_vm5 = vweird.f32 %v2598_v32  ;;  %vm1013_vm7 = vmor %vm1011_vm6, %vm1012_vm4  ;;  %v2385_v14 = vld [vmem:[%s4242_s3 + $0x370] sm:$0xff]  ;;  %1103 = vmatpush.msrb.mxu1 %v2386_v13 }
 0x74a   :  { %v1039_v33 = vmul.f32 %v2592_v15, %v1038_v25  ;;  %v1008_v18 = vsub.f32 1.0, %v1007_v36  ;;  %vm998_vm10 = vmor %vm996_vm8, %vm997_vm5  ;;  %v3539_v23 = vld [vmem:[%s4244_s9 + $0x30] sm:$0xff]  ;;  %v2403_v25 = vld [vmem:[%s4242_s3 + $0x3e0] sm:$0xff] }
 0x74b   :  { %v1024_v40 = vmul.f32 %v2594_v21, %v1023_v31  ;;  %v993_v35 = vsub.f32 1.0, %v992_v63  ;;  %1104 = vmatpush.msrb.mxu1 %v2385_v14  ;;  %v3563_v31 = vld [vmem:[%s4244_s9 + $0x20] sm:$0xff]  ;;  %v3582_v36 = vld [vmem:[%s4244_s9 + $0x18] sm:$0xff]  ;;  %v3594_v63 = vld [vmem:[%s4244_s9 + $0x10] sm:$0xff] }
 0x74c   :  { %v1040_v41 = vadd.f32 %v2592_v15, %v1039_v33  ;;  %v1009_v52 = vmul.f32 %v2596_v26, %v1008_v18  ;;  %v2381_v33 = vld [vmem:[%s4242_s3 + $0x350] sm:$0xff]  ;;  %v3606_v18 = vld [vmem:[%s4244_s9 + $0x8] sm:$0xff]  ;;  %v2391_v14 = vld [vmem:[%s4242_s3 + $0x380] sm:$0xff] }
 0x74d   :  { %v1025_v2 = vadd.f32 %v2594_v21, %v1024_v40  ;;  %v994_v5 = vmul.f32 %v2598_v32, %v993_v35  ;;  %v2380_v40 = vld [vmem:[%s4242_s3 + $0x348] sm:$0xff]  ;;  %v2425_v13 = vld [vmem:[%s4242_s3 + $0x470] sm:$0xff] }
 0x74e   :  { %v1044_v48 = vsel %vm1043_vm2, %v2592_v15, %v1040_v41  ;;  %v1010_v7 = vadd.f32 %v2596_v26, %v1009_v52  ;;  %v2406_v15 = vld [vmem:[%s4242_s3 + $0x3f8] sm:$0xff]  ;;  %v2379_v41 = vld [vmem:[%s4242_s3 + $0x340] sm:$0xff]  ;;  %v3624_v35 = vld [vmem:[%s4241_s1 + $0x48] sm:$0xff] }
 0x74f   :  { %v1049_v61 = vsel %vm3370_vm11, %v1048_v34, %v1044_v48  ;;  %v1029_v4 = vsel %vm1028_vm3, %v2594_v21, %v1025_v2  ;;  %v995_v53 = vadd.f32 %v2598_v32, %v994_v5  ;;  %vm1001_vm11 = vcmp.eq.f32.partialorder %v1000_v47, 8.507059e+37  ;;  %v2384_v21 = vld [vmem:[%s4242_s3 + $0x368] sm:$0xff]  ;;  %1185 = vmatpush.msrb.mxu3 %v2406_v15  ;;  %v2401_v34 = vld [vmem:[%s4242_s3 + $0x3d0] sm:$0xff]  ;;  %v2398_v2 = vld [vmem:[%s4242_s3 + $0x3b8] sm:$0xff] }
 0x750   :  { %v3383_v6 = vmul.f32 %v1049_v61, %v3349_v50  ;;  %v1034_v8 = vsel %vm3374_vm15, %v1033_v30, %v1029_v4  ;;  %v1014_v55 = vsel %vm1013_vm7, %v2596_v26, %v1010_v7  ;;  %1105 = vmatpush.msrb.mxu1 %v2384_v21  ;;  %v2382_v26 = vld [vmem:[%s4242_s3 + $0x358] sm:$0xff]  ;;  %v2399_v30 = vld [vmem:[%s4242_s3 + $0x3c0] sm:$0xff]  ;;  %v2377_v47 = vld [vmem:[%s4242_s3 + $0x330] sm:$0xff] }
 0x751   :  { %v3390_v54 = vmul.f32 %v1034_v8, %v3354_v38  ;;  %v1019_v29 = vsel %vm1016_vm9, %v1018_v10, %v1014_v55  ;;  %v999_v49 = vsel %vm998_vm10, %v2598_v32, %v995_v53  ;;  %v3414_v38 = vld [vmem:[%s4241_s1 + $0x20] sm:$0xff]  ;;  %1186 = vmatpush.msrb.mxu3 %v2405_v22  ;;  %v2397_v48 = vld [vmem:[%s4242_s3 + $0x3b0] sm:$0xff]  ;;  %v2376_v52 = vld [vmem:[%s4242_s3 + $0x328] sm:$0xff] }
 0x752   :  { %1069 = vmatpush.msra.mxu0 %v3383_v6  ;;  %1151 = vmatpush.msrb.mxu2 %v3383_v6  ;;  %v3395_v9 = vmul.f32 %v1019_v29, %v3359_v45  ;;  %v1004_v19 = vsel %vm1001_vm11, %v1003_v17, %v999_v49  ;;  %v3432_v45 = vld [vmem:[%s4241_s1 + $0x28] sm:$0xff]  ;;  %v3569_v32 = vld [vmem:[%s4241_s1 + $0x40] sm:$0xff]  ;;  %v2374_v5 = vld [vmem:[%s4242_s3 + $0x318] sm:$0xff] }
 0x753   :  { %v3400_v50 = vmul.f32 %v1004_v19, %v3364_v11  ;;  %v3445_v11 = vld [vmem:[%s4244_s9 + $0x70] sm:$0xff]  ;;  %1187 = vmatpush.msrb.mxu3 %v2404_v59  ;;  %1106 = vmatpush.msrb.mxu1 %v2383_v24  ;;  %v2375_v61 = vld [vmem:[%s4242_s3 + $0x320] sm:$0xff]  ;;  %v2372_v10 = vld [vmem:[%s4242_s3 + $0x308] sm:$0xff] }
 0x754   :  { %1070 = vmatpush.msra.mxu0 %v3390_v54  ;;  %1152 = vmatpush.msrb.mxu2 %v3390_v54  ;;  %4263 = vst [vmem:[#allocation2_spill] sm:$0xff] %v3395_v9  ;;  %v2395_v4 = vld [vmem:[%s4242_s3 + $0x3a0] sm:$0xff]  ;;  %v3652_v8 = vld [vmem:[%s4241_s1 + $0x50] sm:$0xff]  ;;  %v3665_v53 = vld [vmem:[%s4241_s1 + $0x58] sm:$0xff] }
 0x755   :  { %4264 = vst [vmem:[#allocation3_spill] sm:$0xff] %v3400_v50  ;;  %1188 = vmatpush.msrb.mxu3 %v2403_v25  ;;  %1107 = vmatpush.msrb.mxu1 %v2382_v26  ;;  %v2373_v7 = vld [vmem:[%s4242_s3 + $0x310] sm:$0xff]  ;;  %v2371_v55 = vld [vmem:[%s4242_s3 + $0x300] sm:$0xff]  ;;  %v2394_v17 = vld [vmem:[%s4242_s3 + $0x398] sm:$0xff] }
 0x756   :  { %1071 = vmatpush.msra.mxu0 %v3395_v9  ;;  %1153 = vmatpush.msrb.mxu2 %v3395_v9  ;;  %v2393_v29 = vld [vmem:[%s4242_s3 + $0x390] sm:$0xff]  ;;  %v2426_v49 = vld [vmem:[%s4242_s3 + $0x478] sm:$0xff]  ;;  %v2392_v19 = vld [vmem:[%s4242_s3 + $0x388] sm:$0xff] }
 0x757   :  { %1189 = vmatpush.msrb.mxu3 %v2402_v27  ;;  %1108 = vmatpush.msrb.mxu1 %v2381_v33  ;;  %v2424_v15 = vld [vmem:[%s4242_s3 + $0x468] sm:$0xff]  ;;  %v2423_v21 = vld [vmem:[%s4242_s3 + $0x460] sm:$0xff]  ;;  %v2422_v59 = vld [vmem:[%s4242_s3 + $0x458] sm:$0xff] }
 0x758   :  { %1072 = vmatpush.msra.mxu0 %v3400_v50  ;;  %1154 = vmatpush.msrb.mxu2 %v3400_v50  ;;  %v3703_v22 = vld [vmem:[%s4245_s10] sm:$0xff]  ;;  %v2421_v24 = vld [vmem:[%s4242_s3 + $0x450] sm:$0xff]  ;;  %v2420_v25 = vld [vmem:[%s4242_s3 + $0x448] sm:$0xff] }
 0x759   :  { %2367 = vmatmul.msk.f32.vlgmr.msra.gmra.mxu0 %vm49_vm0, %v3407_v51  ;;  %2387 = vmatmul.msk.f32.vlgmr.msrb.gmra.mxu2 %vm49_vm0, %v3414_v38  ;;  %v2419_v26 = vld [vmem:[%s4242_s3 + $0x440] sm:$0xff]  ;;  %v2418_v27 = vld [vmem:[%s4242_s3 + $0x438] sm:$0xff]  ;;  %v2417_v33 = vld [vmem:[%s4242_s3 + $0x430] sm:$0xff] }
 0x75a   :  { %1230 = vmatpush.msrb.mxu0 %v3383_v6  ;;  %1190 = vmatpush.msrb.mxu3 %v2401_v34  ;;  %v2416_v34 = vld [vmem:[%s4242_s3 + $0x428] sm:$0xff] }
 0x75b   :  { %1109 = vmatpush.msrb.mxu1 %v2380_v40  ;;  %1264 = vmatpush.msra.mxu2 %v2426_v49  ;;  %v2415_v40 = vld [vmem:[%s4242_s3 + $0x420] sm:$0xff] }
 0x75c   :  { %1231 = vmatpush.msrb.mxu0 %v3390_v54  ;;  %1191 = vmatpush.msrb.mxu3 %v2400_v58  ;;  %v2414_v58 = vld [vmem:[%s4242_s3 + $0x418] sm:$0xff] }
 0x75d   :  { %1110 = vmatpush.msrb.mxu1 %v2379_v41  ;;  %1265 = vmatpush.msra.mxu2 %v2425_v13  ;;  %v2413_v41 = vld [vmem:[%s4242_s3 + $0x410] sm:$0xff] }
 0x75e   :  { %1232 = vmatpush.msrb.mxu0 %v3395_v9  ;;  %1192 = vmatpush.msrb.mxu3 %v2399_v30  ;;  %v2412_v30 = vld [vmem:[%s4242_s3 + $0x408] sm:$0xff] }
 0x75f   :  { %1111 = vmatpush.msrb.mxu1 %v2378_v43  ;;  %1266 = vmatpush.msra.mxu2 %v2424_v15 }
 0x760   :  { %1233 = vmatpush.msrb.mxu0 %v3400_v50  ;;  %1193 = vmatpush.msrb.mxu3 %v2398_v2  ;;  %v2411_v2 = vld [vmem:[%s4242_s3 + $0x400] sm:$0xff] }
 0x761   :  { %2368 = vmatmul.msk.f32.gmra.mxu0 %vm49_vm0, %v3425_v39  ;;  %2388 = vmatmul.msk.f32.gmra.mxu2 %vm49_vm0, %v3432_v45 }
 0x762   :  { %1368 = vmatpush.msra.mxu0 %v3439_v46  ;;  %1112 = vmatpush.msrb.mxu1 %v2377_v47 }
 0x763   :  { %1194 = vmatpush.msrb.mxu3 %v2397_v48  ;;  %1267 = vmatpush.msra.mxu2 %v2423_v21 }
 0x764   :  { %1369 = vmatpush.msra.mxu0 %v3445_v11  ;;  %1113 = vmatpush.msrb.mxu1 %v2376_v52 }
 0x765   :  { %1195 = vmatpush.msrb.mxu3 %v2396_v1  ;;  %1268 = vmatpush.msra.mxu2 %v2422_v59 }
 0x766   :  { %1370 = vmatpush.msra.mxu0 %v3451_v28  ;;  %1114 = vmatpush.msrb.mxu1 %v2375_v61 }
 0x767   :  { %1196 = vmatpush.msrb.mxu3 %v2395_v4  ;;  %1269 = vmatpush.msra.mxu2 %v2421_v24  ;;  %v2556_v24 = vld [vmem:[%s4243_s5 + $0x2] ss:$0 sm:$0xff] }
 0x768   :  { %1371 = vmatpush.msra.mxu0 %v3457_v56  ;;  %1115 = vmatpush.msrb.mxu1 %v2374_v5 }
 0x769   :  { %2369 = vmatmul.msk.f32.gmra.mxu0 %vm49_vm0, %v3463_v57  ;;  %2389 = vmatmul.msk.f32.gmra.mxu2 %vm49_vm0, %v3470_v60 }
 0x76a   :  { %1372 = vmatpush.msra.mxu0 %v3477_v0  ;;  %1116 = vmatpush.msrb.mxu1 %v2373_v7 }
 0x76b   :  { %1197 = vmatpush.msrb.mxu3 %v2394_v17  ;;  %1270 = vmatpush.msra.mxu2 %v2420_v25 }
 0x76c   :  { %1373 = vmatpush.msra.mxu0 %v3483_v37  ;;  %1117 = vmatpush.msrb.mxu1 %v2372_v10 }
 0x76d   :  { %1198 = vmatpush.msrb.mxu3 %v2393_v29  ;;  %1271 = vmatpush.msra.mxu2 %v2419_v26 }
 0x76e   :  { %1374 = vmatpush.msra.mxu0 %v3489_v62  ;;  %1118 = vmatpush.msrb.mxu1 %v2371_v55 }
 0x76f   :  { %1199 = vmatpush.msrb.mxu3 %v2392_v19  ;;  %1272 = vmatpush.msra.mxu2 %v2418_v27 }
 0x770   :  { %1375 = vmatpush.msra.mxu0 %v3495_v3  ;;  %1306 = vmatpush.msra.mxu1 %v3439_v46 }
 0x771   :  { %2370 = vmatmul.msk.f32.gmra.mxu0 %vm49_vm0, %v3501_v12  ;;  %2390 = vmatmul.msk.f32.gmra.mxu2 %vm49_vm0, %v3508_v42 }
 0x772   :  { %1376 = vmatpush.msra.mxu0 %v3524_v16  ;;  %1307 = vmatpush.msra.mxu1 %v3445_v11 }
 0x773   :  { %1200 = vmatpush.msrb.mxu3 %v2391_v14  ;;  %1273 = vmatpush.msra.mxu2 %v2417_v33 }
 0x774   :  { %1377 = vmatpush.msra.mxu0 %v3539_v23  ;;  %1308 = vmatpush.msra.mxu1 %v3451_v28 }
 0x775   :  { %1345 = vmatpush.msra.mxu3 %v3703_v22  ;;  %1274 = vmatpush.msra.mxu2 %v2416_v34 }
 0x776   :  { %1378 = vmatpush.msra.mxu0 %v3551_v20  ;;  %1309 = vmatpush.msra.mxu1 %v3457_v56 }
 0x777   :  { %1275 = vmatpush.msra.mxu2 %v2415_v40 }
 0x778   :  { %1379 = vmatpush.msra.mxu0 %v3563_v31  ;;  %1310 = vmatpush.msra.mxu1 %v3477_v0 }
 0x779   :  { %2407 = vmatmul.msk.f32.vlgmr.msrb.gmra.mxu0 %vm49_vm0, %v3569_v32  ;;  %1276 = vmatpush.msra.mxu2 %v2414_v58 }
 0x77a   :  { %1380 = vmatpush.msra.mxu0 %v3582_v36  ;;  %1311 = vmatpush.msra.mxu1 %v3483_v37 }
 0x77b   :  { %1277 = vmatpush.msra.mxu2 %v2413_v41 }
 0x77c   :  { %1381 = vmatpush.msra.mxu0 %v3594_v63  ;;  %1312 = vmatpush.msra.mxu1 %v3489_v62 }
 0x77d   :  { %1278 = vmatpush.msra.mxu2 %v2412_v30 }
 0x77e   :  { %1382 = vmatpush.msra.mxu0 %v3606_v18  ;;  %1313 = vmatpush.msra.mxu1 %v3495_v3 }
 0x77f   :  { %1279 = vmatpush.msra.mxu2 %v2411_v2 }
 0x780   :  { %1383 = vmatpush.msra.mxu0 %v3618_v44  ;;  %1314 = vmatpush.msra.mxu1 %v3524_v16 }
 0x781   :  { %2408 = vmatmul.msk.f32.gmra.mxu0 %vm49_vm0, %v3624_v35 }
 0x782   :  { %1315 = vmatpush.msra.mxu1 %v3539_v23 }
 0x784   :  { %1316 = vmatpush.msra.mxu1 %v3551_v20 }
 0x786   :  { %1317 = vmatpush.msra.mxu1 %v3563_v31 }
 0x788   :  { %1318 = vmatpush.msra.mxu1 %v3582_v36 }
 0x789   :  { %2409 = vmatmul.msk.f32.gmra.mxu0 %vm49_vm0, %v3652_v8 }
 0x78a   :  { %1319 = vmatpush.msra.mxu1 %v3594_v63 }
 0x78c   :  { %1320 = vmatpush.msra.mxu1 %v3606_v18 }
 0x78e   :  { %1321 = vmatpush.msra.mxu1 %v3618_v44 }
 0x791   :  { %2410 = vmatmul.msk.f32.gmra.mxu0 %vm49_vm0, %v3665_v53 }
 0x7d6   :  { %v1074_v43 = vpop.f32.mrf.mxu0 }
 0x7d7   :  { %1119 = vmatmul.f32.vlgmr.msrb.gmra.mxu1 %v1074_v43 }
 0x7d8   :  { %1418 = vmatpush.msrb.mxu1 %v3703_v22 }
 0x7dc   :  { %v1156_v47 = vpop.f32.mrf.mxu2 }
 0x7dd   :  { %1201 = vmatmul.f32.vlgmr.msrb.gmra.mxu3 %v1156_v47 }
 0x7de   :  { %v1077_v48 = vpop.f32.mrf.mxu0 }
 0x7df   :  { %1122 = vmatmul.f32.gmra.mxu1 %v1077_v48 }
 0x7e4   :  { %v1159_v52 = vpop.f32.mrf.mxu2 }
 0x7e5   :  { %1204 = vmatmul.f32.gmra.mxu3 %v1159_v52 }
 0x7e6   :  { %v1080_v1 = vpop.f32.mrf.mxu0 }
 0x7e7   :  { %1125 = vmatmul.f32.gmra.mxu1 %v1080_v1 }
 0x7ec   :  { %v1162_v61 = vpop.f32.mrf.mxu2 }
 0x7ed   :  { %1207 = vmatmul.f32.gmra.mxu3 %v1162_v61 }
 0x7ee   :  { %v1083_v4 = vpop.f32.mrf.mxu0 }
 0x7ef   :  { %1128 = vmatmul.f32.gmra.mxu1 %v1083_v4 }
 0x7f4   :  { %v1165_v5 = vpop.f32.mrf.mxu2 }
 0x7f5   :  { %1210 = vmatmul.f32.gmra.mxu3 %v1165_v5 }
 0x7f6   :  { %v1235_v7 = vpop.f32.mrf.mxu0 }
 0x7f7   :  { %1280 = vmatmul.f32.vlgmr.msra.gmra.mxu2 %v1235_v7 }
 0x7fe   :  { %v1238_v10 = vpop.f32.mrf.mxu0 }
 0x7ff   :  { %1283 = vmatmul.f32.gmra.mxu2 %v1238_v10 }
 0x806   :  { %v1241_v55 = vpop.f32.mrf.mxu0 }
 0x807   :  { %1286 = vmatmul.f32.gmra.mxu2 %v1241_v55 }
 0x80e   :  { %v1244_v17 = vpop.f32.mrf.mxu0 }
 0x80f   :  { %1289 = vmatmul.f32.gmra.mxu2 %v1244_v17 }
 0x854   :  { %v1120_v29 = vpop.f32.mrf.mxu1 }
 0x855   :  { %v1135_v27 = vadd.f32 %v2556_v24, %v1120_v29 }
 0x85c   :  { %v1123_v19 = vpop.f32.mrf.mxu1 }
 0x85d   :  { %v1136_v25 = vadd.f32 %v2556_v24, %v1123_v19 }
 0x860   :  { %v1202_v49 = vpop.f32.mrf.mxu3 }
 0x861   :  { %v1214_v58 = vadd.f32 %v1202_v49, %v1135_v27 }
 0x864   :  { %v1126_v15 = vpop.f32.mrf.mxu1 }
 0x865   :  { %v1137_v33 = vadd.f32 %v2556_v24, %v1126_v15 }
 0x868   :  { %v1205_v13 = vpop.f32.mrf.mxu3 }
 0x869   :  { %v1215_v34 = vadd.f32 %v1205_v13, %v1136_v25 }
 0x86c   :  { %v1129_v40 = vpop.f32.mrf.mxu1 }
 0x86d   :  { %v1138_v2 = vadd.f32 %v2556_v24, %v1129_v40 }
 0x870   :  { %v1208_v59 = vpop.f32.mrf.mxu3 }
 0x871   :  { %v1216_v41 = vadd.f32 %v1208_v59, %v1137_v33 }
 0x878   :  { %v1211_v43 = vpop.f32.mrf.mxu3 }
 0x879   :  { %v1217_v52 = vadd.f32 %v1211_v43, %v1138_v2 }
 0x87a   :  { %v1281_v14 = vpop.f32.mrf.mxu2 }
 0x87b   :  { %v1293_v47 = vadd.f32 %v1281_v14, %v1214_v58 }
 0x882   :  { %v1284_v21 = vpop.f32.mrf.mxu2 }
 0x883   :  { %v1294_v30 = vadd.f32 %v1284_v21, %v1215_v34 }
 0x885   :  { %v1297_v1 = vadd.f32 %v1294_v30, %v1293_v47 }
 0x88a   :  { %v1287_v26 = vpop.f32.mrf.mxu2 }
 0x88b   :  { %v1295_v48 = vadd.f32 %v1287_v26, %v1216_v41 }
 0x88d   :  { %v1298_v4 = vadd.f32 %v1297_v1, %v1295_v48 }
 0x892   :  { %v1290_v61 = vpop.f32.mrf.mxu2 }
 0x893   :  { %v1296_v5 = vadd.f32 %v1290_v61, %v1217_v52 }
 0x895   :  { %v1299_v7 = vadd.f32 %v1298_v4, %v1296_v5 }
 0x897   :  { %v1300_v10 = vrot.slane %v1299_v7, 4 }
 0x899   :  { %v1301_v55 = vadd.f32 %v1300_v10, %v1299_v7 }
 0x89b   :  { %v1302_v17 = vrot.slane %v1301_v55, 2 }
 0x89d   :  { %v1303_v29 = vadd.f32 %v1302_v17, %v1301_v55 }
 0x89f   :  { %v1304_v19 = vrot.slane %v1303_v29, 1 }
 0x8a1   :  { %v1305_v13 = vadd.f32 %v1304_v19, %v1303_v29 }
 0x8a3   :  { %1322 = vmatmul.f32.vlgmr.msra.gmra.mxu1 %v1305_v13 }
 0x920   :  { %v1323_v49 = vpop.f32.mrf.mxu1 }
 0x921   :  { %v1326_v15 = vmul.f32 0.001953125, %v1323_v49 }
 0x923   :  { %2427 = vmatmul.msk.f32.vlgmr.msra.gmra.mxu3 %vm382_vm1, %v1326_v15 }
 0x9a6   :  { %v1347_v21 = vpop.f32.mrf.mxu3 }
 0x9a7   :  { %v1350_v14 = vperm.slane %v1347_v21, 0  ;;  %v2557_v21 = vld [vmem:[%s4246_s7 + $0x2] ss:$0 sm:$0xff] }
 0x9a9   :  { %v1351_v59 = vsub.f32 %v1293_v47, %v1350_v14  ;;  %v1352_v24 = vsub.f32 %v1294_v30, %v1350_v14  ;;  %v1353_v25 = vsub.f32 %v1295_v48, %v1350_v14  ;;  %v1354_v26 = vsub.f32 %v1296_v5, %v1350_v14 }
 0x9ab   :  { %v1355_v27 = vmul.f32 %v1351_v59, %v1351_v59  ;;  %v1356_v33 = vmul.f32 %v1352_v24, %v1352_v24  ;;  %v1357_v34 = vmul.f32 %v1353_v25, %v1353_v25  ;;  %v1358_v58 = vmul.f32 %v1354_v26, %v1354_v26 }
 0x9ad   :  { %v1359_v40 = vadd.f32 %v1356_v33, %v1355_v27 }
 0x9af   :  { %v1360_v41 = vadd.f32 %v1359_v40, %v1357_v34  ;;  %v2558_v40 = vld [vmem:[%s4247_s8 + $0x2] ss:$0 sm:$0xff] }
 0x9b1   :  { %v1361_v43 = vadd.f32 %v1360_v41, %v1358_v58 }
 0x9b3   :  { %v1362_v2 = vrot.slane %v1361_v43, 4 }
 0x9b5   :  { %v1363_v52 = vadd.f32 %v1362_v2, %v1361_v43 }
 0x9b7   :  { %v1364_v1 = vrot.slane %v1363_v52, 2 }
 0x9b9   :  { %v1365_v61 = vadd.f32 %v1364_v1, %v1363_v52 }
 0x9bb   :  { %v1366_v4 = vrot.slane %v1365_v61, 1 }
 0x9bd   :  { %v1367_v7 = vadd.f32 %v1366_v4, %v1365_v61 }
 0x9bf   :  { %1384 = vmatmul.f32.vlgmr.msra.gmra.mxu0 %v1367_v7 }
 0xa3c   :  { %v1385_v10 = vpop.f32.mrf.mxu0 }
 0xa3d   :  { %v1388_v55 = vmul.f32 0.001953125, %v1385_v10 }
 0xa3f   :  { %v1389_v47 = vadd.f32 1e-05, %v1388_v55 }
 0xa41   :  { %2599 = vrsqrt.f32 %v1389_v47  ;;  %vm1396_vm13 = vweird.f32 %v1389_v47 }
 0xa47   :  { %v2600_v30 = vpop.eup %2599 }
 0xa48   :  { %v1391_v48 = vmul.f32 %v2600_v30, %v1389_v47  ;;  %vm1397_vm12 = vweird.f32 %v2600_v30 }
 0xa49   :  { %vm1398_vm14 = vmor %vm1396_vm13, %vm1397_vm12 }
 0xa4a   :  { %v1392_v5 = vmul.f32 %v2600_v30, %v1391_v48 }
 0xa4c   :  { %v1393_v17 = vmul.f32 0.5, %v1392_v5 }
 0xa4e   :  { %v1394_v29 = vsub.f32 1.5, %v1393_v17 }
 0xa50   :  { %v1395_v19 = vmul.f32 %v2600_v30, %v1394_v29 }
 0xa52   :  { %v1399_v13 = vsel %vm1398_vm14, %v2600_v30, %v1395_v19 }
 0xa53   :  { %2428 = vmatmul.msk.f32.vlgmr.msrb.gmra.mxu1 %vm382_vm1, %v1399_v13 }
 0xad0   :  { %v1420_v49 = vpop.f32.mrf.mxu1 }
 0xad1   :  { %v1423_v15 = vperm.slane %v1420_v49, 0 }
 0xad3   :  { %v1424_v14 = vmul.f32 %v1423_v15, %v1351_v59  ;;  %v1425_v27 = vmul.f32 %v1423_v15, %v1352_v24  ;;  %v1426_v33 = vmul.f32 %v1423_v15, %v1353_v25  ;;  %v1427_v34 = vmul.f32 %v1423_v15, %v1354_v26 }
 0xad5   :  { %v1436_v58 = vmul.f32 %v2557_v21, %v1427_v34  ;;  %v1435_v41 = vmul.f32 %v2557_v21, %v1426_v33  ;;  %v1434_v43 = vmul.f32 %v2557_v21, %v1425_v27  ;;  %v1433_v2 = vmul.f32 %v2557_v21, %v1424_v14 }
 0xad7   :  { %v3766_v52 = vadd.f32 %v2558_v40, %v1436_v58  ;;  %v3768_v1 = vadd.f32 %v2558_v40, %v1435_v41  ;;  %v3770_v61 = vadd.f32 %v2558_v40, %v1434_v43  ;;  %v3772_v4 = vadd.f32 %v2558_v40, %v1433_v2 }
 0xad9   :  { %v2434_v59 = vmul.f32 -1.442695, %v3766_v52  ;;  %v2433_v24 = vmul.f32 -1.442695, %v3768_v1  ;;  %v2432_v25 = vmul.f32 -1.442695, %v3770_v61 }
 0xada   :  { %v2431_v26 = vmul.f32 -1.442695, %v3772_v4 }
 0xadb   :  { %2601 = vpow2.f32 %v2434_v59 }
 0xadc   :  { %2603 = vpow2.f32 %v2433_v24 }
 0xadd   :  { %2605 = vpow2.f32 %v2432_v25  ;;  %v2468_v25 = vld [vmem:[%s4242_s3 + $0x540] sm:$0xff] }
 0xade   :  { %2607 = vpow2.f32 %v2431_v26 }
 0xae1   :  { %v2602_v7 = vpop.eup %2601 }
 0xae2   :  { %v2604_v10 = vpop.eup %2603  ;;  %v1461_v55 = vadd.f32 1.0, %v2602_v7 }
 0xae3   :  { %v2606_v47 = vpop.eup %2605  ;;  %v1460_v30 = vadd.f32 1.0, %v2604_v10 }
 0xae4   :  { %v2608_v48 = vpop.eup %2607  ;;  %2609 = vrcp.f32 %v1461_v55  ;;  %v1459_v5 = vadd.f32 1.0, %v2606_v47  ;;  %v1516_v19 = vand.u32 2147483647, %v1461_v55  ;;  %v1518_v15 = vand.u32 2147483648, %v1461_v55 }
 0xae5   :  { %2611 = vrcp.f32 %v1460_v30  ;;  %v1458_v17 = vadd.f32 1.0, %v2608_v48  ;;  %v1501_v14 = vand.u32 2147483647, %v1460_v30  ;;  %v1503_v33 = vand.u32 2147483648, %v1460_v30 }
 0xae6   :  { %2613 = vrcp.f32 %v1459_v5  ;;  %vm1512_vm15 = vweird.f32 %v1461_v55  ;;  %vm3778_vm2 = vcmp.eq.f32.partialorder %v1516_v19, 8.507059e+37  ;;  %vm1497_vm3 = vweird.f32 %v1460_v30 }
 0xae7   :  { %2615 = vrcp.f32 %v1458_v17  ;;  %v1519_v2 = vor.u32 1.1754944e-38, %v1518_v15  ;;  %vm3782_vm6 = vcmp.eq.f32.partialorder %v1501_v14, 8.507059e+37  ;;  %v1504_v10 = vor.u32 1.1754944e-38, %v1503_v33 }
 0xae8   :  { %v1486_v48 = vand.u32 2147483647, %v1459_v5  ;;  %v1473_v14 = vand.u32 2147483648, %v1458_v17  ;;  %vm1482_vm11 = vweird.f32 %v1459_v5  ;;  %vm1467_vm13 = vweird.f32 %v1458_v17 }
 0xaea   :  { %v2610_v29 = vpop.eup %2609  ;;  %vm1487_vm14 = vcmp.eq.f32.partialorder %v1486_v48, 8.507059e+37  ;;  %v2445_v48 = vld [vmem:[%s4242_s3 + $0x4a8] sm:$0xff] }
 0xaeb   :  { %v2612_v13 = vpop.eup %2611  ;;  %v1508_v49 = vmul.f32 %v2610_v29, %v1461_v55  ;;  %vm1513_vm4 = vweird.f32 %v2610_v29 }
 0xaec   :  { %v1493_v21 = vmul.f32 %v2612_v13, %v1460_v30  ;;  %v2614_v34 = vpop.eup %2613  ;;  %vm1498_vm5 = vweird.f32 %v2612_v13  ;;  %vm1514_vm7 = vmor %vm1512_vm15, %vm1513_vm4 }
 0xaed   :  { %v1509_v27 = vsub.f32 1.0, %v1508_v49  ;;  %v2616_v41 = vpop.eup %2615  ;;  %v1478_v59 = vmul.f32 %v2614_v34, %v1459_v5  ;;  %v1488_v49 = vand.u32 2147483648, %v1459_v5  ;;  %vm1499_vm8 = vmor %vm1497_vm3, %vm1498_vm5  ;;  %vm1483_vm9 = vweird.f32 %v2614_v34 }
 0xaee   :  { %v1494_v58 = vsub.f32 1.0, %v1493_v21  ;;  %v1463_v26 = vmul.f32 %v2616_v41, %v1458_v17  ;;  %vm1468_vm10 = vweird.f32 %v2616_v41  ;;  %vm1484_vm12 = vmor %vm1482_vm11, %vm1483_vm9 }
 0xaef   :  { %v1510_v43 = vmul.f32 %v2610_v29, %v1509_v27  ;;  %v1479_v47 = vsub.f32 1.0, %v1478_v59  ;;  %v1471_v27 = vand.u32 2147483647, %v1458_v17  ;;  %vm1469_vm15 = vmor %vm1467_vm13, %vm1468_vm10  ;;  %v2470_v17 = vld [vmem:[%s4242_s3 + $0x550] sm:$0xff] }
 0xaf0   :  { %v1495_v24 = vmul.f32 %v2612_v13, %v1494_v58  ;;  %v1464_v21 = vsub.f32 1.0, %v1463_v26  ;;  %v2447_v26 = vld [vmem:[%s4242_s3 + $0x4b8] sm:$0xff] }
 0xaf1   :  { %v1511_v7 = vadd.f32 %v2610_v29, %v1510_v43  ;;  %v1480_v15 = vmul.f32 %v2614_v34, %v1479_v47  ;;  %v2466_v47 = vld [vmem:[%s4242_s3 + $0x530] sm:$0xff] }
 0xaf2   :  { %v1496_v19 = vadd.f32 %v2612_v13, %v1495_v24  ;;  %v1465_v43 = vmul.f32 %v2616_v41, %v1464_v21  ;;  %v2442_v21 = vld [vmem:[%s4242_s3 + $0x490] sm:$0xff] }
 0xaf3   :  { %v1515_v50 = vsel %vm1514_vm7, %v2610_v29, %v1511_v7  ;;  %v1481_v59 = vadd.f32 %v2614_v34, %v1480_v15  ;;  %v1489_v29 = vor.u32 1.1754944e-38, %v1488_v49  ;;  %v2467_v7 = vld [vmem:[%s4242_s3 + $0x538] sm:$0xff]  ;;  %v2440_v15 = vld [vmem:[%s4242_s3 + $0x480] sm:$0xff] }
 0xaf4   :  { %v1520_v58 = vsel %vm3778_vm2, %v1519_v2, %v1515_v50  ;;  %v1500_v9 = vsel %vm1499_vm8, %v2612_v13, %v1496_v19  ;;  %v1466_v30 = vadd.f32 %v2616_v41, %v1465_v43  ;;  %v1474_v50 = vor.u32 1.1754944e-38, %v1473_v14  ;;  %v2444_v19 = vld [vmem:[%s4242_s3 + $0x4a0] sm:$0xff]  ;;  %v2443_v49 = vld [vmem:[%s4242_s3 + $0x498] sm:$0xff]  ;;  %v2494_v43 = vld [vmem:[%s4242_s3 + $0x5f0] sm:$0xff] }
 0xaf5   :  { %v1525_v33 = vmul.f32 %v1520_v58, %v3766_v52  ;;  %v1505_v55 = vsel %vm3782_vm6, %v1504_v10, %v1500_v9  ;;  %v1485_v40 = vsel %vm1484_vm12, %v2614_v34, %v1481_v59  ;;  %vm1472_vm2 = vcmp.eq.f32.partialorder %v1471_v27, 8.507059e+37  ;;  %v2449_v34 = vld [vmem:[%s4242_s3 + $0x4c8] sm:$0xff]  ;;  %v2446_v10 = vld [vmem:[%s4242_s3 + $0x4b0] sm:$0xff]  ;;  %v2463_v14 = vld [vmem:[%s4242_s3 + $0x518] sm:$0xff] }
 0xaf6   :  { %v1524_v24 = vmul.f32 %v1505_v55, %v3768_v1  ;;  %v1490_v13 = vsel %vm1487_vm14, %v1489_v29, %v1485_v40  ;;  %v1470_v2 = vsel %vm1469_vm15, %v2616_v41, %v1466_v30  ;;  %v2451_v1 = vld [vmem:[%s4242_s3 + $0x4d8] sm:$0xff]  ;;  %v2448_v41 = vld [vmem:[%s4242_s3 + $0x4c0] sm:$0xff]  ;;  %v2441_v27 = vld [vmem:[%s4242_s3 + $0x488] sm:$0xff] }
 0xaf7   :  { %1540 = vmatpush.msrb.mxu2 %v1525_v33  ;;  %1622 = vmatpush.msrb.mxu0 %v1525_v33  ;;  %v1523_v9 = vmul.f32 %v1490_v13, %v3770_v61  ;;  %v1475_v52 = vsel %vm1472_vm2, %v1474_v50, %v1470_v2  ;;  %v2471_v61 = vld [vmem:[%s4242_s3 + $0x558] sm:$0xff]  ;;  %v2461_v55 = vld [vmem:[%s4242_s3 + $0x508] sm:$0xff]  ;;  %v2492_v59 = vld [vmem:[%s4242_s3 + $0x5e0] sm:$0xff] }
 0xaf8   :  { %v1522_v5 = vmul.f32 %v1475_v52, %v3772_v4  ;;  %v2450_v4 = vld [vmem:[%s4242_s3 + $0x4d0] sm:$0xff]  ;;  %v2495_v58 = vld [vmem:[%s4242_s3 + $0x5f8] sm:$0xff]  ;;  %v2489_v29 = vld [vmem:[%s4242_s3 + $0x5c8] sm:$0xff] }
 0xaf9   :  { %1541 = vmatpush.msrb.mxu2 %v1524_v24  ;;  %1623 = vmatpush.msrb.mxu0 %v1524_v24  ;;  %v2486_v30 = vld [vmem:[%s4242_s3 + $0x5b0] sm:$0xff] }
 0xafb   :  { %1542 = vmatpush.msrb.mxu2 %v1523_v9  ;;  %1624 = vmatpush.msrb.mxu0 %v1523_v9 }
 0xafd   :  { %1543 = vmatpush.msrb.mxu2 %v1522_v5  ;;  %1625 = vmatpush.msrb.mxu0 %v1522_v5 }
 0xafe   :  { %2436 = vmatmul.msk.f32.vlgmr.msrb.gmra.mxu2 %vm49_vm0, %v3407_v51  ;;  %2456 = vmatmul.msk.f32.vlgmr.msrb.gmra.mxu0 %vm49_vm0, %v3414_v38  ;;  %v2455_v51 = vld [vmem:[%s4242_s3 + $0x4f8] sm:$0xff]  ;;  %v2454_v38 = vld [vmem:[%s4242_s3 + $0x4f0] sm:$0xff] }
 0xaff   :  { %1701 = vmatpush.msra.mxu2 %v1525_v33  ;;  %1574 = vmatpush.msrb.mxu3 %v2455_v51  ;;  %v2493_v33 = vld [vmem:[%s4242_s3 + $0x5e8] sm:$0xff] }
 0xb00   :  { %1735 = vmatpush.msra.mxu0 %v2495_v58 }
 0xb01   :  { %1702 = vmatpush.msra.mxu2 %v1524_v24  ;;  %1575 = vmatpush.msrb.mxu3 %v2454_v38  ;;  %v2480_v24 = vld [vmem:[%s4242_s3 + $0x580] sm:$0xff] }
 0xb02   :  { %1736 = vmatpush.msra.mxu0 %v2494_v43 }
 0xb03   :  { %1703 = vmatpush.msra.mxu2 %v1523_v9 }
 0xb04   :  { %1737 = vmatpush.msra.mxu0 %v2493_v33 }
 0xb05   :  { %1704 = vmatpush.msra.mxu2 %v1522_v5 }
 0xb06   :  { %2437 = vmatmul.msk.f32.gmra.mxu2 %vm49_vm0, %v3425_v39  ;;  %2457 = vmatmul.msk.f32.gmra.mxu0 %vm49_vm0, %v3432_v45  ;;  %v2475_v39 = vld [vmem:[%s4242_s3 + $0x578] sm:$0xff]  ;;  %v2453_v45 = vld [vmem:[%s4242_s3 + $0x4e8] sm:$0xff] }
 0xb07   :  { %1839 = vmatpush.msrb.mxu2 %v3439_v46  ;;  %1656 = vmatpush.msra.mxu1 %v2475_v39 }
 0xb08   :  { %1576 = vmatpush.msrb.mxu3 %v2453_v45  ;;  %1738 = vmatpush.msra.mxu0 %v2492_v59 }
 0xb09   :  { %1840 = vmatpush.msrb.mxu2 %v3445_v11 }
 0xb0b   :  { %1841 = vmatpush.msrb.mxu2 %v3451_v28 }
 0xb0d   :  { %1842 = vmatpush.msrb.mxu2 %v3457_v56 }
 0xb0e   :  { %2438 = vmatmul.msk.f32.gmra.mxu2 %vm49_vm0, %v3463_v57  ;;  %2458 = vmatmul.msk.f32.gmra.mxu0 %vm49_vm0, %v3470_v60  ;;  %v2474_v57 = vld [vmem:[%s4242_s3 + $0x570] sm:$0xff]  ;;  %v2473_v60 = vld [vmem:[%s4242_s3 + $0x568] sm:$0xff] }
 0xb0f   :  { %1843 = vmatpush.msrb.mxu2 %v3477_v0  ;;  %1657 = vmatpush.msra.mxu1 %v2474_v57 }
 0xb11   :  { %1844 = vmatpush.msrb.mxu2 %v3483_v37  ;;  %1658 = vmatpush.msra.mxu1 %v2473_v60 }
 0xb13   :  { %1845 = vmatpush.msrb.mxu2 %v3489_v62 }
 0xb15   :  { %1846 = vmatpush.msrb.mxu2 %v3495_v3 }
 0xb16   :  { %2439 = vmatmul.msk.f32.gmra.mxu2 %vm49_vm0, %v3501_v12  ;;  %2459 = vmatmul.msk.f32.gmra.mxu0 %vm49_vm0, %v3508_v42  ;;  %v2452_v12 = vld [vmem:[%s4242_s3 + $0x4e0] sm:$0xff] }
 0xb17   :  { %1847 = vmatpush.msrb.mxu2 %v3524_v16  ;;  %v2472_v42 = vld [vmem:[%s4242_s3 + $0x560] sm:$0xff]  ;;  %1577 = vmatpush.msrb.mxu3 %v2452_v12 }
 0xb18   :  { %1659 = vmatpush.msra.mxu1 %v2472_v42  ;;  %v2559_v12 = vld [vmem:[%s4243_s5 + $0x3] ss:$0 sm:$0xff] }
 0xb19   :  { %1848 = vmatpush.msrb.mxu2 %v3539_v23  ;;  %1578 = vmatpush.msrb.mxu3 %v2451_v1 }
 0xb1a   :  { %1660 = vmatpush.msra.mxu1 %v2471_v61 }
 0xb1b   :  { %1849 = vmatpush.msrb.mxu2 %v3551_v20  ;;  %1579 = vmatpush.msrb.mxu3 %v2450_v4 }
 0xb1c   :  { %1661 = vmatpush.msra.mxu1 %v2470_v17 }
 0xb1d   :  { %1850 = vmatpush.msrb.mxu2 %v3563_v31  ;;  %1580 = vmatpush.msrb.mxu3 %v2449_v34 }
 0xb1e   :  { %2476 = vmatmul.msk.f32.vlgmr.msra.gmra.mxu2 %vm49_vm0, %v3569_v32  ;;  %v2469_v32 = vld [vmem:[%s4242_s3 + $0x548] sm:$0xff] }
 0xb1f   :  { %1851 = vmatpush.msrb.mxu2 %v3582_v36  ;;  %1662 = vmatpush.msra.mxu1 %v2469_v32 }
 0xb20   :  { %1581 = vmatpush.msrb.mxu3 %v2448_v41 }
 0xb21   :  { %1852 = vmatpush.msrb.mxu2 %v3594_v63  ;;  %1663 = vmatpush.msra.mxu1 %v2468_v25 }
 0xb22   :  { %1582 = vmatpush.msrb.mxu3 %v2447_v26 }
 0xb23   :  { %1853 = vmatpush.msrb.mxu2 %v3606_v18  ;;  %1664 = vmatpush.msra.mxu1 %v2467_v7 }
 0xb24   :  { %1583 = vmatpush.msrb.mxu3 %v2446_v10 }
 0xb25   :  { %1854 = vmatpush.msrb.mxu2 %v3618_v44  ;;  %1665 = vmatpush.msra.mxu1 %v2466_v47 }
 0xb26   :  { %2477 = vmatmul.msk.f32.gmra.mxu2 %vm49_vm0, %v3624_v35  ;;  %v2465_v35 = vld [vmem:[%s4242_s3 + $0x528] sm:$0xff]  ;;  %1584 = vmatpush.msrb.mxu3 %v2445_v48 }
 0xb27   :  { %1666 = vmatpush.msra.mxu1 %v2465_v35 }
 0xb28   :  { %1585 = vmatpush.msrb.mxu3 %v2444_v19 }
 0xb2a   :  { %1586 = vmatpush.msrb.mxu3 %v2443_v49 }
 0xb2c   :  { %1587 = vmatpush.msrb.mxu3 %v2442_v21 }
 0xb2e   :  { %2478 = vmatmul.msk.f32.gmra.mxu2 %vm49_vm0, %v3652_v8  ;;  %1588 = vmatpush.msrb.mxu3 %v2441_v27  ;;  %v2464_v8 = vld [vmem:[%s4242_s3 + $0x520] sm:$0xff] }
 0xb2f   :  { %1667 = vmatpush.msra.mxu1 %v2464_v8 }
 0xb30   :  { %1589 = vmatpush.msrb.mxu3 %v2440_v15 }
 0xb31   :  { %1668 = vmatpush.msra.mxu1 %v2463_v14 }
 0xb32   :  { %1777 = vmatpush.msra.mxu3 %v3439_v46  ;;  %v2460_v46 = vld [vmem:[%s4242_s3 + $0x500] sm:$0xff] }
 0xb34   :  { %1778 = vmatpush.msra.mxu3 %v3445_v11  ;;  %v2491_v11 = vld [vmem:[%s4242_s3 + $0x5d8] sm:$0xff] }
 0xb35   :  { %1739 = vmatpush.msra.mxu0 %v2491_v11 }
 0xb36   :  { %2479 = vmatmul.msk.f32.gmra.mxu2 %vm49_vm0, %v3665_v53  ;;  %v2462_v53 = vld [vmem:[%s4242_s3 + $0x510] sm:$0xff]  ;;  %1779 = vmatpush.msra.mxu3 %v3451_v28 }
 0xb37   :  { %1669 = vmatpush.msra.mxu1 %v2462_v53  ;;  %v2490_v28 = vld [vmem:[%s4242_s3 + $0x5d0] sm:$0xff] }
 0xb38   :  { %1780 = vmatpush.msra.mxu3 %v3457_v56  ;;  %1740 = vmatpush.msra.mxu0 %v2490_v28  ;;  %v2488_v56 = vld [vmem:[%s4242_s3 + $0x5c0] sm:$0xff] }
 0xb39   :  { %1670 = vmatpush.msra.mxu1 %v2461_v55 }
 0xb3a   :  { %1781 = vmatpush.msra.mxu3 %v3477_v0  ;;  %1741 = vmatpush.msra.mxu0 %v2489_v29  ;;  %v2487_v0 = vld [vmem:[%s4242_s3 + $0x5b8] sm:$0xff] }
 0xb3b   :  { %1671 = vmatpush.msra.mxu1 %v2460_v46 }
 0xb3c   :  { %1782 = vmatpush.msra.mxu3 %v3483_v37  ;;  %1742 = vmatpush.msra.mxu0 %v2488_v56  ;;  %v2485_v37 = vld [vmem:[%s4242_s3 + $0x5a8] sm:$0xff] }
 0xb3d   :  { %1816 = vmatpush.msrb.mxu1 %v3703_v22 }
 0xb3e   :  { %1783 = vmatpush.msra.mxu3 %v3489_v62  ;;  %1743 = vmatpush.msra.mxu0 %v2487_v0  ;;  %v2484_v62 = vld [vmem:[%s4242_s3 + $0x5a0] sm:$0xff] }
 0xb40   :  { %1784 = vmatpush.msra.mxu3 %v3495_v3  ;;  %1744 = vmatpush.msra.mxu0 %v2486_v30  ;;  %v2483_v3 = vld [vmem:[%s4242_s3 + $0x598] sm:$0xff] }
 0xb42   :  { %1785 = vmatpush.msra.mxu3 %v3524_v16  ;;  %1745 = vmatpush.msra.mxu0 %v2485_v37 }
 0xb44   :  { %1786 = vmatpush.msra.mxu3 %v3539_v23  ;;  %1746 = vmatpush.msra.mxu0 %v2484_v62  ;;  %v2482_v23 = vld [vmem:[%s4242_s3 + $0x590] sm:$0xff] }
 0xb46   :  { %1787 = vmatpush.msra.mxu3 %v3551_v20  ;;  %1747 = vmatpush.msra.mxu0 %v2483_v3  ;;  %v2481_v20 = vld [vmem:[%s4242_s3 + $0x588] sm:$0xff] }
 0xb48   :  { %1788 = vmatpush.msra.mxu3 %v3563_v31  ;;  %1748 = vmatpush.msra.mxu0 %v2482_v23 }
 0xb4a   :  { %1789 = vmatpush.msra.mxu3 %v3582_v36  ;;  %1749 = vmatpush.msra.mxu0 %v2481_v20 }
 0xb4c   :  { %1790 = vmatpush.msra.mxu3 %v3594_v63  ;;  %1750 = vmatpush.msra.mxu0 %v2480_v24 }
 0xb4e   :  { %1791 = vmatpush.msra.mxu3 %v3606_v18 }
 0xb50   :  { %1792 = vmatpush.msra.mxu3 %v3618_v44 }
 0xb7b   :  { %v1627_v16 = vpop.f32.mrf.mxu0 }
 0xb7c   :  { %1672 = vmatmul.f32.vlgmr.msra.gmra.mxu1 %v1627_v16 }
 0xb81   :  { %v1545_v31 = vpop.f32.mrf.mxu2 }
 0xb82   :  { %1590 = vmatmul.f32.vlgmr.msrb.gmra.mxu3 %v1545_v31 }
 0xb83   :  { %v1630_v36 = vpop.f32.mrf.mxu0  ;;  %1889 = vmatpush.msrb.mxu3 %v3703_v22 }
 0xb84   :  { %1675 = vmatmul.f32.gmra.mxu1 %v1630_v36 }
 0xb89   :  { %v1548_v40 = vpop.f32.mrf.mxu2 }
 0xb8a   :  { %1593 = vmatmul.f32.gmra.mxu3 %v1548_v40 }
 0xb8b   :  { %v1633_v63 = vpop.f32.mrf.mxu0 }
 0xb8c   :  { %1678 = vmatmul.f32.gmra.mxu1 %v1633_v63 }
 0xb91   :  { %v1551_v50 = vpop.f32.mrf.mxu2 }
 0xb92   :  { %1596 = vmatmul.f32.gmra.mxu3 %v1551_v50 }
 0xb93   :  { %v1636_v18 = vpop.f32.mrf.mxu0 }
 0xb94   :  { %1681 = vmatmul.f32.gmra.mxu1 %v1636_v18 }
 0xb99   :  { %v1554_v13 = vpop.f32.mrf.mxu2 }
 0xb9a   :  { %1599 = vmatmul.f32.gmra.mxu3 %v1554_v13 }
 0xba1   :  { %v1706_v2 = vpop.f32.mrf.mxu2 }
 0xba2   :  { %1751 = vmatmul.f32.vlgmr.msra.gmra.mxu0 %v1706_v2 }
 0xba9   :  { %v1709_v9 = vpop.f32.mrf.mxu2 }
 0xbaa   :  { %1754 = vmatmul.f32.gmra.mxu0 %v1709_v9 }
 0xbb1   :  { %v1712_v44 = vpop.f32.mrf.mxu2 }
 0xbb2   :  { %1757 = vmatmul.f32.gmra.mxu0 %v1712_v44 }
 0xbb9   :  { %v1715_v52 = vpop.f32.mrf.mxu2 }
 0xbba   :  { %1760 = vmatmul.f32.gmra.mxu0 %v1715_v52 }
 0xbf9   :  { %v1673_v5 = vpop.f32.mrf.mxu1 }
 0xc01   :  { %v1676_v38 = vpop.f32.mrf.mxu1 }
 0xc05   :  { %v1591_v22 = vpop.f32.mrf.mxu3 }
 0xc06   :  { %v1606_v1 = vadd.f32 %v2559_v12, %v1591_v22 }
 0xc08   :  { %v1685_v32 = vadd.f32 %v1673_v5, %v1606_v1  ;;  %v2561_v1 = vld [vmem:[%s4247_s8 + $0x3] ss:$0 sm:$0xff] }
 0xc09   :  { %v1679_v60 = vpop.f32.mrf.mxu1 }
 0xc0d   :  { %v1594_v51 = vpop.f32.mrf.mxu3 }
 0xc0e   :  { %v1607_v42 = vadd.f32 %v2559_v12, %v1594_v51 }
 0xc10   :  { %v1686_v34 = vadd.f32 %v1676_v38, %v1607_v42 }
 0xc11   :  { %v1682_v7 = vpop.f32.mrf.mxu1 }
 0xc15   :  { %v1597_v45 = vpop.f32.mrf.mxu3 }
 0xc16   :  { %v1608_v61 = vadd.f32 %v2559_v12, %v1597_v45  ;;  %v2560_v45 = vld [vmem:[%s4246_s7 + $0x3] ss:$0 sm:$0xff] }
 0xc18   :  { %v1687_v41 = vadd.f32 %v1679_v60, %v1608_v61 }
 0xc1d   :  { %v1600_v4 = vpop.f32.mrf.mxu3 }
 0xc1e   :  { %v1609_v25 = vadd.f32 %v2559_v12, %v1600_v4 }
 0xc1f   :  { %v1752_v39 = vpop.f32.mrf.mxu0 }
 0xc20   :  { %v1764_v10 = vadd.f32 %v1752_v39, %v1685_v32  ;;  %v1688_v48 = vadd.f32 %v1682_v7, %v1609_v25 }
 0xc27   :  { %v1755_v57 = vpop.f32.mrf.mxu0 }
 0xc28   :  { %v1765_v26 = vadd.f32 %v1755_v57, %v1686_v34 }
 0xc2a   :  { %v1768_v35 = vadd.f32 %v1765_v26, %v1764_v10 }
 0xc2f   :  { %v1758_v17 = vpop.f32.mrf.mxu0 }
 0xc30   :  { %v1766_v47 = vadd.f32 %v1758_v17, %v1687_v41 }
 0xc32   :  { %v1769_v49 = vadd.f32 %v1768_v35, %v1766_v47  ;;  %v4270_v35 = vld [vmem:[#allocation3_spill] sm:$0xff] }
 0xc37   :  { %v1761_v19 = vpop.f32.mrf.mxu0 }
 0xc38   :  { %v1767_v21 = vadd.f32 %v1761_v19, %v1688_v48 }
 0xc3a   :  { %v1770_v27 = vadd.f32 %v1769_v49, %v1767_v21 }
 0xc3c   :  { %v1771_v15 = vrot.slane %v1770_v27, 4 }
 0xc3e   :  { %v1772_v8 = vadd.f32 %v1771_v15, %v1770_v27 }
 0xc40   :  { %v1773_v14 = vrot.slane %v1772_v8, 2 }
 0xc42   :  { %v1774_v58 = vadd.f32 %v1773_v14, %v1772_v8 }
 0xc44   :  { %v1775_v53 = vrot.slane %v1774_v58, 1 }
 0xc46   :  { %v1776_v43 = vadd.f32 %v1775_v53, %v1774_v58 }
 0xc48   :  { %1793 = vmatmul.f32.vlgmr.msra.gmra.mxu3 %v1776_v43 }
 0xccb   :  { %v1794_v33 = vpop.f32.mrf.mxu3 }
 0xccc   :  { %v1797_v55 = vmul.f32 0.001953125, %v1794_v33 }
 0xcce   :  { %2496 = vmatmul.msk.f32.vlgmr.msrb.gmra.mxu1 %vm382_vm1, %v1797_v55 }
 0xd4b   :  { %v1818_v46 = vpop.f32.mrf.mxu1 }
 0xd4c   :  { %v1821_v59 = vperm.slane %v1818_v46, 0 }
 0xd4e   :  { %v1822_v11 = vsub.f32 %v1764_v10, %v1821_v59  ;;  %v1823_v28 = vsub.f32 %v1765_v26, %v1821_v59  ;;  %v1824_v29 = vsub.f32 %v1766_v47, %v1821_v59  ;;  %v1825_v56 = vsub.f32 %v1767_v21, %v1821_v59  ;;  %v4269_v47 = vld [vmem:[#allocation2_spill] sm:$0xff] }
 0xd50   :  { %v1826_v0 = vmul.f32 %v1822_v11, %v1822_v11  ;;  %v1827_v30 = vmul.f32 %v1823_v28, %v1823_v28  ;;  %v1828_v37 = vmul.f32 %v1824_v29, %v1824_v29  ;;  %v1829_v3 = vmul.f32 %v1825_v56, %v1825_v56 }
 0xd52   :  { %v1830_v62 = vadd.f32 %v1827_v30, %v1826_v0 }
 0xd54   :  { %v1831_v16 = vadd.f32 %v1830_v62, %v1828_v37  ;;  %v2045_v62 = vld [vmem:[%s4249_s4 + $0x40] sm:$0xff] }
 0xd56   :  { %v1832_v23 = vadd.f32 %v1831_v16, %v1829_v3 }
 0xd58   :  { %v1833_v20 = vrot.slane %v1832_v23, 4 }
 0xd5a   :  { %v1834_v31 = vadd.f32 %v1833_v20, %v1832_v23 }
 0xd5c   :  { %v1835_v24 = vrot.slane %v1834_v31, 2 }
 0xd5e   :  { %v1836_v36 = vadd.f32 %v1835_v24, %v1834_v31 }
 0xd60   :  { %v1837_v40 = vrot.slane %v1836_v36, 1 }
 0xd62   :  { %v1838_v63 = vadd.f32 %v1837_v40, %v1836_v36  ;;  %v2040_v36 = vld [vmem:[%s4249_s4 + $0x18] sm:$0xff] }
 0xd64   :  { %1855 = vmatmul.f32.vlgmr.msrb.gmra.mxu2 %v1838_v63 }
 0xde7   :  { %v1856_v50 = vpop.f32.mrf.mxu2 }
 0xde8   :  { %v1859_v18 = vmul.f32 0.001953125, %v1856_v50 }
 0xdea   :  { %v1860_v13 = vadd.f32 1e-05, %v1859_v18 }
 0xdec   :  { %2617 = vrsqrt.f32 %v1860_v13  ;;  %vm1867_vm4 = vweird.f32 %v1860_v13 }
 0xdf2   :  { %v2618_v2 = vpop.eup %2617 }
 0xdf3   :  { %v1862_v9 = vmul.f32 %v2618_v2, %v1860_v13  ;;  %vm1868_vm3 = vweird.f32 %v2618_v2 }
 0xdf4   :  { %vm1869_vm5 = vmor %vm1867_vm4, %vm1868_vm3 }
 0xdf5   :  { %v1863_v44 = vmul.f32 %v2618_v2, %v1862_v9 }
 0xdf7   :  { %v1864_v52 = vmul.f32 0.5, %v1863_v44 }
 0xdf9   :  { %v1865_v22 = vsub.f32 1.5, %v1864_v52 }
 0xdfb   :  { %v1866_v5 = vmul.f32 %v2618_v2, %v1865_v22 }
 0xdfd   :  { %v1870_v51 = vsel %vm1869_vm5, %v2618_v2, %v1866_v5 }
 0xdfe   :  { %2497 = vmatmul.msk.f32.vlgmr.msrb.gmra.mxu3 %vm382_vm1, %v1870_v51 }
 0xe81   :  { %v1891_v38 = vpop.f32.mrf.mxu3 }
 0xe82   :  { %v1894_v39 = vperm.slane %v1891_v38, 0 }
 0xe84   :  { %v1895_v57 = vmul.f32 %v1894_v39, %v1822_v11  ;;  %v1896_v60 = vmul.f32 %v1894_v39, %v1823_v28  ;;  %v1897_v12 = vmul.f32 %v1894_v39, %v1824_v29  ;;  %v1898_v42 = vmul.f32 %v1894_v39, %v1825_v56 }
 0xe86   :  { %v1904_v61 = vmul.f32 %v2560_v45, %v1895_v57  ;;  %v1905_v4 = vmul.f32 %v2560_v45, %v1896_v60  ;;  %v1906_v17 = vmul.f32 %v2560_v45, %v1897_v12  ;;  %v1907_v34 = vmul.f32 %v2560_v45, %v1898_v42 }
 0xe88   :  { %v1916_v32 = vadd.f32 %v2561_v1, %v1907_v34  ;;  %v1915_v41 = vadd.f32 %v2561_v1, %v1906_v17  ;;  %v1914_v25 = vadd.f32 %v2561_v1, %v1905_v4  ;;  %v1913_v26 = vadd.f32 %v2561_v1, %v1904_v61  ;;  %v2525_v34 = vld [vmem:[%s4249_s4 + $0xf8] sm:$0xff] }
 0xe89   :  { %2130 = vmatpush.msra.mxu3 %v2525_v34 }
 0xe8a   :  { %v4010_v7 = vadd.f32 %v1916_v32, %v3383_v6  ;;  %v4013_v10 = vadd.f32 %v1915_v41, %v3390_v54  ;;  %v4016_v48 = vadd.f32 %v1914_v25, %v4269_v47  ;;  %v4019_v19 = vadd.f32 %v1913_v26, %v4270_v35  ;;  %v2524_v32 = vld [vmem:[%s4249_s4 + $0xf0] sm:$0xff]  ;;  %v2052_v26 = vld [vmem:[%s4249_s4 + $0x78] sm:$0xff]  ;;  %v2523_v47 = vld [vmem:[%s4249_s4 + $0xe8] sm:$0xff] }
 0xe8b   :  { %v2051_v35 = vld [vmem:[%s4249_s4 + $0x70] sm:$0xff]  ;;  %2131 = vmatpush.msra.mxu3 %v2524_v32  ;;  %2053 = vmatpush.msra.mxu1 %v2052_v26 }
 0xe8c   :  { %v2503_v49 = vmul.f32 -1.442695, %v4010_v7  ;;  %v2502_v21 = vmul.f32 -1.442695, %v4013_v10  ;;  %v2501_v27 = vmul.f32 -1.442695, %v4016_v48 }
 0xe8d   :  { %v2500_v15 = vmul.f32 -1.442695, %v4019_v19  ;;  %2132 = vmatpush.msra.mxu3 %v2523_v47  ;;  %2054 = vmatpush.msra.mxu1 %v2051_v35 }
 0xe8e   :  { %2619 = vpow2.f32 %v2503_v49 }
 0xe8f   :  { %2621 = vpow2.f32 %v2502_v21  ;;  %v2545_v21 = vld [vmem:[%s4249_s4 + $0x178] sm:$0xff] }
 0xe90   :  { %2623 = vpow2.f32 %v2501_v27  ;;  %v2522_v27 = vld [vmem:[%s4249_s4 + $0xe0] sm:$0xff] }
 0xe91   :  { %2625 = vpow2.f32 %v2500_v15  ;;  %v2544_v15 = vld [vmem:[%s4249_s4 + $0x170] sm:$0xff]  ;;  %2133 = vmatpush.msra.mxu3 %v2522_v27 }
 0xe94   :  { %v2620_v6 = vpop.eup %2619 }
 0xe95   :  { %v2622_v54 = vpop.eup %2621  ;;  %v1936_v8 = vadd.f32 1.0, %v2620_v6  ;;  %v2050_v6 = vld [vmem:[%s4249_s4 + $0x68] sm:$0xff] }
 0xe96   :  { %v2624_v14 = vpop.eup %2623  ;;  %v1935_v58 = vadd.f32 1.0, %v2622_v54  ;;  %v2521_v54 = vld [vmem:[%s4249_s4 + $0xd8] sm:$0xff]  ;;  %2055 = vmatpush.msra.mxu1 %v2050_v6 }
 0xe97   :  { %v2626_v53 = vpop.eup %2625  ;;  %2627 = vrcp.f32 %v1936_v8  ;;  %v1934_v43 = vadd.f32 1.0, %v2624_v14  ;;  %v1991_v46 = vand.u32 2147483647, %v1936_v8  ;;  %v1993_v28 = vand.u32 2147483648, %v1936_v8  ;;  %v2049_v14 = vld [vmem:[%s4249_s4 + $0x60] sm:$0xff]  ;;  %2134 = vmatpush.msra.mxu3 %v2521_v54 }
 0xe98   :  { %2629 = vrcp.f32 %v1935_v58  ;;  %v4025_v33 = vadd.f32 1.0, %v2626_v53  ;;  %v1976_v56 = vand.u32 2147483647, %v1935_v58  ;;  %v1978_v30 = vand.u32 2147483648, %v1935_v58  ;;  %v2542_v53 = vld [vmem:[%s4249_s4 + $0x160] sm:$0xff]  ;;  %2056 = vmatpush.msra.mxu1 %v2049_v14 }
 0xe99   :  { %2631 = vrcp.f32 %v1934_v43  ;;  %vm1987_vm1 = vweird.f32 %v1936_v8  ;;  %vm4028_vm6 = vcmp.eq.f32.partialorder %v1991_v46, 8.507059e+37  ;;  %vm1972_vm7 = vweird.f32 %v1935_v58  ;;  %v2007_v46 = vld [vmem:[%s4250_s2 + $0x8] sm:$0xff] }
 0xe9a   :  { %2633 = vrcp.f32 %v4025_v33  ;;  %v1994_v20 = vor.u32 1.1754944e-38, %v1993_v28  ;;  %vm4032_vm10 = vcmp.eq.f32.partialorder %v1976_v56, 8.507059e+37  ;;  %v1979_v50 = vor.u32 1.1754944e-38, %v1978_v30  ;;  %v2518_v28 = vld [vmem:[%s4249_s4 + $0xc0] sm:$0xff]  ;;  %v2539_v56 = vld [vmem:[%s4249_s4 + $0x148] sm:$0xff] }
 0xe9b   :  { %v1961_v13 = vand.u32 2147483647, %v1934_v43  ;;  %v1963_v9 = vand.u32 2147483648, %v1934_v43  ;;  %v1946_v52 = vand.u32 2147483647, %v4025_v33  ;;  %v1948_v51 = vand.u32 2147483648, %v4025_v33 }
 0xe9c   :  { %vm1957_vm15 = vweird.f32 %v1934_v43  ;;  %vm1942_vm3 = vweird.f32 %v4025_v33  ;;  %v2527_v30 = vld [vmem:[%s4250_s2 + $0x28] sm:$0xff] }
 0xe9d   :  { %v2628_v55 = vpop.eup %2627  ;;  %v1964_v1 = vor.u32 1.1754944e-38, %v1963_v9  ;;  %vm1962_vm4 = vcmp.eq.f32.partialorder %v1961_v13, 8.507059e+37  ;;  %v1949_v17 = vor.u32 1.1754944e-38, %v1948_v51  ;;  %v2514_v13 = vld [vmem:[%s4249_s4 + $0xa0] sm:$0xff]  ;;  %v2536_v9 = vld [vmem:[%s4249_s4 + $0x130] sm:$0xff]  ;;  %v2511_v51 = vld [vmem:[%s4249_s4 + $0x88] sm:$0xff] }
 0xe9e   :  { %v2630_v59 = vpop.eup %2629  ;;  %v1983_v11 = vmul.f32 %v2628_v55, %v1936_v8  ;;  %vm1988_vm8 = vweird.f32 %v2628_v55  ;;  %v2543_v8 = vld [vmem:[%s4249_s4 + $0x168] sm:$0xff] }
 0xe9f   :  { %v1968_v29 = vmul.f32 %v2630_v59, %v1935_v58  ;;  %v2632_v37 = vpop.eup %2631  ;;  %vm1973_vm9 = vweird.f32 %v2630_v59  ;;  %vm1989_vm11 = vmor %vm1987_vm1, %vm1988_vm8  ;;  %vm1947_vm1 = vcmp.eq.f32.partialorder %v1946_v52, 8.507059e+37  ;;  %v2520_v58 = vld [vmem:[%s4249_s4 + $0xd0] sm:$0xff]  ;;  %v2037_v52 = vld [vmem:[%s4249_s4] sm:$0xff] }
 0xea0   :  { %v1984_v0 = vsub.f32 1.0, %v1983_v11  ;;  %v2634_v16 = vpop.eup %2633  ;;  %v1953_v31 = vmul.f32 %v2632_v37, %v1934_v43  ;;  %vm1974_vm12 = vmor %vm1972_vm7, %vm1973_vm9  ;;  %vm1958_vm13 = vweird.f32 %v2632_v37  ;;  %v2048_v43 = vld [vmem:[%s4249_s4 + $0x58] sm:$0xff]  ;;  %2135 = vmatpush.msra.mxu3 %v2520_v58  ;;  %v2047_v11 = vld [vmem:[%s4249_s4 + $0x50] sm:$0xff] }
 0xea1   :  { %v1969_v3 = vsub.f32 1.0, %v1968_v29  ;;  %v1938_v40 = vmul.f32 %v2634_v16, %v4025_v33  ;;  %vm1943_vm14 = vweird.f32 %v2634_v16  ;;  %vm1959_vm2 = vmor %vm1957_vm15, %vm1958_vm13  ;;  %v2507_v33 = vld [vmem:[%s4250_s2 + $0x18] sm:$0xff]  ;;  %2057 = vmatpush.msra.mxu1 %v2048_v43  ;;  %v2540_v29 = vld [vmem:[%s4249_s4 + $0x150] sm:$0xff] }
 0xea2   :  { %v1985_v23 = vmul.f32 %v2628_v55, %v1984_v0  ;;  %v1954_v18 = vsub.f32 1.0, %v1953_v31  ;;  %vm1944_vm5 = vmor %vm1942_vm3, %vm1943_vm14  ;;  %v2526_v0 = vld [vmem:[%s4250_s2 + $0x20] sm:$0xff] }
 0xea3   :  { %v1970_v24 = vmul.f32 %v2630_v59, %v1969_v3  ;;  %v1939_v44 = vsub.f32 1.0, %v1938_v40  ;;  %2058 = vmatpush.msra.mxu1 %v2047_v11  ;;  %v2044_v3 = vld [vmem:[%s4249_s4 + $0x38] sm:$0xff]  ;;  %v2041_v31 = vld [vmem:[%s4249_s4 + $0x20] sm:$0xff]  ;;  %v2515_v40 = vld [vmem:[%s4249_s4 + $0xa8] sm:$0xff] }
 0xea4   :  { %v1986_v63 = vadd.f32 %v2628_v55, %v1985_v23  ;;  %v1955_v5 = vmul.f32 %v2632_v37, %v1954_v18  ;;  %v2042_v23 = vld [vmem:[%s4249_s4 + $0x28] sm:$0xff]  ;;  %v2537_v18 = vld [vmem:[%s4249_s4 + $0x138] sm:$0xff] }
 0xea5   :  { %v1971_v2 = vadd.f32 %v2630_v59, %v1970_v24  ;;  %v1940_v45 = vmul.f32 %v2634_v16, %v1939_v44  ;;  %v2516_v24 = vld [vmem:[%s4249_s4 + $0xb0] sm:$0xff]  ;;  %v2513_v44 = vld [vmem:[%s4249_s4 + $0x98] sm:$0xff] }
 0xea6   :  { %v1990_v22 = vsel %vm1989_vm11, %v2628_v55, %v1986_v63  ;;  %v1956_v12 = vadd.f32 %v2632_v37, %v1955_v5  ;;  %v2519_v55 = vld [vmem:[%s4249_s4 + $0xc8] sm:$0xff]  ;;  %v2039_v63 = vld [vmem:[%s4249_s4 + $0x10] sm:$0xff] }
 0xea7   :  { %v1995_v38 = vsel %vm4028_vm6, %v1994_v20, %v1990_v22  ;;  %v1975_v39 = vsel %vm1974_vm12, %v2630_v59, %v1971_v2  ;;  %v1941_v61 = vadd.f32 %v2634_v16, %v1940_v45  ;;  %v2541_v59 = vld [vmem:[%s4249_s4 + $0x158] sm:$0xff]  ;;  %2136 = vmatpush.msra.mxu3 %v2519_v55  ;;  %v2038_v2 = vld [vmem:[%s4249_s4 + $0x8] sm:$0xff]  ;;  %v2512_v5 = vld [vmem:[%s4249_s4 + $0x90] sm:$0xff] }
 0xea8   :  { %v2000_v57 = vmul.f32 %v1995_v38, %v4010_v7  ;;  %v1980_v60 = vsel %vm4032_vm10, %v1979_v50, %v1975_v39  ;;  %v1960_v4 = vsel %vm1959_vm2, %v2632_v37, %v1956_v12  ;;  %v2046_v37 = vld [vmem:[%s4249_s4 + $0x48] sm:$0xff]  ;;  %v2517_v20 = vld [vmem:[%s4249_s4 + $0xb8] sm:$0xff]  ;;  %v2538_v50 = vld [vmem:[%s4249_s4 + $0x140] sm:$0xff] }
 0xea9   :  { %v1999_v42 = vmul.f32 %v1980_v60, %v4013_v10  ;;  %v1965_v41 = vsel %vm1962_vm4, %v1964_v1, %v1960_v4  ;;  %v1945_v25 = vsel %vm1944_vm5, %v2634_v16, %v1941_v61  ;;  %2137 = vmatpush.msra.mxu3 %v2518_v28  ;;  %2059 = vmatpush.msra.mxu1 %v2046_v37  ;;  %v2043_v16 = vld [vmem:[%s4249_s4 + $0x30] sm:$0xff]  ;;  %v2535_v22 = vld [vmem:[%s4249_s4 + $0x128] sm:$0xff]  ;;  %v2534_v38 = vld [vmem:[%s4249_s4 + $0x120] sm:$0xff] }
 0xeaa   :  { %2004 = vst [vmem:[%s4248_s12 + $0x18] sm:$0xff] %v2000_v57  ;;  %2026 = vmatpush.msrb.mxu0 %v2000_v57  ;;  %2102 = vmatpush.msra.mxu2 %v2000_v57  ;;  %v1998_v7 = vmul.f32 %v1965_v41, %v4016_v48  ;;  %v1950_v10 = vsel %vm1947_vm1, %v1949_v17, %v1945_v25  ;;  %v2506_v48 = vld [vmem:[%s4250_s2 + $0x10] sm:$0xff]  ;;  %v2533_v39 = vld [vmem:[%s4249_s4 + $0x118] sm:$0xff]  ;;  %v2510_v45 = vld [vmem:[%s4249_s4 + $0x80] sm:$0xff] }
 0xeab   :  { %2003 = vst [vmem:[%s4248_s12 + $0x10] sm:$0xff] %v1999_v42  ;;  %v1997_v49 = vmul.f32 %v1950_v10, %v4019_v19  ;;  %v2006_v19 = vld [vmem:[%s4250_s2] sm:$0xff]  ;;  %2060 = vmatpush.msra.mxu1 %v2045_v62  ;;  %2138 = vmatpush.msra.mxu3 %v2517_v20  ;;  %v2531_v60 = vld [vmem:[%s4249_s4 + $0x108] sm:$0xff] }
 0xeac   :  { %2027 = vmatpush.msrb.mxu0 %v1999_v42  ;;  %2103 = vmatpush.msra.mxu2 %v1999_v42  ;;  %2002 = vst [vmem:[%s4248_s12 + $0x8] sm:$0xff] %v1998_v7  ;;  %v2530_v12 = vld [vmem:[%s4249_s4 + $0x100] sm:$0xff] }
 0xead   :  { %2001 = vst [vmem:[%s4248_s12] sm:$0xff] %v1997_v49  ;;  %2061 = vmatpush.msra.mxu1 %v2044_v3  ;;  %2139 = vmatpush.msra.mxu3 %v2516_v24  ;;  %v2562_v41 = vld [vmem:[%s4251_s6] ss:$0 sm:$0xff] }
 0xeae   :  { %2028 = vmatpush.msrb.mxu0 %v1998_v7  ;;  %2104 = vmatpush.msra.mxu2 %v1998_v7 }
 0xeaf   :  { %2062 = vmatpush.msra.mxu1 %v2043_v16  ;;  %2140 = vmatpush.msra.mxu3 %v2515_v40 }
 0xeb0   :  { %2029 = vmatpush.msrb.mxu0 %v1997_v49  ;;  %2105 = vmatpush.msra.mxu2 %v1997_v49 }
 0xeb1   :  { %2508 = vmatmul.msk.f32.vlgmr.msra.gmra.mxu2 %vm49_vm0, %v2506_v48  ;;  %2504 = vmatmul.msk.f32.vlgmr.msrb.gmra.mxu0 %vm49_vm0, %v2006_v19 }
 0xeb2   :  { %2176 = vmatpush.msra.mxu0 %v2000_v57  ;;  %2204 = vmatpush.msrb.mxu2 %v2545_v21  ;;  %v2532_v57 = vld [vmem:[%s4249_s4 + $0x110] sm:$0xff] }
 0xeb3   :  { %2063 = vmatpush.msra.mxu1 %v2042_v23  ;;  %2141 = vmatpush.msra.mxu3 %v2514_v13 }
 0xeb4   :  { %2177 = vmatpush.msra.mxu0 %v1999_v42  ;;  %2205 = vmatpush.msrb.mxu2 %v2544_v15 }
 0xeb5   :  { %2064 = vmatpush.msra.mxu1 %v2041_v31  ;;  %2142 = vmatpush.msra.mxu3 %v2513_v44 }
 0xeb6   :  { %2178 = vmatpush.msra.mxu0 %v1998_v7  ;;  %2206 = vmatpush.msrb.mxu2 %v2543_v8 }
 0xeb7   :  { %2065 = vmatpush.msra.mxu1 %v2040_v36  ;;  %2143 = vmatpush.msra.mxu3 %v2512_v5 }
 0xeb8   :  { %2179 = vmatpush.msra.mxu0 %v1997_v49  ;;  %2207 = vmatpush.msrb.mxu2 %v2542_v53 }
 0xeb9   :  { %2509 = vmatmul.msk.f32.gmra.mxu2 %vm49_vm0, %v2507_v33  ;;  %2505 = vmatmul.msk.f32.gmra.mxu0 %vm49_vm0, %v2007_v46 }
 0xeba   :  { %2208 = vmatpush.msrb.mxu2 %v2541_v59  ;;  %2066 = vmatpush.msra.mxu1 %v2039_v63 }
 0xebb   :  { %2144 = vmatpush.msra.mxu3 %v2511_v51 }
 0xebc   :  { %2209 = vmatpush.msrb.mxu2 %v2540_v29  ;;  %2067 = vmatpush.msra.mxu1 %v2038_v2 }
 0xebd   :  { %2145 = vmatpush.msra.mxu3 %v2510_v45 }
 0xebe   :  { %2210 = vmatpush.msrb.mxu2 %v2539_v56  ;;  %2068 = vmatpush.msra.mxu1 %v2037_v52 }
 0xec0   :  { %2211 = vmatpush.msrb.mxu2 %v2538_v50 }
 0xec1   :  { %2528 = vmatmul.msk.f32.vlgmr.msra.gmra.mxu0 %vm49_vm0, %v2526_v0 }
 0xec2   :  { %2212 = vmatpush.msrb.mxu2 %v2537_v18 }
 0xec4   :  { %2213 = vmatpush.msrb.mxu2 %v2536_v9 }
 0xec6   :  { %2214 = vmatpush.msrb.mxu2 %v2535_v22 }
 0xec8   :  { %2215 = vmatpush.msrb.mxu2 %v2534_v38 }
 0xec9   :  { %2529 = vmatmul.msk.f32.gmra.mxu0 %vm49_vm0, %v2527_v30 }
 0xeca   :  { %2216 = vmatpush.msrb.mxu2 %v2533_v39 }
 0xecc   :  { %2217 = vmatpush.msrb.mxu2 %v2532_v57 }
 0xece   :  { %2218 = vmatpush.msrb.mxu2 %v2531_v60 }
 0xed0   :  { %2219 = vmatpush.msrb.mxu2 %v2530_v12 }
 0xf2e   :  { %v2031_v42 = vpop.f32.mrf.mxu0 }
 0xf2f   :  { %2069 = vmatmul.f32.vlgmr.msra.gmra.mxu1 %v2031_v42 }
 0xf34   :  { %v2107_v1 = vpop.f32.mrf.mxu2 }
 0xf35   :  { %2146 = vmatmul.f32.vlgmr.msra.gmra.mxu3 %v2107_v1 }
 0xf36   :  { %v2034_v61 = vpop.f32.mrf.mxu0 }
 0xf37   :  { %2072 = vmatmul.f32.gmra.mxu1 %v2034_v61 }
 0xf3c   :  { %v2110_v4 = vpop.f32.mrf.mxu2 }
 0xf3d   :  { %2149 = vmatmul.f32.gmra.mxu3 %v2110_v4 }
 0xf3e   :  { %v2181_v17 = vpop.f32.mrf.mxu0 }
 0xf3f   :  { %2220 = vmatmul.f32.vlgmr.msrb.gmra.mxu2 %v2181_v17 }
 0xf46   :  { %v2184_v34 = vpop.f32.mrf.mxu0 }
 0xf47   :  { %2223 = vmatmul.f32.gmra.mxu2 %v2184_v34 }
 0xfac   :  { %v2070_v32 = vpop.f32.mrf.mxu1 }
 0xfad   :  { %v2079_v26 = vadd.f32 %v2562_v41, %v2070_v32 }
 0xfb4   :  { %v2073_v35 = vpop.f32.mrf.mxu1 }
 0xfb5   :  { %v2080_v48 = vadd.f32 %v2562_v41, %v2073_v35 }
 0xfb8   :  { %v2147_v25 = vpop.f32.mrf.mxu3 }
 0xfb9   :  { %v2153_v7 = vadd.f32 %v2147_v25, %v2079_v26 }
 0xfc0   :  { %v2150_v49 = vpop.f32.mrf.mxu3 }
 0xfc1   :  { %v2154_v19 = vadd.f32 %v2150_v49, %v2080_v48 }
 0xfc2   :  { %v2221_v10 = vpop.f32.mrf.mxu2 }
 0xfc3   :  { %v2227_v47 = vadd.f32 %v2221_v10, %v2153_v7 }
 0xfc5   :  { %2229 = vst [vmem:[%s4252_s11] sm:$0xff] %v2227_v47 }
 0xfca   :  { %v2224_v21 = vpop.f32.mrf.mxu2 }
 0xfcb   :  { %v2228_v27 = vadd.f32 %v2224_v21, %v2154_v19 }
 0xfcd   :  { %2230 = vst [vmem:[%s4252_s11 + $0x8] sm:$0xff] %v2228_v27 }

</bundles_post_ra>
